<compile_context>
chip_gen: v7x
topology: tpu7x:2x2x1
jax: 0.10.0
libtpu: 0.0.40
codegen_flags: <defaults>
</compile_context>

<pallas_src>
import math

import jax
import jax.numpy as jnp
from jax import lax
from jax.experimental import pallas as pl
from jax.experimental.pallas import tpu as pltpu  # noqa: F401  (TPU backend)

# ----------------------------- configuration --------------------------------
NUM_USER = 32
NUM_ITEM = 64
NUM_TAG = 32
NUM_ENTITY = NUM_ITEM + NUM_TAG          # 96
N_NODES = NUM_USER + NUM_ENTITY          # 128
NUM_RELATION = 6
DIM_LATENT = 64
DIM_RELATION = 32
DIM_LAYER_LIST = [64, 32]                # -> dim_layer_list = [64, 64, 32]
EDGES_PER_REL = 128
LEAKY_SLOPE = 0.2
NEG_INF = -1e30

# contract the last dim of both operands ("A @ B.T" on the MXU)
_NT = (((1,), (1,)), ((), ()))


def _leaky_relu(x):
    return jnp.where(x > 0.0, x, LEAKY_SLOPE * x)


# ------------------------------ fused kernel ---------------------------------
def _make_kgat_kernel(num_layers, num_relation):
    """Fused: attention scores + densify + masked softmax + bi_inter layers."""

    def kernel(embed_ref, transE_ref, rel_ref, rows_ref, cols_ref, *rest):
        w_refs = rest[: 2 * num_layers]          # (W1_0+b1_0, W2_0+b2_0, W1_1+b1_1, ...)
        out_refs = rest[2 * num_layers:]         # per-layer normalized embeddings

        n = embed_ref.shape[0]
        e = rows_ref.shape[-1]

        a = embed_ref[...]                       # (N, D) f32
        a_bf = a.astype(jnp.bfloat16)
        node_iota = lax.broadcasted_iota(jnp.int32, (n, e), 0)   # [node, edge]

        scores = jnp.zeros((n, n), jnp.float32)
        counts = jnp.zeros((n, n), jnp.float32)

        for k in range(num_relation):            # K=6, statically unrolled
            w_k = transE_ref[k].astype(jnp.bfloat16)                       # (D, R)
            t_k = jnp.dot(a_bf, w_k, preferred_element_type=jnp.float32)   # (N, R)
            h_k = jnp.tanh(t_k + rel_ref[k])                               # (N, R)
            # dense pai: P[i, j] = sum_r tanh(A[i]@W + r)[r] * (A[j]@W)[r]
            p_k = lax.dot_general(h_k.astype(jnp.bfloat16),
                                  t_k.astype(jnp.bfloat16),
                                  _NT, preferred_element_type=jnp.float32)  # (N, N)
            # edge multiplicity via one-hot incidence (VPU build, MXU contract)
            oh_r = (rows_ref[k] == node_iota).astype(jnp.bfloat16)          # (N, E)
            oh_c = (cols_ref[k] == node_iota).astype(jnp.bfloat16)          # (N, E)
            c_k = lax.dot_general(oh_r, oh_c, _NT,
                                  preferred_element_type=jnp.float32)       # (N, N)
            scores = scores + c_k * p_k
            counts = counts + c_k

        # --- torch.sparse.softmax(adj, dim=1): row softmax over stored entries
        present = counts > 0.0
        masked = jnp.where(present, scores, NEG_INF)
        row_max = jnp.max(masked, axis=1, keepdims=True)
        ex = jnp.where(present, jnp.exp(jnp.minimum(scores - row_max, 80.0)), 0.0)
        denom = jnp.sum(ex, axis=1, keepdims=True)       # >= 1 for non-empty rows
        norm_adj = ex * pl.reciprocal(jnp.maximum(denom, 1e-12), approx=True)
        adj_bf = norm_adj.astype(jnp.bfloat16)

        # --- bi_inter aggregation layers (all intermediates stay on-chip) ---
        x = a
        for k in range(num_layers):
            w1 = w_refs[2 * k][...].astype(jnp.bfloat16)
            w2 = w_refs[2 * k + 1][...].astype(jnp.bfloat16)
            nei = jnp.dot(adj_bf, x.astype(jnp.bfloat16),
                          preferred_element_type=jnp.float32)
            s = _leaky_relu(jnp.dot((nei + x).astype(jnp.bfloat16), w1,
                                    preferred_element_type=jnp.float32))
            b = _leaky_relu(jnp.dot((nei * x).astype(jnp.bfloat16), w2,
                                    preferred_element_type=jnp.float32))
            x = s + b
            inv = lax.rsqrt(jnp.maximum(jnp.sum(x * x, axis=1, keepdims=True), 1e-24))
            out_refs[k][...] = x * inv           # F.normalize(p=2, dim=1)

    return kernel


# --------------------------- parameters & glue -------------------------------
def _xavier_uniform(key, shape):
    if len(shape) == 2:
        fan_in, fan_out = shape[0], shape[1]
    else:  # matches torch's _calculate_fan_in_and_fan_out for 3-D tensors
        receptive = math.prod(shape[2:])
        fan_in, fan_out = shape[1] * receptive, shape[0] * receptive
    bound = math.sqrt(6.0 / (fan_in + fan_out))
    return jax.random.uniform(key, shape, jnp.float32, -bound, bound)


def init_params(key):
    dims = [DIM_LATENT] + DIM_LAYER_LIST
    names_shapes = [
        ("user", (NUM_USER, DIM_LATENT)),
        ("entity", (NUM_ENTITY, DIM_LATENT)),
        ("relation", (NUM_RELATION, DIM_RELATION)),
        ("transE", (NUM_RELATION, DIM_LATENT, DIM_RELATION)),
    ]
    for k in range(len(DIM_LAYER_LIST)):
        names_shapes += [
            (f"W1_{k}", (dims[k], dims[k + 1])),
            (f"b1_{k}", (1, dims[k + 1])),
            (f"W2_{k}", (dims[k], dims[k + 1])),
            (f"b2_{k}", (1, dims[k + 1])),
        ]
    keys = jax.random.split(key, len(names_shapes))
    return {name: _xavier_uniform(k, shape) for k, (name, shape) in zip(keys, names_shapes)}


def make_edges(key):
    """Deterministic synthetic edge_index_dict: (K, E, 2) int32 node indices."""
    kr, kc = jax.random.split(key)
    rows = jax.random.randint(kr, (NUM_RELATION, EDGES_PER_REL), 0, N_NODES, jnp.int32)
    cols = jax.random.randint(kc, (NUM_RELATION, EDGES_PER_REL), 0, N_NODES, jnp.int32)
    return jnp.stack([rows, cols], axis=-1)


def kgat_forward(params, edges):
    """Returns (user_embed, entity_embed), matching KGAT.forward (eval mode)."""
    all_embed = jnp.concatenate([params["user"], params["entity"]], axis=0)  # (N, D)

    rows = edges[..., 0].astype(jnp.int32)[:, None, :]   # (K, 1, E)
    cols = edges[..., 1].astype(jnp.int32)[:, None, :]   # (K, 1, E)
    rel = params["relation"][:, None, :]                  # (K, 1, R)

    num_layers = len(DIM_LAYER_LIST)
    dims = [DIM_LATENT] + DIM_LAYER_LIST
    weights = []
    for k in range(num_layers):
        weights.append(params[f"W1_{k}"] + params[f"b1_{k}"])  # exact PyTorch quirk: W + b
        weights.append(params[f"W2_{k}"] + params[f"b2_{k}"])

    out_shapes = tuple(
        jax.ShapeDtypeStruct((N_NODES, dims[k + 1]), jnp.float32) for k in range(num_layers)
    )

    norm_embeds = pl.pallas_call(
        _make_kgat_kernel(num_layers, NUM_RELATION),
        out_shape=out_shapes,
        # single VMEM-resident invocation (no grid): total live data << 1 MiB
    )(all_embed, params["transE"], rel, rows, cols, *weights)

    all_embed_out = jnp.concatenate([all_embed] + list(norm_embeds), axis=1)
    user_embed = all_embed_out[:NUM_USER]
    entity_embed = all_embed_out[NUM_USER:]
    return user_embed, entity_embed


# ----------------------- pure-JAX reference (f32, test only) -----------------
def kgat_forward_ref(params, edges):
    all_embed = jnp.concatenate([params["user"], params["entity"]], axis=0)
    rows = edges[..., 0]
    cols = edges[..., 1]
    e_head = jnp.take(all_embed, rows, axis=0)            # (K, E, D)
    e_tail = jnp.take(all_embed, cols, axis=0)
    tr = jnp.einsum("ked,kdr->ker", e_tail, params["transE"])
    hr = jnp.einsum("ked,kdr->ker", e_head, params["transE"]) + params["relation"][:, None, :]
    pai = jnp.sum(tr * jnp.tanh(hr), axis=-1)              # (K, E)
    r, c, v = rows.reshape(-1), cols.reshape(-1), pai.reshape(-1)
    scores = jnp.zeros((N_NODES, N_NODES), jnp.float32).at[r, c].add(v)
    mask = jnp.zeros((N_NODES, N_NODES), jnp.float32).at[r, c].set(1.0)
    present = mask > 0.0
    masked = jnp.where(present, scores, NEG_INF)
    row_max = jnp.max(masked, axis=1, keepdims=True)
    ex = jnp.where(present, jnp.exp(jnp.minimum(scores - row_max, 80.0)), 0.0)
    norm_adj = ex / jnp.maximum(jnp.sum(ex, axis=1, keepdims=True), 1e-12)
    x = all_embed
    outs = [all_embed]
    for k in range(len(DIM_LAYER_LIST)):
        w1 = params[f"W1_{k}"] + params[f"b1_{k}"]
        w2 = params[f"W2_{k}"] + params[f"b2_{k}"]
        nei = norm_adj @ x
        x = _leaky_relu((nei + x) @ w1) + _leaky_relu((nei * x) @ w2)
        nrm = jnp.sqrt(jnp.sum(x * x, axis=1, keepdims=True))
        outs.append(x / jnp.maximum(nrm, 1e-12))
    out = jnp.concatenate(outs, axis=1)
    return out[:NUM_USER], out[NUM_USER:]


# --------------------------------- main --------------------------------------
if __name__ == "__main__":
    root = jax.random.PRNGKey(0)
    k_params, k_edges = jax.random.split(root)
    params = init_params(k_params)
    edges = make_edges(k_edges)

    user_embed, entity_embed = jax.jit(kgat_forward)(params, edges)
    jax.block_until_ready((user_embed, entity_embed))

    total_dim = DIM_LATENT + sum(DIM_LAYER_LIST)
    assert user_embed.shape == (NUM_USER, total_dim)
    assert entity_embed.shape == (NUM_ENTITY, total_dim)
    assert bool(jnp.all(jnp.isfinite(user_embed))) and bool(jnp.all(jnp.isfinite(entity_embed)))

    # loose structural sanity check vs f32 JAX reference (kernel uses bf16 MXU operands)
    u_ref, e_ref = jax.jit(kgat_forward_ref)(params, edges)
    jax.block_until_ready((u_ref, e_ref))
    max_err = max(
        float(jnp.max(jnp.abs(user_embed - u_ref))),
        float(jnp.max(jnp.abs(entity_embed - e_ref))),
    )
    assert max_err < 0.1, f"max abs diff vs reference too large: {max_err}"

    print("KERNEL_OK")
</pallas_src>

<mosaic_0001>
module attributes {stable_mosaic.version = 11 : i64} {
  func.func @kernel(%arg0: memref<128x64xf32, #tpu.memory_space<vmem>>, %arg1: memref<6x64x32xf32, #tpu.memory_space<vmem>>, %arg2: memref<6x1x32xf32, #tpu.memory_space<vmem>>, %arg3: memref<6x1x128xi32, #tpu.memory_space<vmem>>, %arg4: memref<6x1x128xi32, #tpu.memory_space<vmem>>, %arg5: memref<64x64xf32, #tpu.memory_space<vmem>>, %arg6: memref<64x64xf32, #tpu.memory_space<vmem>>, %arg7: memref<64x32xf32, #tpu.memory_space<vmem>>, %arg8: memref<64x32xf32, #tpu.memory_space<vmem>>, %arg9: memref<128x64xf32, #tpu.memory_space<vmem>>, %arg10: memref<128x32xf32, #tpu.memory_space<vmem>>) attributes {dimension_semantics = [], scalar_prefetch = 0 : i64, scratch_operands = 0 : i64, tpu.core_type = #tpu.core_type<tc>} {
    %c0 = arith.constant 0 : index
    %c0_0 = arith.constant 0 : index
    %0 = vector.load %arg0[%c0, %c0_0] : memref<128x64xf32, #tpu.memory_space<vmem>>, vector<128x64xf32>
    %1 = arith.truncf %0 : vector<128x64xf32> to vector<128x64xbf16>
    %2 = tpu.iota {dimensions = array<i32: 0>} : vector<128x128xi32>
    %cst = arith.constant 0.000000e+00 : f32
    %3 = vector.broadcast %cst : f32 to vector<128x128xf32>
    %cst_1 = arith.constant 0.000000e+00 : f32
    %4 = vector.broadcast %cst_1 : f32 to vector<128x128xf32>
    %c0_2 = arith.constant 0 : index
    %c0_3 = arith.constant 0 : index
    %c0_4 = arith.constant 0 : index
    %5 = vector.load %arg1[%c0_2, %c0_3, %c0_4] : memref<6x64x32xf32, #tpu.memory_space<vmem>>, vector<1x64x32xf32>
    %6 = vector.shape_cast %5 : vector<1x64x32xf32> to vector<64x32xf32>
    %7 = arith.truncf %6 : vector<64x32xf32> to vector<64x32xbf16>
    %cst_5 = arith.constant dense<0.000000e+00> : vector<128x32xf32>
    %8 = tpu.matmul %1, %7, %cst_5 {dimension_numbers = #tpu.dot_dimension_numbers<[1], [0], [0], [1], [0, 0, 1, 1], [], []>} : vector<128x64xbf16>, vector<64x32xbf16>, vector<128x32xf32> -> vector<128x32xf32>
    %c0_6 = arith.constant 0 : index
    %c0_7 = arith.constant 0 : index
    %c0_8 = arith.constant 0 : index
    %9 = vector.load %arg2[%c0_6, %c0_7, %c0_8] : memref<6x1x32xf32, #tpu.memory_space<vmem>>, vector<1x1x32xf32>
    %10 = vector.shape_cast %9 : vector<1x1x32xf32> to vector<1x32xf32>
    %11 = vector.broadcast %10 : vector<1x32xf32> to vector<128x32xf32>
    %12 = arith.addf %8, %11 : vector<128x32xf32>
    %13 = math.tanh %12 : vector<128x32xf32>
    %14 = arith.truncf %13 : vector<128x32xf32> to vector<128x32xbf16>
    %15 = arith.truncf %8 : vector<128x32xf32> to vector<128x32xbf16>
    %cst_9 = arith.constant dense<0.000000e+00> : vector<128x128xf32>
    %16 = tpu.matmul %14, %15, %cst_9 {dimension_numbers = #tpu.dot_dimension_numbers<[1], [1], [0], [0], [0, 0, 1, 0], [], []>} : vector<128x32xbf16>, vector<128x32xbf16>, vector<128x128xf32> -> vector<128x128xf32>
    %c0_10 = arith.constant 0 : index
    %c0_11 = arith.constant 0 : index
    %c0_12 = arith.constant 0 : index
    %17 = vector.load %arg3[%c0_10, %c0_11, %c0_12] : memref<6x1x128xi32, #tpu.memory_space<vmem>>, vector<1x1x128xi32>
    %18 = vector.shape_cast %17 : vector<1x1x128xi32> to vector<1x128xi32>
    %19 = vector.broadcast %18 : vector<1x128xi32> to vector<128x128xi32>
    %20 = arith.cmpi eq, %19, %2 : vector<128x128xi32>
    %21 = arith.extui %20 : vector<128x128xi1> to vector<128x128xi32>
    %22 = arith.sitofp %21 : vector<128x128xi32> to vector<128x128xf32>
    %23 = arith.truncf %22 : vector<128x128xf32> to vector<128x128xbf16>
    %c0_13 = arith.constant 0 : index
    %c0_14 = arith.constant 0 : index
    %c0_15 = arith.constant 0 : index
    %24 = vector.load %arg4[%c0_13, %c0_14, %c0_15] : memref<6x1x128xi32, #tpu.memory_space<vmem>>, vector<1x1x128xi32>
    %25 = vector.shape_cast %24 : vector<1x1x128xi32> to vector<1x128xi32>
    %26 = vector.broadcast %25 : vector<1x128xi32> to vector<128x128xi32>
    %27 = arith.cmpi eq, %26, %2 : vector<128x128xi32>
    %28 = arith.extui %27 : vector<128x128xi1> to vector<128x128xi32>
    %29 = arith.sitofp %28 : vector<128x128xi32> to vector<128x128xf32>
    %30 = arith.truncf %29 : vector<128x128xf32> to vector<128x128xbf16>
    %cst_16 = arith.constant dense<0.000000e+00> : vector<128x128xf32>
    %31 = tpu.matmul %23, %30, %cst_16 {dimension_numbers = #tpu.dot_dimension_numbers<[1], [1], [0], [0], [0, 0, 1, 0], [], []>} : vector<128x128xbf16>, vector<128x128xbf16>, vector<128x128xf32> -> vector<128x128xf32>
    %32 = arith.mulf %31, %16 : vector<128x128xf32>
    %33 = arith.addf %3, %32 : vector<128x128xf32>
    %34 = arith.addf %4, %31 : vector<128x128xf32>
    %c1 = arith.constant 1 : index
    %c0_17 = arith.constant 0 : index
    %c0_18 = arith.constant 0 : index
    %35 = vector.load %arg1[%c1, %c0_17, %c0_18] : memref<6x64x32xf32, #tpu.memory_space<vmem>>, vector<1x64x32xf32>
    %36 = vector.shape_cast %35 : vector<1x64x32xf32> to vector<64x32xf32>
    %37 = arith.truncf %36 : vector<64x32xf32> to vector<64x32xbf16>
    %cst_19 = arith.constant dense<0.000000e+00> : vector<128x32xf32>
    %38 = tpu.matmul %1, %37, %cst_19 {dimension_numbers = #tpu.dot_dimension_numbers<[1], [0], [0], [1], [0, 0, 1, 1], [], []>} : vector<128x64xbf16>, vector<64x32xbf16>, vector<128x32xf32> -> vector<128x32xf32>
    %c1_20 = arith.constant 1 : index
    %c0_21 = arith.constant 0 : index
    %c0_22 = arith.constant 0 : index
    %39 = vector.load %arg2[%c1_20, %c0_21, %c0_22] : memref<6x1x32xf32, #tpu.memory_space<vmem>>, vector<1x1x32xf32>
    %40 = vector.shape_cast %39 : vector<1x1x32xf32> to vector<1x32xf32>
    %41 = vector.broadcast %40 : vector<1x32xf32> to vector<128x32xf32>
    %42 = arith.addf %38, %41 : vector<128x32xf32>
    %43 = math.tanh %42 : vector<128x32xf32>
    %44 = arith.truncf %43 : vector<128x32xf32> to vector<128x32xbf16>
    %45 = arith.truncf %38 : vector<128x32xf32> to vector<128x32xbf16>
    %cst_23 = arith.constant dense<0.000000e+00> : vector<128x128xf32>
    %46 = tpu.matmul %44, %45, %cst_23 {dimension_numbers = #tpu.dot_dimension_numbers<[1], [1], [0], [0], [0, 0, 1, 0], [], []>} : vector<128x32xbf16>, vector<128x32xbf16>, vector<128x128xf32> -> vector<128x128xf32>
    %c1_24 = arith.constant 1 : index
    %c0_25 = arith.constant 0 : index
    %c0_26 = arith.constant 0 : index
    %47 = vector.load %arg3[%c1_24, %c0_25, %c0_26] : memref<6x1x128xi32, #tpu.memory_space<vmem>>, vector<1x1x128xi32>
    %48 = vector.shape_cast %47 : vector<1x1x128xi32> to vector<1x128xi32>
    %49 = vector.broadcast %48 : vector<1x128xi32> to vector<128x128xi32>
    %50 = arith.cmpi eq, %49, %2 : vector<128x128xi32>
    %51 = arith.extui %50 : vector<128x128xi1> to vector<128x128xi32>
    %52 = arith.sitofp %51 : vector<128x128xi32> to vector<128x128xf32>
    %53 = arith.truncf %52 : vector<128x128xf32> to vector<128x128xbf16>
    %c1_27 = arith.constant 1 : index
    %c0_28 = arith.constant 0 : index
    %c0_29 = arith.constant 0 : index
    %54 = vector.load %arg4[%c1_27, %c0_28, %c0_29] : memref<6x1x128xi32, #tpu.memory_space<vmem>>, vector<1x1x128xi32>
    %55 = vector.shape_cast %54 : vector<1x1x128xi32> to vector<1x128xi32>
    %56 = vector.broadcast %55 : vector<1x128xi32> to vector<128x128xi32>
    %57 = arith.cmpi eq, %56, %2 : vector<128x128xi32>
    %58 = arith.extui %57 : vector<128x128xi1> to vector<128x128xi32>
    %59 = arith.sitofp %58 : vector<128x128xi32> to vector<128x128xf32>
    %60 = arith.truncf %59 : vector<128x128xf32> to vector<128x128xbf16>
    %cst_30 = arith.constant dense<0.000000e+00> : vector<128x128xf32>
    %61 = tpu.matmul %53, %60, %cst_30 {dimension_numbers = #tpu.dot_dimension_numbers<[1], [1], [0], [0], [0, 0, 1, 0], [], []>} : vector<128x128xbf16>, vector<128x128xbf16>, vector<128x128xf32> -> vector<128x128xf32>
    %62 = arith.mulf %61, %46 : vector<128x128xf32>
    %63 = arith.addf %33, %62 : vector<128x128xf32>
    %64 = arith.addf %34, %61 : vector<128x128xf32>
    %c2 = arith.constant 2 : index
    %c0_31 = arith.constant 0 : index
    %c0_32 = arith.constant 0 : index
    %65 = vector.load %arg1[%c2, %c0_31, %c0_32] : memref<6x64x32xf32, #tpu.memory_space<vmem>>, vector<1x64x32xf32>
    %66 = vector.shape_cast %65 : vector<1x64x32xf32> to vector<64x32xf32>
    %67 = arith.truncf %66 : vector<64x32xf32> to vector<64x32xbf16>
    %cst_33 = arith.constant dense<0.000000e+00> : vector<128x32xf32>
    %68 = tpu.matmul %1, %67, %cst_33 {dimension_numbers = #tpu.dot_dimension_numbers<[1], [0], [0], [1], [0, 0, 1, 1], [], []>} : vector<128x64xbf16>, vector<64x32xbf16>, vector<128x32xf32> -> vector<128x32xf32>
    %c2_34 = arith.constant 2 : index
    %c0_35 = arith.constant 0 : index
    %c0_36 = arith.constant 0 : index
    %69 = vector.load %arg2[%c2_34, %c0_35, %c0_36] : memref<6x1x32xf32, #tpu.memory_space<vmem>>, vector<1x1x32xf32>
    %70 = vector.shape_cast %69 : vector<1x1x32xf32> to vector<1x32xf32>
    %71 = vector.broadcast %70 : vector<1x32xf32> to vector<128x32xf32>
    %72 = arith.addf %68, %71 : vector<128x32xf32>
    %73 = math.tanh %72 : vector<128x32xf32>
    %74 = arith.truncf %73 : vector<128x32xf32> to vector<128x32xbf16>
    %75 = arith.truncf %68 : vector<128x32xf32> to vector<128x32xbf16>
    %cst_37 = arith.constant dense<0.000000e+00> : vector<128x128xf32>
    %76 = tpu.matmul %74, %75, %cst_37 {dimension_numbers = #tpu.dot_dimension_numbers<[1], [1], [0], [0], [0, 0, 1, 0], [], []>} : vector<128x32xbf16>, vector<128x32xbf16>, vector<128x128xf32> -> vector<128x128xf32>
    %c2_38 = arith.constant 2 : index
    %c0_39 = arith.constant 0 : index
    %c0_40 = arith.constant 0 : index
    %77 = vector.load %arg3[%c2_38, %c0_39, %c0_40] : memref<6x1x128xi32, #tpu.memory_space<vmem>>, vector<1x1x128xi32>
    %78 = vector.shape_cast %77 : vector<1x1x128xi32> to vector<1x128xi32>
    %79 = vector.broadcast %78 : vector<1x128xi32> to vector<128x128xi32>
    %80 = arith.cmpi eq, %79, %2 : vector<128x128xi32>
    %81 = arith.extui %80 : vector<128x128xi1> to vector<128x128xi32>
    %82 = arith.sitofp %81 : vector<128x128xi32> to vector<128x128xf32>
    %83 = arith.truncf %82 : vector<128x128xf32> to vector<128x128xbf16>
    %c2_41 = arith.constant 2 : index
    %c0_42 = arith.constant 0 : index
    %c0_43 = arith.constant 0 : index
    %84 = vector.load %arg4[%c2_41, %c0_42, %c0_43] : memref<6x1x128xi32, #tpu.memory_space<vmem>>, vector<1x1x128xi32>
    %85 = vector.shape_cast %84 : vector<1x1x128xi32> to vector<1x128xi32>
    %86 = vector.broadcast %85 : vector<1x128xi32> to vector<128x128xi32>
    %87 = arith.cmpi eq, %86, %2 : vector<128x128xi32>
    %88 = arith.extui %87 : vector<128x128xi1> to vector<128x128xi32>
    %89 = arith.sitofp %88 : vector<128x128xi32> to vector<128x128xf32>
    %90 = arith.truncf %89 : vector<128x128xf32> to vector<128x128xbf16>
    %cst_44 = arith.constant dense<0.000000e+00> : vector<128x128xf32>
    %91 = tpu.matmul %83, %90, %cst_44 {dimension_numbers = #tpu.dot_dimension_numbers<[1], [1], [0], [0], [0, 0, 1, 0], [], []>} : vector<128x128xbf16>, vector<128x128xbf16>, vector<128x128xf32> -> vector<128x128xf32>
    %92 = arith.mulf %91, %76 : vector<128x128xf32>
    %93 = arith.addf %63, %92 : vector<128x128xf32>
    %94 = arith.addf %64, %91 : vector<128x128xf32>
    %c3 = arith.constant 3 : index
    %c0_45 = arith.constant 0 : index
    %c0_46 = arith.constant 0 : index
    %95 = vector.load %arg1[%c3, %c0_45, %c0_46] : memref<6x64x32xf32, #tpu.memory_space<vmem>>, vector<1x64x32xf32>
    %96 = vector.shape_cast %95 : vector<1x64x32xf32> to vector<64x32xf32>
    %97 = arith.truncf %96 : vector<64x32xf32> to vector<64x32xbf16>
    %cst_47 = arith.constant dense<0.000000e+00> : vector<128x32xf32>
    %98 = tpu.matmul %1, %97, %cst_47 {dimension_numbers = #tpu.dot_dimension_numbers<[1], [0], [0], [1], [0, 0, 1, 1], [], []>} : vector<128x64xbf16>, vector<64x32xbf16>, vector<128x32xf32> -> vector<128x32xf32>
    %c3_48 = arith.constant 3 : index
    %c0_49 = arith.constant 0 : index
    %c0_50 = arith.constant 0 : index
    %99 = vector.load %arg2[%c3_48, %c0_49, %c0_50] : memref<6x1x32xf32, #tpu.memory_space<vmem>>, vector<1x1x32xf32>
    %100 = vector.shape_cast %99 : vector<1x1x32xf32> to vector<1x32xf32>
    %101 = vector.broadcast %100 : vector<1x32xf32> to vector<128x32xf32>
    %102 = arith.addf %98, %101 : vector<128x32xf32>
    %103 = math.tanh %102 : vector<128x32xf32>
    %104 = arith.truncf %103 : vector<128x32xf32> to vector<128x32xbf16>
    %105 = arith.truncf %98 : vector<128x32xf32> to vector<128x32xbf16>
    %cst_51 = arith.constant dense<0.000000e+00> : vector<128x128xf32>
    %106 = tpu.matmul %104, %105, %cst_51 {dimension_numbers = #tpu.dot_dimension_numbers<[1], [1], [0], [0], [0, 0, 1, 0], [], []>} : vector<128x32xbf16>, vector<128x32xbf16>, vector<128x128xf32> -> vector<128x128xf32>
    %c3_52 = arith.constant 3 : index
    %c0_53 = arith.constant 0 : index
    %c0_54 = arith.constant 0 : index
    %107 = vector.load %arg3[%c3_52, %c0_53, %c0_54] : memref<6x1x128xi32, #tpu.memory_space<vmem>>, vector<1x1x128xi32>
    %108 = vector.shape_cast %107 : vector<1x1x128xi32> to vector<1x128xi32>
    %109 = vector.broadcast %108 : vector<1x128xi32> to vector<128x128xi32>
    %110 = arith.cmpi eq, %109, %2 : vector<128x128xi32>
    %111 = arith.extui %110 : vector<128x128xi1> to vector<128x128xi32>
    %112 = arith.sitofp %111 : vector<128x128xi32> to vector<128x128xf32>
    %113 = arith.truncf %112 : vector<128x128xf32> to vector<128x128xbf16>
    %c3_55 = arith.constant 3 : index
    %c0_56 = arith.constant 0 : index
    %c0_57 = arith.constant 0 : index
    %114 = vector.load %arg4[%c3_55, %c0_56, %c0_57] : memref<6x1x128xi32, #tpu.memory_space<vmem>>, vector<1x1x128xi32>
    %115 = vector.shape_cast %114 : vector<1x1x128xi32> to vector<1x128xi32>
    %116 = vector.broadcast %115 : vector<1x128xi32> to vector<128x128xi32>
    %117 = arith.cmpi eq, %116, %2 : vector<128x128xi32>
    %118 = arith.extui %117 : vector<128x128xi1> to vector<128x128xi32>
    %119 = arith.sitofp %118 : vector<128x128xi32> to vector<128x128xf32>
    %120 = arith.truncf %119 : vector<128x128xf32> to vector<128x128xbf16>
    %cst_58 = arith.constant dense<0.000000e+00> : vector<128x128xf32>
    %121 = tpu.matmul %113, %120, %cst_58 {dimension_numbers = #tpu.dot_dimension_numbers<[1], [1], [0], [0], [0, 0, 1, 0], [], []>} : vector<128x128xbf16>, vector<128x128xbf16>, vector<128x128xf32> -> vector<128x128xf32>
    %122 = arith.mulf %121, %106 : vector<128x128xf32>
    %123 = arith.addf %93, %122 : vector<128x128xf32>
    %124 = arith.addf %94, %121 : vector<128x128xf32>
    %c4 = arith.constant 4 : index
    %c0_59 = arith.constant 0 : index
    %c0_60 = arith.constant 0 : index
    %125 = vector.load %arg1[%c4, %c0_59, %c0_60] : memref<6x64x32xf32, #tpu.memory_space<vmem>>, vector<1x64x32xf32>
    %126 = vector.shape_cast %125 : vector<1x64x32xf32> to vector<64x32xf32>
    %127 = arith.truncf %126 : vector<64x32xf32> to vector<64x32xbf16>
    %cst_61 = arith.constant dense<0.000000e+00> : vector<128x32xf32>
    %128 = tpu.matmul %1, %127, %cst_61 {dimension_numbers = #tpu.dot_dimension_numbers<[1], [0], [0], [1], [0, 0, 1, 1], [], []>} : vector<128x64xbf16>, vector<64x32xbf16>, vector<128x32xf32> -> vector<128x32xf32>
    %c4_62 = arith.constant 4 : index
    %c0_63 = arith.constant 0 : index
    %c0_64 = arith.constant 0 : index
    %129 = vector.load %arg2[%c4_62, %c0_63, %c0_64] : memref<6x1x32xf32, #tpu.memory_space<vmem>>, vector<1x1x32xf32>
    %130 = vector.shape_cast %129 : vector<1x1x32xf32> to vector<1x32xf32>
    %131 = vector.broadcast %130 : vector<1x32xf32> to vector<128x32xf32>
    %132 = arith.addf %128, %131 : vector<128x32xf32>
    %133 = math.tanh %132 : vector<128x32xf32>
    %134 = arith.truncf %133 : vector<128x32xf32> to vector<128x32xbf16>
    %135 = arith.truncf %128 : vector<128x32xf32> to vector<128x32xbf16>
    %cst_65 = arith.constant dense<0.000000e+00> : vector<128x128xf32>
    %136 = tpu.matmul %134, %135, %cst_65 {dimension_numbers = #tpu.dot_dimension_numbers<[1], [1], [0], [0], [0, 0, 1, 0], [], []>} : vector<128x32xbf16>, vector<128x32xbf16>, vector<128x128xf32> -> vector<128x128xf32>
    %c4_66 = arith.constant 4 : index
    %c0_67 = arith.constant 0 : index
    %c0_68 = arith.constant 0 : index
    %137 = vector.load %arg3[%c4_66, %c0_67, %c0_68] : memref<6x1x128xi32, #tpu.memory_space<vmem>>, vector<1x1x128xi32>
    %138 = vector.shape_cast %137 : vector<1x1x128xi32> to vector<1x128xi32>
    %139 = vector.broadcast %138 : vector<1x128xi32> to vector<128x128xi32>
    %140 = arith.cmpi eq, %139, %2 : vector<128x128xi32>
    %141 = arith.extui %140 : vector<128x128xi1> to vector<128x128xi32>
    %142 = arith.sitofp %141 : vector<128x128xi32> to vector<128x128xf32>
    %143 = arith.truncf %142 : vector<128x128xf32> to vector<128x128xbf16>
    %c4_69 = arith.constant 4 : index
    %c0_70 = arith.constant 0 : index
    %c0_71 = arith.constant 0 : index
    %144 = vector.load %arg4[%c4_69, %c0_70, %c0_71] : memref<6x1x128xi32, #tpu.memory_space<vmem>>, vector<1x1x128xi32>
    %145 = vector.shape_cast %144 : vector<1x1x128xi32> to vector<1x128xi32>
    %146 = vector.broadcast %145 : vector<1x128xi32> to vector<128x128xi32>
    %147 = arith.cmpi eq, %146, %2 : vector<128x128xi32>
    %148 = arith.extui %147 : vector<128x128xi1> to vector<128x128xi32>
    %149 = arith.sitofp %148 : vector<128x128xi32> to vector<128x128xf32>
    %150 = arith.truncf %149 : vector<128x128xf32> to vector<128x128xbf16>
    %cst_72 = arith.constant dense<0.000000e+00> : vector<128x128xf32>
    %151 = tpu.matmul %143, %150, %cst_72 {dimension_numbers = #tpu.dot_dimension_numbers<[1], [1], [0], [0], [0, 0, 1, 0], [], []>} : vector<128x128xbf16>, vector<128x128xbf16>, vector<128x128xf32> -> vector<128x128xf32>
    %152 = arith.mulf %151, %136 : vector<128x128xf32>
    %153 = arith.addf %123, %152 : vector<128x128xf32>
    %154 = arith.addf %124, %151 : vector<128x128xf32>
    %c5 = arith.constant 5 : index
    %c0_73 = arith.constant 0 : index
    %c0_74 = arith.constant 0 : index
    %155 = vector.load %arg1[%c5, %c0_73, %c0_74] : memref<6x64x32xf32, #tpu.memory_space<vmem>>, vector<1x64x32xf32>
    %156 = vector.shape_cast %155 : vector<1x64x32xf32> to vector<64x32xf32>
    %157 = arith.truncf %156 : vector<64x32xf32> to vector<64x32xbf16>
    %cst_75 = arith.constant dense<0.000000e+00> : vector<128x32xf32>
    %158 = tpu.matmul %1, %157, %cst_75 {dimension_numbers = #tpu.dot_dimension_numbers<[1], [0], [0], [1], [0, 0, 1, 1], [], []>} : vector<128x64xbf16>, vector<64x32xbf16>, vector<128x32xf32> -> vector<128x32xf32>
    %c5_76 = arith.constant 5 : index
    %c0_77 = arith.constant 0 : index
    %c0_78 = arith.constant 0 : index
    %159 = vector.load %arg2[%c5_76, %c0_77, %c0_78] : memref<6x1x32xf32, #tpu.memory_space<vmem>>, vector<1x1x32xf32>
    %160 = vector.shape_cast %159 : vector<1x1x32xf32> to vector<1x32xf32>
    %161 = vector.broadcast %160 : vector<1x32xf32> to vector<128x32xf32>
    %162 = arith.addf %158, %161 : vector<128x32xf32>
    %163 = math.tanh %162 : vector<128x32xf32>
    %164 = arith.truncf %163 : vector<128x32xf32> to vector<128x32xbf16>
    %165 = arith.truncf %158 : vector<128x32xf32> to vector<128x32xbf16>
    %cst_79 = arith.constant dense<0.000000e+00> : vector<128x128xf32>
    %166 = tpu.matmul %164, %165, %cst_79 {dimension_numbers = #tpu.dot_dimension_numbers<[1], [1], [0], [0], [0, 0, 1, 0], [], []>} : vector<128x32xbf16>, vector<128x32xbf16>, vector<128x128xf32> -> vector<128x128xf32>
    %c5_80 = arith.constant 5 : index
    %c0_81 = arith.constant 0 : index
    %c0_82 = arith.constant 0 : index
    %167 = vector.load %arg3[%c5_80, %c0_81, %c0_82] : memref<6x1x128xi32, #tpu.memory_space<vmem>>, vector<1x1x128xi32>
    %168 = vector.shape_cast %167 : vector<1x1x128xi32> to vector<1x128xi32>
    %169 = vector.broadcast %168 : vector<1x128xi32> to vector<128x128xi32>
    %170 = arith.cmpi eq, %169, %2 : vector<128x128xi32>
    %171 = arith.extui %170 : vector<128x128xi1> to vector<128x128xi32>
    %172 = arith.sitofp %171 : vector<128x128xi32> to vector<128x128xf32>
    %173 = arith.truncf %172 : vector<128x128xf32> to vector<128x128xbf16>
    %c5_83 = arith.constant 5 : index
    %c0_84 = arith.constant 0 : index
    %c0_85 = arith.constant 0 : index
    %174 = vector.load %arg4[%c5_83, %c0_84, %c0_85] : memref<6x1x128xi32, #tpu.memory_space<vmem>>, vector<1x1x128xi32>
    %175 = vector.shape_cast %174 : vector<1x1x128xi32> to vector<1x128xi32>
    %176 = vector.broadcast %175 : vector<1x128xi32> to vector<128x128xi32>
    %177 = arith.cmpi eq, %176, %2 : vector<128x128xi32>
    %178 = arith.extui %177 : vector<128x128xi1> to vector<128x128xi32>
    %179 = arith.sitofp %178 : vector<128x128xi32> to vector<128x128xf32>
    %180 = arith.truncf %179 : vector<128x128xf32> to vector<128x128xbf16>
    %cst_86 = arith.constant dense<0.000000e+00> : vector<128x128xf32>
    %181 = tpu.matmul %173, %180, %cst_86 {dimension_numbers = #tpu.dot_dimension_numbers<[1], [1], [0], [0], [0, 0, 1, 0], [], []>} : vector<128x128xbf16>, vector<128x128xbf16>, vector<128x128xf32> -> vector<128x128xf32>
    %182 = arith.mulf %181, %166 : vector<128x128xf32>
    %183 = arith.addf %153, %182 : vector<128x128xf32>
    %184 = arith.addf %154, %181 : vector<128x128xf32>
    %cst_87 = arith.constant 0.000000e+00 : f32
    %185 = vector.broadcast %cst_87 : f32 to vector<128x128xf32>
    %186 = arith.cmpf ogt, %184, %185 : vector<128x128xf32>
    %cst_88 = arith.constant -1.000000e+30 : f32
    %187 = vector.broadcast %cst_88 : f32 to vector<128x128xf32>
    %188 = arith.select %186, %183, %187 : vector<128x128xi1>, vector<128x128xf32>
    %cst_89 = arith.constant dense<0xFF800000> : vector<128xf32>
    %189 = vector.multi_reduction <maximumf>, %188, %cst_89 [1] : vector<128x128xf32> to vector<128xf32>
    %190 = vector.shape_cast %189 : vector<128xf32> to vector<128x1xf32>
    %191 = vector.broadcast %190 : vector<128x1xf32> to vector<128x128xf32>
    %192 = arith.subf %183, %191 : vector<128x128xf32>
    %cst_90 = arith.constant 8.000000e+01 : f32
    %193 = vector.broadcast %cst_90 : f32 to vector<128x128xf32>
    %194 = arith.minimumf %192, %193 : vector<128x128xf32>
    %195 = math.exp %194 : vector<128x128xf32>
    %cst_91 = arith.constant 0.000000e+00 : f32
    %196 = vector.broadcast %cst_91 : f32 to vector<128x128xf32>
    %197 = arith.select %186, %195, %196 : vector<128x128xi1>, vector<128x128xf32>
    %cst_92 = arith.constant dense<0.000000e+00> : vector<128xf32>
    %198 = vector.multi_reduction <add>, %197, %cst_92 [1] : vector<128x128xf32> to vector<128xf32>
    %199 = vector.shape_cast %198 : vector<128xf32> to vector<128x1xf32>
    %cst_93 = arith.constant 9.99999996E-13 : f32
    %200 = vector.broadcast %cst_93 : f32 to vector<128x1xf32>
    %201 = arith.maximumf %199, %200 : vector<128x1xf32>
    %202 = tpu.reciprocal %201 {approx = true} : vector<128x1xf32> -> vector<128x1xf32>
    %203 = vector.broadcast %202 : vector<128x1xf32> to vector<128x128xf32>
    %204 = arith.mulf %197, %203 : vector<128x128xf32>
    %205 = arith.truncf %204 : vector<128x128xf32> to vector<128x128xbf16>
    %c0_94 = arith.constant 0 : index
    %c0_95 = arith.constant 0 : index
    %206 = vector.load %arg5[%c0_94, %c0_95] : memref<64x64xf32, #tpu.memory_space<vmem>>, vector<64x64xf32>
    %207 = arith.truncf %206 : vector<64x64xf32> to vector<64x64xbf16>
    %c0_96 = arith.constant 0 : index
    %c0_97 = arith.constant 0 : index
    %208 = vector.load %arg6[%c0_96, %c0_97] : memref<64x64xf32, #tpu.memory_space<vmem>>, vector<64x64xf32>
    %209 = arith.truncf %208 : vector<64x64xf32> to vector<64x64xbf16>
    %210 = arith.truncf %0 : vector<128x64xf32> to vector<128x64xbf16>
    %cst_98 = arith.constant dense<0.000000e+00> : vector<128x64xf32>
    %211 = tpu.matmul %205, %210, %cst_98 {dimension_numbers = #tpu.dot_dimension_numbers<[1], [0], [0], [1], [0, 0, 1, 1], [], []>} : vector<128x128xbf16>, vector<128x64xbf16>, vector<128x64xf32> -> vector<128x64xf32>
    %212 = arith.addf %211, %0 : vector<128x64xf32>
    %213 = arith.truncf %212 : vector<128x64xf32> to vector<128x64xbf16>
    %cst_99 = arith.constant dense<0.000000e+00> : vector<128x64xf32>
    %214 = tpu.matmul %213, %207, %cst_99 {dimension_numbers = #tpu.dot_dimension_numbers<[1], [0], [0], [1], [0, 0, 1, 1], [], []>} : vector<128x64xbf16>, vector<64x64xbf16>, vector<128x64xf32> -> vector<128x64xf32>
    %cst_100 = arith.constant 0.000000e+00 : f32
    %215 = vector.broadcast %cst_100 : f32 to vector<128x64xf32>
    %216 = arith.cmpf ogt, %214, %215 : vector<128x64xf32>
    %cst_101 = arith.constant 2.000000e-01 : f32
    %217 = vector.broadcast %cst_101 : f32 to vector<128x64xf32>
    %218 = arith.mulf %217, %214 : vector<128x64xf32>
    %219 = arith.select %216, %214, %218 : vector<128x64xi1>, vector<128x64xf32>
    %220 = arith.mulf %211, %0 : vector<128x64xf32>
    %221 = arith.truncf %220 : vector<128x64xf32> to vector<128x64xbf16>
    %cst_102 = arith.constant dense<0.000000e+00> : vector<128x64xf32>
    %222 = tpu.matmul %221, %209, %cst_102 {dimension_numbers = #tpu.dot_dimension_numbers<[1], [0], [0], [1], [0, 0, 1, 1], [], []>} : vector<128x64xbf16>, vector<64x64xbf16>, vector<128x64xf32> -> vector<128x64xf32>
    %cst_103 = arith.constant 0.000000e+00 : f32
    %223 = vector.broadcast %cst_103 : f32 to vector<128x64xf32>
    %224 = arith.cmpf ogt, %222, %223 : vector<128x64xf32>
    %cst_104 = arith.constant 2.000000e-01 : f32
    %225 = vector.broadcast %cst_104 : f32 to vector<128x64xf32>
    %226 = arith.mulf %225, %222 : vector<128x64xf32>
    %227 = arith.select %224, %222, %226 : vector<128x64xi1>, vector<128x64xf32>
    %228 = arith.addf %219, %227 : vector<128x64xf32>
    %229 = arith.mulf %228, %228 : vector<128x64xf32>
    %cst_105 = arith.constant dense<0.000000e+00> : vector<128xf32>
    %230 = vector.multi_reduction <add>, %229, %cst_105 [1] : vector<128x64xf32> to vector<128xf32>
    %231 = vector.shape_cast %230 : vector<128xf32> to vector<128x1xf32>
    %cst_106 = arith.constant 1.000000e-24 : f32
    %232 = vector.broadcast %cst_106 : f32 to vector<128x1xf32>
    %233 = arith.maximumf %231, %232 : vector<128x1xf32>
    %234 = math.rsqrt %233 : vector<128x1xf32>
    %235 = vector.broadcast %234 : vector<128x1xf32> to vector<128x64xf32>
    %236 = arith.mulf %228, %235 : vector<128x64xf32>
    %c0_107 = arith.constant 0 : index
    %c0_108 = arith.constant 0 : index
    %237 = vector.load %arg9[%c0_107, %c0_108] : memref<128x64xf32, #tpu.memory_space<vmem>>, vector<128x64xf32>
    tpu.vector_store %arg9[%c0_107, %c0_108], %236 {strides = array<i32>} : memref<128x64xf32, #tpu.memory_space<vmem>>, vector<128x64xf32>,
    %c0_109 = arith.constant 0 : index
    %c0_110 = arith.constant 0 : index
    %238 = vector.load %arg7[%c0_109, %c0_110] : memref<64x32xf32, #tpu.memory_space<vmem>>, vector<64x32xf32>
    %239 = arith.truncf %238 : vector<64x32xf32> to vector<64x32xbf16>
    %c0_111 = arith.constant 0 : index
    %c0_112 = arith.constant 0 : index
    %240 = vector.load %arg8[%c0_111, %c0_112] : memref<64x32xf32, #tpu.memory_space<vmem>>, vector<64x32xf32>
    %241 = arith.truncf %240 : vector<64x32xf32> to vector<64x32xbf16>
    %242 = arith.truncf %228 : vector<128x64xf32> to vector<128x64xbf16>
    %cst_113 = arith.constant dense<0.000000e+00> : vector<128x64xf32>
    %243 = tpu.matmul %205, %242, %cst_113 {dimension_numbers = #tpu.dot_dimension_numbers<[1], [0], [0], [1], [0, 0, 1, 1], [], []>} : vector<128x128xbf16>, vector<128x64xbf16>, vector<128x64xf32> -> vector<128x64xf32>
    %244 = arith.addf %243, %228 : vector<128x64xf32>
    %245 = arith.truncf %244 : vector<128x64xf32> to vector<128x64xbf16>
    %cst_114 = arith.constant dense<0.000000e+00> : vector<128x32xf32>
    %246 = tpu.matmul %245, %239, %cst_114 {dimension_numbers = #tpu.dot_dimension_numbers<[1], [0], [0], [1], [0, 0, 1, 1], [], []>} : vector<128x64xbf16>, vector<64x32xbf16>, vector<128x32xf32> -> vector<128x32xf32>
    %cst_115 = arith.constant 0.000000e+00 : f32
    %247 = vector.broadcast %cst_115 : f32 to vector<128x32xf32>
    %248 = arith.cmpf ogt, %246, %247 : vector<128x32xf32>
    %cst_116 = arith.constant 2.000000e-01 : f32
    %249 = vector.broadcast %cst_116 : f32 to vector<128x32xf32>
    %250 = arith.mulf %249, %246 : vector<128x32xf32>
    %251 = arith.select %248, %246, %250 : vector<128x32xi1>, vector<128x32xf32>
    %252 = arith.mulf %243, %228 : vector<128x64xf32>
    %253 = arith.truncf %252 : vector<128x64xf32> to vector<128x64xbf16>
    %cst_117 = arith.constant dense<0.000000e+00> : vector<128x32xf32>
    %254 = tpu.matmul %253, %241, %cst_117 {dimension_numbers = #tpu.dot_dimension_numbers<[1], [0], [0], [1], [0, 0, 1, 1], [], []>} : vector<128x64xbf16>, vector<64x32xbf16>, vector<128x32xf32> -> vector<128x32xf32>
    %cst_118 = arith.constant 0.000000e+00 : f32
    %255 = vector.broadcast %cst_118 : f32 to vector<128x32xf32>
    %256 = arith.cmpf ogt, %254, %255 : vector<128x32xf32>
    %cst_119 = arith.constant 2.000000e-01 : f32
    %257 = vector.broadcast %cst_119 : f32 to vector<128x32xf32>
    %258 = arith.mulf %257, %254 : vector<128x32xf32>
    %259 = arith.select %256, %254, %258 : vector<128x32xi1>, vector<128x32xf32>
    %260 = arith.addf %251, %259 : vector<128x32xf32>
    %261 = arith.mulf %260, %260 : vector<128x32xf32>
    %cst_120 = arith.constant dense<0.000000e+00> : vector<128xf32>
    %262 = vector.multi_reduction <add>, %261, %cst_120 [1] : vector<128x32xf32> to vector<128xf32>
    %263 = vector.shape_cast %262 : vector<128xf32> to vector<128x1xf32>
    %cst_121 = arith.constant 1.000000e-24 : f32
    %264 = vector.broadcast %cst_121 : f32 to vector<128x1xf32>
    %265 = arith.maximumf %263, %264 : vector<128x1xf32>
    %266 = math.rsqrt %265 : vector<128x1xf32>
    %267 = vector.broadcast %266 : vector<128x1xf32> to vector<128x32xf32>
    %268 = arith.mulf %260, %267 : vector<128x32xf32>
    %c0_122 = arith.constant 0 : index
    %c0_123 = arith.constant 0 : index
    %269 = vector.load %arg10[%c0_122, %c0_123] : memref<128x32xf32, #tpu.memory_space<vmem>>, vector<128x32xf32>
    tpu.vector_store %arg10[%c0_122, %c0_123], %268 {strides = array<i32>} : memref<128x32xf32, #tpu.memory_space<vmem>>, vector<128x32xf32>,
    return
  }
}

</mosaic_0001>

<bundles_post_ra>
// kernel: kgat_forward.1
= control target key start
LH: loop header
LB: loop body
LE: loop exit
PB: predicated region body
PF: predicated region fallthrough
CT: control target
= control target key end

     0   :  { %vm10299_vm0 = vcmask 523264   ;;  %v59_v36 = vlaneseq  ;;  %v10260_v40 = vmov 1.0|1.0   ;;  %s10249_s1 = inlined_call_operand.vmem [shape: f32[6,64,32], index: 1, kind: input, shape index: {}]   ;;  %s10250_s0 = inlined_call_operand.vmem [shape: f32[128,64], index: 0, kind: input, shape index: {}]   ;;  %s10251_s4 = inlined_call_operand.vmem [shape: s32[6,1,128], index: 4, kind: input, shape index: {}]   ;;  %s10252_s3 = inlined_call_operand.vmem [shape: s32[6,1,128], index: 3, kind: input, shape index: {}]   ;;  %s10253_s2 = inlined_call_operand.vmem [shape: f32[6,1,32], index: 2, kind: input, shape index: {}]   ;;  %s10254_s5 = inlined_call_operand.vmem [shape: f32[64,64], index: 5, kind: input, shape index: {}]   ;;  %s10255_s6 = inlined_call_operand.vmem [shape: f32[64,64], index: 6, kind: input, shape index: {}]   ;;  %s10256_s7 = inlined_call_operand.vmem [shape: f32[64,32], index: 7, kind: input, shape index: {}]   ;;  %s10257_s8 = inlined_call_operand.vmem [shape: f32[64,32], index: 8, kind: input, shape index: {}]   ;;  %s10258_s9 = inlined_call_operand.vmem [shape: f32[128,64], index: 9, kind: output, shape index: {0}]   ;;  %s10259_s10 = inlined_call_operand.vmem [shape: f32[128,32], index: 10, kind: output, shape index: {1}]  }
   0x1   :  { %v76_v0 = vld [vmem:[%s10249_s1] sm:$0xff]  ;;  %v77_v1 = vld [vmem:[%s10249_s1 + $0x8] sm:$0xff]  ;;  %v78_v2 = vld [vmem:[%s10249_s1 + $0x10] sm:$0xff] }
   0x2   :  { %v84_v3 = vpack.c.bf16 %v77_v1, %v76_v0  ;;  %v79_v4 = vld [vmem:[%s10249_s1 + $0x18] sm:$0xff]  ;;  %v80_v6 = vld [vmem:[%s10249_s1 + $0x20] sm:$0xff]  ;;  %v81_v7 = vld [vmem:[%s10249_s1 + $0x28] sm:$0xff]  ;;  %v7298_v37 = vshrl.u32 %v59_v36, 7 }
   0x3   :  { %v85_v5 = vpack.c.bf16 %v79_v4, %v78_v2  ;;  %v35_v8 = vld [vmem:[%s10250_s0] sm:$0xff]  ;;  %v36_v9 = vld [vmem:[%s10250_s0 + $0x8] sm:$0xff]  ;;  %v86_v11 = vpack.c.bf16 %v81_v7, %v80_v6  ;;  %v82_v12 = vld [vmem:[%s10249_s1 + $0x30] sm:$0xff] }
   0x4   :  { %6057 = vmatprep.subr.bf16.mxu0 %v84_v3  ;;  %v7218_v10 = vpack.c.bf16 %v36_v9, %v35_v8  ;;  %v83_v13 = vld [vmem:[%s10249_s1 + $0x38] sm:$0xff]  ;;  %v37_v15 = vld [vmem:[%s10250_s0 + $0x10] sm:$0xff]  ;;  %v39_v17 = vld [vmem:[%s10250_s0 + $0x20] sm:$0xff]  ;;  %v7301_v38 = vadd.s32 8, %v7298_v37  ;;  %v7311_v41 = vadd.s32 16, %v7298_v37  ;;  %v7314_v42 = vadd.s32 24, %v7298_v37 }
   0x5   :  { %6058 = vmatpush3.bf16.msra.mxu0 %v84_v3  ;;  %v87_v14 = vpack.c.bf16 %v83_v13, %v82_v12  ;;  %v38_v16 = vld [vmem:[%s10250_s0 + $0x18] sm:$0xff]  ;;  %v40_v18 = vld [vmem:[%s10250_s0 + $0x28] sm:$0xff]  ;;  %v41_v21 = vld [vmem:[%s10250_s0 + $0x30] sm:$0xff]  ;;  %v7321_v43 = vadd.s32 32, %v7298_v37  ;;  %v7324_v44 = vadd.s32 40, %v7298_v37  ;;  %v7331_v45 = vadd.s32 48, %v7298_v37 }
   0x6   :  { %6059 = vmatprep.subr.bf16.mxu0 %v85_v5  ;;  %6065 = vmatprep.mubr.msk.bf16.mxu0 %vm10299_vm0, %v7218_v10  ;;  %v7240_v19 = vpack.c.bf16 %v38_v16, %v37_v15  ;;  %v7242_v20 = vpack.c.bf16 %v40_v18, %v39_v17  ;;  %v42_v22 = vld [vmem:[%s10250_s0 + $0x38] sm:$0xff]  ;;  %v43_v23 = vld [vmem:[%s10250_s0 + $0x40] sm:$0xff]  ;;  %v44_v24 = vld [vmem:[%s10250_s0 + $0x48] sm:$0xff]  ;;  %v7334_v46 = vadd.s32 56, %v7298_v37  ;;  %v7341_v47 = vadd.s32 64, %v7298_v37 }
   0x7   :  { %v7260_v25 = vpack.c.bf16 %v42_v22, %v41_v21  ;;  %v7262_v26 = vpack.c.bf16 %v44_v24, %v43_v23  ;;  %v45_v27 = vld [vmem:[%s10250_s0 + $0x50] sm:$0xff]  ;;  %v46_v28 = vld [vmem:[%s10250_s0 + $0x58] sm:$0xff]  ;;  %v47_v29 = vld [vmem:[%s10250_s0 + $0x60] sm:$0xff]  ;;  %v7344_v48 = vadd.s32 72, %v7298_v37  ;;  %v7351_v49 = vadd.s32 80, %v7298_v37 }
   0x8   :  { %v48_v30 = vld [vmem:[%s10250_s0 + $0x68] sm:$0xff]  ;;  %v7280_v31 = vpack.c.bf16 %v46_v28, %v45_v27  ;;  %v49_v33 = vld [vmem:[%s10250_s0 + $0x70] sm:$0xff]  ;;  %v50_v34 = vld [vmem:[%s10250_s0 + $0x78] sm:$0xff]  ;;  %10302 = vst [vmem:[#allocation4_spill] sm:$0xff] %v7341_v47  ;;  %v7354_v50 = vadd.s32 88, %v7298_v37  ;;  %v7361_v51 = vadd.s32 96, %v7298_v37 }
   0x9   :  { %6060 = vmatpush3.bf16.msra.mxu0 %v85_v5  ;;  %v7282_v32 = vpack.c.bf16 %v48_v30, %v47_v29  ;;  %v7294_v35 = vpack.c.bf16 %v50_v34, %v49_v33  ;;  %v5162_v39 = vld [vmem:[%s10251_s4] ss:$0 sm:$0xff]  ;;  %10303 = vst [vmem:[#allocation5_spill] sm:$0xff] %v7344_v48  ;;  %10304 = vst [vmem:[#allocation6_spill] sm:$0xff] %v7351_v49  ;;  %v7364_v52 = vadd.s32 104, %v7298_v37  ;;  %v7371_v53 = vadd.s32 112, %v7298_v37 }
   0xa   :  { %6061 = vmatprep.subr.bf16.mxu0 %v86_v11  ;;  %vm477_vm1 = vcmp.eq.s32.totalorder %v5162_v39, %v7298_v37  ;;  %vm478_vm2 = vcmp.eq.s32.totalorder %v5162_v39, %v7301_v38  ;;  %vm479_vm4 = vcmp.eq.s32.totalorder %v5162_v39, %v7311_v41  ;;  %vm480_vm5 = vcmp.eq.s32.totalorder %v5162_v39, %v7314_v42  ;;  %v5145_v55 = vld [vmem:[%s10252_s3] ss:$0 sm:$0xff] }
   0xb   :  { %10300 = vst [vmem:[#allocation2_spill] sm:$0xff] %v7282_v32  ;;  %10301 = vst [vmem:[#allocation3_spill] sm:$0xff] %v7294_v35  ;;  %vm481_vm7 = vcmp.eq.s32.totalorder %v5162_v39, %v7321_v43  ;;  %vm482_vm8 = vcmp.eq.s32.totalorder %v5162_v39, %v7324_v44  ;;  %vm483_vm10 = vcmp.eq.s32.totalorder %v5162_v39, %v7331_v45  ;;  %v7374_v54 = vadd.s32 120, %v7298_v37  ;;  %v7410_v56 = vld [vmem:[%s10253_s2] ss:$0 sm:$0xff] }
   0xc   :  { %vm5179_vm3 = vmpackc.low %vm478_vm2, %vm477_vm1  ;;  %vm484_vm11 = vcmp.eq.s32.totalorder %v5162_v39, %v7334_v46  ;;  %vm485_vm13 = vcmp.eq.s32.totalorder %v5162_v39, %v7341_v47  ;;  %vm486_vm14 = vcmp.eq.s32.totalorder %v5162_v39, %v7344_v48  ;;  %10305 = vst [vmem:[#allocation7_spill] sm:$0xff] %v7354_v50  ;;  %vm487_vm1 = vcmp.eq.s32.totalorder %v5162_v39, %v7351_v49 }
   0xd   :  { %6062 = vmatpush3.bf16.msra.mxu0 %v86_v11  ;;  %vm5181_vm6 = vmpackc.low %vm480_vm5, %vm479_vm4  ;;  %vm488_vm2 = vcmp.eq.s32.totalorder %v5162_v39, %v7354_v50  ;;  %10306 = vst [vmem:[#allocation8_spill] sm:$0xff] %v7361_v51  ;;  %vm489_vm4 = vcmp.eq.s32.totalorder %v5162_v39, %v7361_v51  ;;  %vm490_vm5 = vcmp.eq.s32.totalorder %v5162_v39, %v7364_v52 }
   0xe   :  { %6063 = vmatprep.subr.bf16.mxu0 %v87_v14  ;;  %vm5183_vm9 = vmpackc.low %vm482_vm8, %vm481_vm7  ;;  %10307 = vst [vmem:[#allocation9_spill] sm:$0xff] %v7364_v52  ;;  %vm491_vm7 = vcmp.eq.s32.totalorder %v5162_v39, %v7371_v53  ;;  %vm492_vm8 = vcmp.eq.s32.totalorder %v5162_v39, %v7374_v54 }
   0xf   :  { %vm5185_vm12 = vmpackc.low %vm484_vm11, %vm483_vm10  ;;  %10308 = vst [vmem:[#allocation10_spill] sm:$0xff] %v7371_v53  ;;  %vm416_vm10 = vcmp.eq.s32.totalorder %v5145_v55, %v7298_v37  ;;  %vm417_vm11 = vcmp.eq.s32.totalorder %v5145_v55, %v7301_v38 }
  0x10   :  { %vm5187_vm15 = vmpackc.low %vm486_vm14, %vm485_vm13  ;;  %10309 = vst [vmem:[#allocation11_spill] sm:$0xff] %v7374_v54  ;;  %vm418_vm13 = vcmp.eq.s32.totalorder %v5145_v55, %v7311_v41  ;;  %vm419_vm14 = vcmp.eq.s32.totalorder %v5145_v55, %v7314_v42 }
  0x11   :  { %6064 = vmatpush3.bf16.msra.mxu0 %v87_v14 }
  0x12   :  { %6113 = vmatprep.subr.msk.bf16.mxu0 %vm5179_vm3, %v10260_v40 }
  0x14   :  { %6066 = vmatmul.mubr.msk.bf16.vlgmr.msra.gmra.mrb[0].mxu0 %vm10299_vm0, %v7240_v19 }
  0x15   :  { %6069 = vmatprep.mubr.msk.bf16.mxu0 %vm10299_vm0, %v7242_v20 }
  0x1a   :  { %6114 = vmatpush3.bf16.xpose.msk.msra.mxu0 %vm5179_vm3, %v10260_v40  ;;  %vm5189_vm3 = vmpackc.low %vm488_vm2, %vm487_vm1  ;;  %vm420_vm1 = vcmp.eq.s32.totalorder %v5145_v55, %v7321_v43  ;;  %vm421_vm2 = vcmp.eq.s32.totalorder %v5145_v55, %v7324_v44 }
  0x1b   :  { %6115 = vmatprep.subr.msk.bf16.mxu0 %vm5181_vm6, %v10260_v40 }
  0x1c   :  { %6070 = vmatmul.mubr.msk.bf16.gmra.mrb[4].mxu0 %vm10299_vm0, %v7260_v25 }
  0x1d   :  { %6073 = vmatprep.mubr.msk.bf16.mxu0 %vm10299_vm0, %v7262_v26 }
  0x22   :  { %6116 = vmatpush3.bf16.xpose.msk.msra.mxu0 %vm5181_vm6, %v10260_v40  ;;  %vm5191_vm6 = vmpackc.low %vm490_vm5, %vm489_vm4  ;;  %vm422_vm4 = vcmp.eq.s32.totalorder %v5145_v55, %v7331_v45  ;;  %vm423_vm5 = vcmp.eq.s32.totalorder %v5145_v55, %v7334_v46 }
  0x23   :  { %6117 = vmatprep.subr.msk.bf16.mxu0 %vm5183_vm9, %v10260_v40 }
  0x24   :  { %6074 = vmatmul.mubr.msk.bf16.gmra.mrb[8].mxu0 %vm10299_vm0, %v7280_v31 }
  0x25   :  { %6077 = vmatprep.mubr.msk.bf16.mxu0 %vm10299_vm0, %v7282_v32 }
  0x2a   :  { %6118 = vmatpush3.bf16.xpose.msk.msra.mxu0 %vm5183_vm9, %v10260_v40  ;;  %vm5193_vm9 = vmpackc.low %vm492_vm8, %vm491_vm7  ;;  %vm424_vm7 = vcmp.eq.s32.totalorder %v5145_v55, %v7341_v47  ;;  %vm425_vm8 = vcmp.eq.s32.totalorder %v5145_v55, %v7344_v48 }
  0x2b   :  { %6119 = vmatprep.subr.msk.bf16.mxu0 %vm5185_vm12, %v10260_v40 }
  0x2c   :  { %6078 = vmatmul.mubr.msk.bf16.gmra.mrb[12].mxu0 %vm10299_vm0, %v7294_v35 }
  0x32   :  { %6120 = vmatpush3.bf16.xpose.msk.msra.mxu0 %vm5185_vm12, %v10260_v40  ;;  %vm5195_vm12 = vmpackc.low %vm417_vm11, %vm416_vm10  ;;  %vm426_vm10 = vcmp.eq.s32.totalorder %v5145_v55, %v7351_v49  ;;  %vm427_vm11 = vcmp.eq.s32.totalorder %v5145_v55, %v7354_v50 }
  0x33   :  { %6121 = vmatprep.subr.msk.bf16.mxu0 %vm5187_vm15, %v10260_v40  ;;  %6129 = vmatprep.mubr.msk.bf16.mxu0 %vm5195_vm12, %v10260_v40  ;;  %vm5205_vm12 = vmpackc.low %vm427_vm11, %vm426_vm10 }
  0x3a   :  { %6122 = vmatpush3.bf16.xpose.msk.msra.mxu0 %vm5187_vm15, %v10260_v40  ;;  %vm5197_vm15 = vmpackc.low %vm419_vm14, %vm418_vm13  ;;  %vm428_vm13 = vcmp.eq.s32.totalorder %v5145_v55, %v7361_v51  ;;  %vm429_vm14 = vcmp.eq.s32.totalorder %v5145_v55, %v7364_v52 }
  0x3b   :  { %6123 = vmatprep.subr.msk.bf16.mxu0 %vm5189_vm3, %v10260_v40 }
  0x42   :  { %6124 = vmatpush3.bf16.xpose.msk.msra.mxu0 %vm5189_vm3, %v10260_v40  ;;  %vm5199_vm3 = vmpackc.low %vm421_vm2, %vm420_vm1  ;;  %vm430_vm1 = vcmp.eq.s32.totalorder %v5145_v55, %v7371_v53  ;;  %vm431_vm2 = vcmp.eq.s32.totalorder %v5145_v55, %v7374_v54 }
  0x43   :  { %6125 = vmatprep.subr.msk.bf16.mxu0 %vm5191_vm6, %v10260_v40 }
  0x4a   :  { %6126 = vmatpush3.bf16.xpose.msk.msra.mxu0 %vm5191_vm6, %v10260_v40  ;;  %vm5201_vm6 = vmpackc.low %vm423_vm5, %vm422_vm4  ;;  %vm10298_vm4 = vcmask 261120  }
  0x4b   :  { %6127 = vmatprep.subr.msk.bf16.mxu0 %vm5193_vm9, %v10260_v40 }
  0x52   :  { %6128 = vmatpush3.bf16.xpose.msk.msra.mxu0 %vm5193_vm9, %v10260_v40  ;;  %vm5203_vm9 = vmpackc.low %vm425_vm8, %vm424_vm7 }
  0x59   :  { %6130 = vmatmul.mubr.msk.bf16.vlgmr.msra.gmra.mrb[16].mxu0 %vm5197_vm15, %v10260_v40  ;;  %vm5207_vm15 = vmpackc.low %vm429_vm14, %vm428_vm13 }
  0x5a   :  { %6133 = vmatprep.mubr.msk.bf16.mxu0 %vm5199_vm3, %v10260_v40  ;;  %vm5209_vm3 = vmpackc.low %vm431_vm2, %vm430_vm1 }
  0x61   :  { %6134 = vmatmul.mubr.msk.bf16.gmra.mrb[20].mxu0 %vm5201_vm6, %v10260_v40 }
  0x62   :  { %6137 = vmatprep.mubr.msk.bf16.mxu0 %vm5203_vm9, %v10260_v40 }
  0x69   :  { %6138 = vmatmul.mubr.msk.bf16.gmra.mrb[24].mxu0 %vm5205_vm12, %v10260_v40 }
  0x6a   :  { %6141 = vmatprep.mubr.msk.bf16.mxu0 %vm5207_vm15, %v10260_v40 }
  0x71   :  { %6142 = vmatmul.mubr.msk.bf16.gmra.mrb[28].mxu0 %vm5209_vm3, %v10260_v40 }
  0xe7   :  { %v6067_v57 = vpop.f32.mrb[0].mxu0 }
  0xe8   :  { %v219_v58 = vadd.f32 %v6067_v57, %v7410_v56  ;;  %v147_v59 = vpop.f32.mrb[1].mxu0 }
  0xe9   :  { %v217_v60 = vadd.f32 %v7410_v56, %v147_v59  ;;  %v6068_v61 = vpop.f32.mrb[2].mxu0 }
  0xea   :  { %6802 = vtanh.f32 %v219_v58  ;;  %v220_v62 = vadd.f32 %v6068_v61, %v7410_v56  ;;  %v258_v63 = vpack.c.bf16 %v6068_v61, %v6067_v57  ;;  %v150_v0 = vpop.f32.mrb[3].mxu0 }
  0xeb   :  { %6804 = vtanh.f32 %v217_v60  ;;  %v218_v1 = vadd.f32 %v7410_v56, %v150_v0  ;;  %v257_v2 = vpack.c.bf16 %v150_v0, %v147_v59 }
  0xec   :  { %6806 = vtanh.f32 %v220_v62  ;;  %v294_v17 = vsel %vm10298_vm4, %v258_v63, 0 }
  0xed   :  { %6808 = vtanh.f32 %v218_v1  ;;  %6753 = vmatprep.subr.msk.bf16.mxu1 %vm10298_vm4, %v257_v2  ;;  %v291_v3 = vsel %vm10298_vm4, %v257_v2, 0 }
  0xee   :  { %6082 = vmatpush3.bf16.xpose.msra.mxu1 %v291_v3 }
  0xef   :  { %6754 = vmatprep.subr.msk.bf16.mxu1 %vm10298_vm4, %v258_v63  ;;  %v6071_v4 = vpop.f32.mrb[4].mxu0 }
  0xf0   :  { %v223_v5 = vadd.f32 %v6071_v4, %v7410_v56  ;;  %v163_v6 = vpop.f32.mrb[5].mxu0 }
  0xf1   :  { %v221_v7 = vadd.f32 %v7410_v56, %v163_v6  ;;  %v6072_v8 = vpop.f32.mrb[6].mxu0 }
  0xf2   :  { %6810 = vtanh.f32 %v223_v5  ;;  %v224_v9 = vadd.f32 %v6072_v8, %v7410_v56  ;;  %v260_v11 = vpack.c.bf16 %v6072_v8, %v6071_v4  ;;  %v166_v12 = vpop.f32.mrb[7].mxu0 }
  0xf3   :  { %6812 = vtanh.f32 %v221_v7  ;;  %v222_v13 = vadd.f32 %v7410_v56, %v166_v12  ;;  %v259_v14 = vpack.c.bf16 %v166_v12, %v163_v6 }
  0xf4   :  { %v7423_v15 = vpop.eup %6802  ;;  %6814 = vtanh.f32 %v224_v9 }
  0xf5   :  { %v6805_v16 = vpop.eup %6804  ;;  %6816 = vtanh.f32 %v222_v13  ;;  %v297_v59 = vsel %vm10298_vm4, %v259_v14, 0 }
  0xf6   :  { %v7426_v18 = vpop.eup %6806  ;;  %6084 = vmatpush3.bf16.xpose.msra.mxu1 %v294_v17 }
  0xf7   :  { %v6809_v21 = vpop.eup %6808  ;;  %6755 = vmatprep.subr.msk.bf16.mxu1 %vm10298_vm4, %v259_v14  ;;  %v6075_v22 = vpop.f32.mrb[8].mxu0  ;;  %v250_v23 = vpack.c.bf16 %v7426_v18, %v7423_v15  ;;  %v300_v14 = vsel %vm10298_vm4, %v260_v11, 0  ;;  %v7489_v15 = vld [vmem:[%s10251_s4 + $0x1] ss:$0 sm:$0xff] }
  0xf8   :  { %v249_v24 = vpack.c.bf16 %v6809_v21, %v6805_v16  ;;  %v227_v27 = vadd.f32 %v6075_v22, %v7410_v56  ;;  %v179_v28 = vpop.f32.mrb[9].mxu0  ;;  %vm1057_vm5 = vcmp.eq.s32.totalorder %v7489_v15, %v7298_v37  ;;  %vm1058_vm6 = vcmp.eq.s32.totalorder %v7489_v15, %v7301_v38 }
  0xf9   :  { %v225_v29 = vadd.f32 %v7410_v56, %v179_v28  ;;  %v6076_v30 = vpop.f32.mrb[10].mxu0  ;;  %vm5273_vm7 = vmpackc.low %vm1058_vm6, %vm1057_vm5  ;;  %vm1059_vm8 = vcmp.eq.s32.totalorder %v7489_v15, %v7311_v41  ;;  %vm1060_vm9 = vcmp.eq.s32.totalorder %v7489_v15, %v7314_v42  ;;  %vm1061_vm11 = vcmp.eq.s32.totalorder %v7489_v15, %v7321_v43 }
  0xfa   :  { %6097 = vmatprep.mubr.msk.bf16.mxu1 %vm10298_vm4, %v249_v24  ;;  %6818 = vtanh.f32 %v227_v27  ;;  %v228_v33 = vadd.f32 %v6076_v30, %v7410_v56  ;;  %v262_v34 = vpack.c.bf16 %v6076_v30, %v6075_v22  ;;  %v182_v36 = vpop.f32.mrb[11].mxu0  ;;  %vm5275_vm10 = vmpackc.low %vm1060_vm9, %vm1059_vm8  ;;  %vm1062_vm12 = vcmp.eq.s32.totalorder %v7489_v15, %v7324_v44 }
  0xfb   :  { %6820 = vtanh.f32 %v225_v29  ;;  %v226_v39 = vadd.f32 %v7410_v56, %v182_v36  ;;  %v261_v55 = vpack.c.bf16 %v182_v36, %v179_v28  ;;  %vm5277_vm13 = vmpackc.low %vm1062_vm12, %vm1061_vm11  ;;  %vm1063_vm14 = vcmp.eq.s32.totalorder %v7489_v15, %v7331_v45 }
  0xfc   :  { %v7436_v57 = vpop.eup %6810  ;;  %6822 = vtanh.f32 %v228_v33  ;;  %vm1064_vm15 = vcmp.eq.s32.totalorder %v7489_v15, %v7334_v46  ;;  %vm1065_vm2 = vcmp.eq.s32.totalorder %v7489_v15, %v7341_v47  ;;  %vm1066_vm3 = vcmp.eq.s32.totalorder %v7489_v15, %v7344_v48 }
  0xfd   :  { %v6813_v58 = vpop.eup %6812  ;;  %6824 = vtanh.f32 %v226_v39  ;;  %v303_v28 = vsel %vm10298_vm4, %v261_v55, 0  ;;  %v5211_v39 = vld [vmem:[%s10249_s1 + $0x40] sm:$0xff]  ;;  %vm5279_vm1 = vmpackc.low %vm1064_vm15, %vm1063_vm14  ;;  %vm1067_vm6 = vcmp.eq.s32.totalorder %v7489_v15, %v7351_v49  ;;  %vm1069_vm9 = vcmp.eq.s32.totalorder %v7489_v15, %v7361_v51 }
  0xfe   :  { %v7439_v60 = vpop.eup %6814  ;;  %6086 = vmatpush3.bf16.xpose.msra.mxu1 %v297_v59  ;;  %v5214_v59 = vld [vmem:[%s10249_s1 + $0x58] sm:$0xff]  ;;  %vm5281_vm5 = vmpackc.low %vm1066_vm3, %vm1065_vm2  ;;  %vm1071_vm12 = vcmp.eq.s32.totalorder %v7489_v15, %v7371_v53 }
  0xff   :  { %v6817_v61 = vpop.eup %6816  ;;  %6756 = vmatprep.subr.msk.bf16.mxu1 %vm10298_vm4, %v260_v11  ;;  %v6079_v62 = vpop.f32.mrb[12].mxu0  ;;  %v252_v63 = vpack.c.bf16 %v7439_v60, %v7436_v57  ;;  %v306_v11 = vsel %vm10298_vm4, %v262_v34, 0 }
 0x100   :  { %v231_v0 = vadd.f32 %v6079_v62, %v7410_v56  ;;  %v195_v1 = vpop.f32.mrb[13].mxu0  ;;  %v251_v2 = vpack.c.bf16 %v6817_v61, %v6813_v58  ;;  %v5215_v61 = vld [vmem:[%s10249_s1 + $0x60] sm:$0xff] }
 0x101   :  { %v229_v3 = vadd.f32 %v7410_v56, %v195_v1  ;;  %v6080_v4 = vpop.f32.mrb[14].mxu0 }
 0x102   :  { %6826 = vtanh.f32 %v231_v0  ;;  %v232_v5 = vadd.f32 %v6080_v4, %v7410_v56  ;;  %v264_v6 = vpack.c.bf16 %v6080_v4, %v6079_v62  ;;  %v198_v7 = vpop.f32.mrb[15].mxu0  ;;  %v5216_v62 = vld [vmem:[%s10249_s1 + $0x68] sm:$0xff] }
 0x103   :  { %6828 = vtanh.f32 %v229_v3  ;;  %v230_v8 = vadd.f32 %v7410_v56, %v198_v7  ;;  %v263_v9 = vpack.c.bf16 %v198_v7, %v195_v1  ;;  %v689_v0 = vpack.c.bf16 %v5216_v62, %v5215_v61  ;;  %v5217_v1 = vld [vmem:[%s10249_s1 + $0x70] sm:$0xff]  ;;  %v5218_v3 = vld [vmem:[%s10249_s1 + $0x78] sm:$0xff] }
 0x104   :  { %v6819_v12 = vpop.eup %6818  ;;  %6830 = vtanh.f32 %v232_v5  ;;  %v312_v58 = vsel %vm10298_vm4, %v264_v6, 0  ;;  %v690_v18 = vpack.c.bf16 %v5218_v3, %v5217_v1 }
 0x105   :  { %v6821_v13 = vpop.eup %6820  ;;  %6832 = vtanh.f32 %v230_v8  ;;  %v309_v36 = vsel %vm10298_vm4, %v263_v9, 0 }
 0x106   :  { %v6823_v16 = vpop.eup %6822  ;;  %6088 = vmatpush3.bf16.xpose.msra.mxu1 %v300_v14 }
 0x107   :  { %v6825_v17 = vpop.eup %6824  ;;  %6757 = vmatprep.subr.msk.bf16.mxu1 %vm10298_vm4, %v261_v55  ;;  %v254_v21 = vpack.c.bf16 %v6823_v16, %v6819_v12  ;;  %v5212_v55 = vld [vmem:[%s10249_s1 + $0x48] sm:$0xff] }
 0x108   :  { %v253_v22 = vpack.c.bf16 %v6825_v17, %v6821_v13  ;;  %v687_v57 = vpack.c.bf16 %v5212_v55, %v5211_v39 }
 0x10c   :  { %v6827_v24 = vpop.eup %6826 }
 0x10d   :  { %v6829_v27 = vpop.eup %6828 }
 0x10e   :  { %v6831_v29 = vpop.eup %6830  ;;  %6090 = vmatpush3.bf16.xpose.msra.mxu1 %v303_v28 }
 0x10f   :  { %v6833_v56 = vpop.eup %6832  ;;  %6758 = vmatprep.subr.msk.bf16.mxu1 %vm10298_vm4, %v262_v34  ;;  %v256_v30 = vpack.c.bf16 %v6831_v29, %v6827_v24  ;;  %v5213_v34 = vld [vmem:[%s10249_s1 + $0x50] sm:$0xff]  ;;  %v5238_v24 = vld [vmem:[%s10252_s3 + $0x1] ss:$0 sm:$0xff] }
 0x110   :  { %v255_v33 = vpack.c.bf16 %v6833_v56, %v6829_v27  ;;  %v688_v60 = vpack.c.bf16 %v5214_v59, %v5213_v34  ;;  %vm995_vm15 = vcmp.eq.s32.totalorder %v5238_v24, %v7298_v37  ;;  %vm997_vm3 = vcmp.eq.s32.totalorder %v5238_v24, %v7311_v41 }
 0x116   :  { %6092 = vmatpush3.bf16.xpose.msra.mxu1 %v306_v11 }
 0x117   :  { %6759 = vmatprep.subr.msk.bf16.mxu1 %vm10298_vm4, %v263_v9 }
 0x11e   :  { %6094 = vmatpush3.bf16.xpose.msra.mxu1 %v309_v36 }
 0x11f   :  { %6760 = vmatprep.subr.msk.bf16.mxu1 %vm10298_vm4, %v264_v6 }
 0x126   :  { %6096 = vmatpush3.bf16.xpose.msra.mxu1 %v312_v58 }
 0x127   :  { %6145 = vmatprep.subr.bf16.mxu1 %v687_v57 }
 0x12d   :  { %6098 = vmatmul.mubr.msk.bf16.vlgmr.msra.gmra.mrb[0].mxu1 %vm10298_vm4, %v250_v23  ;;  %v7536_v23 = vpop.f32.mrb[16].mxu0 }
 0x12e   :  { %6101 = vmatprep.mubr.msk.bf16.mxu1 %vm10298_vm4, %v251_v2  ;;  %6146 = vmatpush3.bf16.msra.mxu1 %v687_v57 }
 0x12f   :  { %6147 = vmatprep.subr.bf16.mxu1 %v688_v60 }
 0x132   :  { %6148 = vmatpush3.bf16.msra.mxu1 %v688_v60 }
 0x133   :  { %6149 = vmatprep.subr.bf16.mxu1 %v689_v0 }
 0x135   :  { %6102 = vmatmul.mubr.msk.bf16.gmra.mrb[4].mxu1 %vm10298_vm4, %v252_v63  ;;  %v7538_v63 = vpop.f32.mrb[17].mxu0 }
 0x136   :  { %6105 = vmatprep.mubr.msk.bf16.mxu1 %vm10298_vm4, %v253_v22  ;;  %6150 = vmatpush3.bf16.msra.mxu1 %v689_v0  ;;  %v7540_v2 = vpop.f32.mrb[18].mxu0 }
 0x137   :  { %6151 = vmatprep.subr.bf16.mxu1 %v690_v18  ;;  %v7546_v4 = vpop.f32.mrb[19].mxu0 }
 0x138   :  { %v7550_v5 = vpop.f32.mrb[20].mxu0 }
 0x139   :  { %v7552_v6 = vpop.f32.mrb[21].mxu0 }
 0x13a   :  { %6152 = vmatpush3.bf16.msra.mxu1 %v690_v18  ;;  %v7554_v7 = vpop.f32.mrb[22].mxu0 }
 0x13b   :  { %6201 = vmatprep.subr.msk.bf16.mxu1 %vm5273_vm7, %v10260_v40  ;;  %v7560_v8 = vpop.f32.mrb[23].mxu0 }
 0x13c   :  { %v7564_v9 = vpop.f32.mrb[24].mxu0 }
 0x13d   :  { %6106 = vmatmul.mubr.msk.bf16.gmra.mrb[8].mxu1 %vm10298_vm4, %v254_v21  ;;  %v7566_v12 = vpop.f32.mrb[25].mxu0 }
 0x13e   :  { %6109 = vmatprep.mubr.msk.bf16.mxu1 %vm10298_vm4, %v255_v33  ;;  %v7568_v13 = vpop.f32.mrb[26].mxu0 }
 0x13f   :  { %v7574_v14 = vpop.f32.mrb[27].mxu0 }
 0x144   :  { %v7578_v16 = vpop.f32.mrb[28].mxu0 }
 0x145   :  { %6110 = vmatmul.mubr.msk.bf16.gmra.mrb[12].mxu1 %vm10298_vm4, %v256_v30  ;;  %v7580_v17 = vpop.f32.mrb[29].mxu0 }
 0x146   :  { %6153 = vmatprep.mubr.msk.bf16.mxu1 %vm10299_vm0, %v7218_v10  ;;  %v7582_v21 = vpop.f32.mrb[30].mxu0 }
 0x147   :  { %v7588_v22 = vpop.f32.mrb[31].mxu0 }
 0x148   :  { %10310 = vst [vmem:[#allocation12_spill] sm:$0xff] %v7588_v22 }
 0x14d   :  { %6154 = vmatmul.mubr.msk.bf16.vlgmr.msra.gmra.mrb[16].mxu1 %vm10299_vm0, %v7240_v19 }
 0x14e   :  { %6157 = vmatprep.mubr.msk.bf16.mxu1 %vm10299_vm0, %v7242_v20  ;;  %6202 = vmatpush3.bf16.xpose.msk.msra.mxu1 %vm5273_vm7, %v10260_v40  ;;  %vm1068_vm7 = vcmp.eq.s32.totalorder %v7489_v15, %v7354_v50 }
 0x14f   :  { %6203 = vmatprep.subr.msk.bf16.mxu1 %vm5275_vm10, %v10260_v40  ;;  %vm5283_vm8 = vmpackc.low %vm1068_vm7, %vm1067_vm6  ;;  %vm999_vm7 = vcmp.eq.s32.totalorder %v5238_v24, %v7321_v43 }
 0x155   :  { %6158 = vmatmul.mubr.msk.bf16.gmra.mrb[20].mxu1 %vm10299_vm0, %v7260_v25 }
 0x156   :  { %6161 = vmatprep.mubr.msk.bf16.mxu1 %vm10299_vm0, %v7262_v26  ;;  %6204 = vmatpush3.bf16.xpose.msk.msra.mxu1 %vm5275_vm10, %v10260_v40  ;;  %vm1070_vm10 = vcmp.eq.s32.totalorder %v7489_v15, %v7364_v52 }
 0x157   :  { %6205 = vmatprep.subr.msk.bf16.mxu1 %vm5277_vm13, %v10260_v40  ;;  %vm5285_vm11 = vmpackc.low %vm1070_vm10, %vm1069_vm9  ;;  %vm1001_vm9 = vcmp.eq.s32.totalorder %v5238_v24, %v7331_v45  ;;  %vm1002_vm10 = vcmp.eq.s32.totalorder %v5238_v24, %v7334_v46 }
 0x15d   :  { %6162 = vmatmul.mubr.msk.bf16.gmra.mrb[24].mxu1 %vm10299_vm0, %v7280_v31 }
 0x15e   :  { %6165 = vmatprep.mubr.msk.bf16.mxu1 %vm10299_vm0, %v7282_v32  ;;  %6206 = vmatpush3.bf16.xpose.msk.msra.mxu1 %vm5277_vm13, %v10260_v40  ;;  %vm1072_vm13 = vcmp.eq.s32.totalorder %v7489_v15, %v7374_v54 }
 0x15f   :  { %6207 = vmatprep.subr.msk.bf16.mxu1 %vm5279_vm1, %v10260_v40  ;;  %vm5287_vm14 = vmpackc.low %vm1072_vm13, %vm1071_vm12  ;;  %vm1003_vm13 = vcmp.eq.s32.totalorder %v5238_v24, %v7341_v47 }
 0x160   :  { %vm5295_vm12 = vmpackc.low %vm1002_vm10, %vm1001_vm9 }
 0x165   :  { %6166 = vmatmul.mubr.msk.bf16.gmra.mrb[28].mxu1 %vm10299_vm0, %v7294_v35 }
 0x166   :  { %6208 = vmatpush3.bf16.xpose.msk.msra.mxu1 %vm5279_vm1, %v10260_v40  ;;  %vm996_vm1 = vcmp.eq.s32.totalorder %v5238_v24, %v7301_v38 }
 0x167   :  { %6209 = vmatprep.subr.msk.bf16.mxu1 %vm5281_vm5, %v10260_v40  ;;  %vm5289_vm2 = vmpackc.low %vm996_vm1, %vm995_vm15  ;;  %vm1005_vm1 = vcmp.eq.s32.totalorder %v5238_v24, %v7351_v49 }
 0x168   :  { %6217 = vmatprep.mubr.msk.bf16.mxu1 %vm5289_vm2, %v10260_v40  ;;  %vm1006_vm2 = vcmp.eq.s32.totalorder %v5238_v24, %v7354_v50 }
 0x16e   :  { %6210 = vmatpush3.bf16.xpose.msk.msra.mxu1 %vm5281_vm5, %v10260_v40  ;;  %vm998_vm5 = vcmp.eq.s32.totalorder %v5238_v24, %v7314_v42 }
 0x16f   :  { %6211 = vmatprep.subr.msk.bf16.mxu1 %vm5283_vm8, %v10260_v40  ;;  %vm5291_vm6 = vmpackc.low %vm998_vm5, %vm997_vm3  ;;  %vm1007_vm5 = vcmp.eq.s32.totalorder %v5238_v24, %v7361_v51 }
 0x170   :  { %vm5299_vm3 = vmpackc.low %vm1006_vm2, %vm1005_vm1 }
 0x176   :  { %6212 = vmatpush3.bf16.xpose.msk.msra.mxu1 %vm5283_vm8, %v10260_v40  ;;  %vm1000_vm8 = vcmp.eq.s32.totalorder %v5238_v24, %v7324_v44 }
 0x177   :  { %6213 = vmatprep.subr.msk.bf16.mxu1 %vm5285_vm11, %v10260_v40 }
 0x17e   :  { %6214 = vmatpush3.bf16.xpose.msk.msra.mxu1 %vm5285_vm11, %v10260_v40  ;;  %vm5293_vm11 = vmpackc.low %vm1000_vm8, %vm999_vm7  ;;  %vm1009_vm7 = vcmp.eq.s32.totalorder %v5238_v24, %v7371_v53  ;;  %vm1010_vm8 = vcmp.eq.s32.totalorder %v5238_v24, %v7374_v54 }
 0x17f   :  { %6215 = vmatprep.subr.msk.bf16.mxu1 %vm5287_vm14, %v10260_v40  ;;  %vm5303_vm10 = vmpackc.low %vm1010_vm8, %vm1009_vm7 }
 0x186   :  { %6216 = vmatpush3.bf16.xpose.msk.msra.mxu1 %vm5287_vm14, %v10260_v40  ;;  %vm1004_vm14 = vcmp.eq.s32.totalorder %v5238_v24, %v7344_v48 }
 0x187   :  { %vm5297_vm15 = vmpackc.low %vm1004_vm14, %vm1003_vm13 }
 0x18d   :  { %6218 = vmatmul.mubr.msk.bf16.vlgmr.msra.gmra.mrb[32].mxu1 %vm5291_vm6, %v10260_v40  ;;  %vm1008_vm6 = vcmp.eq.s32.totalorder %v5238_v24, %v7364_v52 }
 0x18e   :  { %6221 = vmatprep.mubr.msk.bf16.mxu1 %vm5293_vm11, %v10260_v40  ;;  %vm5301_vm9 = vmpackc.low %vm1008_vm6, %vm1007_vm5 }
 0x195   :  { %6222 = vmatmul.mubr.msk.bf16.gmra.mrb[36].mxu1 %vm5295_vm12, %v10260_v40 }
 0x196   :  { %6225 = vmatprep.mubr.msk.bf16.mxu1 %vm5297_vm15, %v10260_v40 }
 0x19d   :  { %6226 = vmatmul.mubr.msk.bf16.gmra.mrb[40].mxu1 %vm5299_vm3, %v10260_v40 }
 0x19e   :  { %6229 = vmatprep.mubr.msk.bf16.mxu1 %vm5301_vm9, %v10260_v40 }
 0x1a5   :  { %6230 = vmatmul.mubr.msk.bf16.gmra.mrb[44].mxu1 %vm5303_vm10, %v10260_v40 }
 0x200   :  { %v6099_v27 = vpop.f32.mrb[0].mxu1 }
 0x201   :  { %v7620_v28 = vmul.f32 %v7536_v23, %v6099_v27  ;;  %v348_v29 = vpop.f32.mrb[1].mxu1 }
 0x202   :  { %v7623_v56 = vmul.f32 %v7538_v63, %v348_v29  ;;  %v6100_v30 = vpop.f32.mrb[2].mxu1 }
 0x203   :  { %10311 = vst [vmem:[#allocation13_spill] sm:$0xff] %v7620_v28  ;;  %v7626_v33 = vmul.f32 %v7540_v2, %v6100_v30  ;;  %v351_v11 = vpop.f32.mrb[3].mxu1 }
 0x204   :  { %10312 = vst [vmem:[#allocation14_spill] sm:$0xff] %v7623_v56  ;;  %v7629_v36 = vmul.f32 %v7546_v4, %v351_v11 }
 0x205   :  { %10313 = vst [vmem:[#allocation15_spill] sm:$0xff] %v7626_v33 }
 0x206   :  { %10314 = vst [vmem:[#allocation16_spill] sm:$0xff] %v7629_v36 }
 0x208   :  { %v6103_v39 = vpop.f32.mrb[4].mxu1 }
 0x209   :  { %v7632_v55 = vmul.f32 %v7550_v5, %v6103_v39  ;;  %v364_v57 = vpop.f32.mrb[5].mxu1 }
 0x20a   :  { %v7635_v58 = vmul.f32 %v7552_v6, %v364_v57  ;;  %v6104_v34 = vpop.f32.mrb[6].mxu1 }
 0x20b   :  { %10315 = vst [vmem:[#allocation17_spill] sm:$0xff] %v7632_v55  ;;  %v7638_v59 = vmul.f32 %v7554_v7, %v6104_v34  ;;  %v367_v60 = vpop.f32.mrb[7].mxu1 }
 0x20c   :  { %10316 = vst [vmem:[#allocation18_spill] sm:$0xff] %v7635_v58  ;;  %v7641_v61 = vmul.f32 %v7560_v8, %v367_v60 }
 0x20d   :  { %10317 = vst [vmem:[#allocation19_spill] sm:$0xff] %v7638_v59 }
 0x20e   :  { %10318 = vst [vmem:[#allocation20_spill] sm:$0xff] %v7641_v61 }
 0x210   :  { %v6107_v62 = vpop.f32.mrb[8].mxu1 }
 0x211   :  { %v7644_v0 = vmul.f32 %v7564_v9, %v6107_v62  ;;  %v380_v1 = vpop.f32.mrb[9].mxu1 }
 0x212   :  { %v7647_v3 = vmul.f32 %v7566_v12, %v380_v1  ;;  %v6108_v15 = vpop.f32.mrb[10].mxu1  ;;  %v7670_v1 = vld [vmem:[%s10253_s2 + $0x1] ss:$0 sm:$0xff] }
 0x213   :  { %10319 = vst [vmem:[#allocation21_spill] sm:$0xff] %v7644_v0  ;;  %v7650_v18 = vmul.f32 %v7568_v13, %v6108_v15  ;;  %v383_v24 = vpop.f32.mrb[11].mxu1 }
 0x214   :  { %10320 = vst [vmem:[#allocation22_spill] sm:$0xff] %v7647_v3  ;;  %v7653_v27 = vmul.f32 %v7574_v14, %v383_v24 }
 0x215   :  { %10321 = vst [vmem:[#allocation23_spill] sm:$0xff] %v7650_v18 }
 0x216   :  { %10322 = vst [vmem:[#allocation24_spill] sm:$0xff] %v7653_v27 }
 0x218   :  { %v6111_v29 = vpop.f32.mrb[12].mxu1 }
 0x219   :  { %v7656_v30 = vmul.f32 %v7578_v16, %v6111_v29  ;;  %v396_v11 = vpop.f32.mrb[13].mxu1 }
 0x21a   :  { %v7659_v39 = vmul.f32 %v7580_v17, %v396_v11  ;;  %v6112_v57 = vpop.f32.mrb[14].mxu1 }
 0x21b   :  { %10323 = vst [vmem:[#allocation25_spill] sm:$0xff] %v7656_v30  ;;  %v7662_v34 = vmul.f32 %v7582_v21, %v6112_v57  ;;  %v399_v60 = vpop.f32.mrb[15].mxu1 }
 0x21c   :  { %10324 = vst [vmem:[#allocation26_spill] sm:$0xff] %v7659_v39  ;;  %v7665_v62 = vmul.f32 %v7588_v22, %v399_v60 }
 0x21d   :  { %10325 = vst [vmem:[#allocation27_spill] sm:$0xff] %v7662_v34 }
 0x21e   :  { %10326 = vst [vmem:[#allocation28_spill] sm:$0xff] %v7665_v62 }
 0x220   :  { %v6155_v15 = vpop.f32.mrb[16].mxu1 }
 0x221   :  { %v798_v24 = vadd.f32 %v6155_v15, %v7670_v1  ;;  %v725_v29 = vpop.f32.mrb[17].mxu1 }
 0x222   :  { %v796_v11 = vadd.f32 %v7670_v1, %v725_v29  ;;  %v6156_v40 = vpop.f32.mrb[18].mxu1 }
 0x223   :  { %6834 = vtanh.f32 %v798_v24  ;;  %v799_v57 = vadd.f32 %v6156_v40, %v7670_v1  ;;  %v837_v34 = vpack.c.bf16 %v6156_v40, %v6155_v15  ;;  %v728_v39 = vpop.f32.mrb[19].mxu1 }
 0x224   :  { %6836 = vtanh.f32 %v796_v11  ;;  %v797_v60 = vadd.f32 %v7670_v1, %v728_v39  ;;  %v836_v62 = vpack.c.bf16 %v728_v39, %v725_v29 }
 0x225   :  { %6838 = vtanh.f32 %v799_v57  ;;  %v872_v3 = vsel %vm10298_vm4, %v837_v34, 0 }
 0x226   :  { %6840 = vtanh.f32 %v797_v60  ;;  %6761 = vmatprep.subr.msk.bf16.mxu0 %vm10298_vm4, %v836_v62  ;;  %v869_v30 = vsel %vm10298_vm4, %v836_v62, 0 }
 0x227   :  { %6170 = vmatpush3.bf16.xpose.msra.mxu0 %v869_v30 }
 0x228   :  { %6762 = vmatprep.subr.msk.bf16.mxu0 %vm10298_vm4, %v837_v34  ;;  %v6159_v27 = vpop.f32.mrb[20].mxu1 }
 0x229   :  { %v802_v24 = vadd.f32 %v6159_v27, %v7670_v1  ;;  %v741_v18 = vpop.f32.mrb[21].mxu1 }
 0x22a   :  { %v800_v40 = vadd.f32 %v7670_v1, %v741_v18  ;;  %v6160_v15 = vpop.f32.mrb[22].mxu1 }
 0x22b   :  { %6842 = vtanh.f32 %v802_v24  ;;  %v803_v11 = vadd.f32 %v6160_v15, %v7670_v1  ;;  %v839_v39 = vpack.c.bf16 %v6160_v15, %v6159_v27  ;;  %v744_v29 = vpop.f32.mrb[23].mxu1 }
 0x22c   :  { %6844 = vtanh.f32 %v800_v40  ;;  %v801_v57 = vadd.f32 %v7670_v1, %v744_v29  ;;  %v838_v60 = vpack.c.bf16 %v744_v29, %v741_v18 }
 0x22d   :  { %v7683_v62 = vpop.eup %6834  ;;  %6846 = vtanh.f32 %v803_v11 }
 0x22e   :  { %v6837_v30 = vpop.eup %6836  ;;  %6848 = vtanh.f32 %v801_v57 }
 0x22f   :  { %v7686_v0 = vpop.eup %6838  ;;  %6172 = vmatpush3.bf16.xpose.msra.mxu0 %v872_v3 }
 0x230   :  { %v6841_v61 = vpop.eup %6840  ;;  %6763 = vmatprep.subr.msk.bf16.mxu0 %vm10298_vm4, %v838_v60  ;;  %v6163_v27 = vpop.f32.mrb[24].mxu1 }
 0x231   :  { %v828_v40 = vpack.c.bf16 %v6841_v61, %v6837_v30  ;;  %v806_v18 = vadd.f32 %v6163_v27, %v7670_v1  ;;  %v757_v15 = vpop.f32.mrb[25].mxu1  ;;  %v875_v30 = vsel %vm10298_vm4, %v838_v60, 0 }
 0x232   :  { %v804_v11 = vadd.f32 %v7670_v1, %v757_v15  ;;  %v6164_v29 = vpop.f32.mrb[26].mxu1 }
 0x233   :  { %6185 = vmatprep.mubr.msk.bf16.mxu0 %vm10298_vm4, %v828_v40  ;;  %6850 = vtanh.f32 %v806_v18  ;;  %v807_v34 = vadd.f32 %v6164_v29, %v7670_v1  ;;  %v841_v3 = vpack.c.bf16 %v6164_v29, %v6163_v27  ;;  %v760_v57 = vpop.f32.mrb[27].mxu1 }
 0x234   :  { %6852 = vtanh.f32 %v804_v11  ;;  %v805_v24 = vadd.f32 %v7670_v1, %v760_v57  ;;  %v840_v59 = vpack.c.bf16 %v760_v57, %v757_v15 }
 0x235   :  { %v7696_v58 = vpop.eup %6842  ;;  %6854 = vtanh.f32 %v807_v34 }
 0x236   :  { %v6845_v61 = vpop.eup %6844  ;;  %6856 = vtanh.f32 %v805_v24 }
 0x237   :  { %v7699_v55 = vpop.eup %6846  ;;  %6174 = vmatpush3.bf16.xpose.msra.mxu0 %v875_v30 }
 0x238   :  { %v6849_v40 = vpop.eup %6848  ;;  %6764 = vmatprep.subr.msk.bf16.mxu0 %vm10298_vm4, %v839_v39  ;;  %v6167_v18 = vpop.f32.mrb[28].mxu1  ;;  %v831_v27 = vpack.c.bf16 %v7699_v55, %v7696_v58  ;;  %v878_v55 = vsel %vm10298_vm4, %v839_v39, 0  ;;  %v884_v39 = vsel %vm10298_vm4, %v841_v3, 0 }
 0x239   :  { %v810_v11 = vadd.f32 %v6167_v18, %v7670_v1  ;;  %v773_v15 = vpop.f32.mrb[29].mxu1  ;;  %v830_v29 = vpack.c.bf16 %v6849_v40, %v6845_v61 }
 0x23a   :  { %v808_v34 = vadd.f32 %v7670_v1, %v773_v15  ;;  %v6168_v57 = vpop.f32.mrb[30].mxu1 }
 0x23b   :  { %6858 = vtanh.f32 %v810_v11  ;;  %v811_v60 = vadd.f32 %v6168_v57, %v7670_v1  ;;  %v843_v24 = vpack.c.bf16 %v6168_v57, %v6167_v18  ;;  %v776_v36 = vpop.f32.mrb[31].mxu1 }
 0x23c   :  { %6860 = vtanh.f32 %v808_v34  ;;  %v809_v30 = vadd.f32 %v7670_v1, %v776_v36  ;;  %v842_v33 = vpack.c.bf16 %v776_v36, %v773_v15  ;;  %v881_v34 = vsel %vm10298_vm4, %v840_v59, 0 }
 0x23d   :  { %v6851_v56 = vpop.eup %6850  ;;  %6862 = vtanh.f32 %v811_v60 }
 0x23e   :  { %v6853_v28 = vpop.eup %6852  ;;  %6864 = vtanh.f32 %v809_v30  ;;  %v887_v60 = vsel %vm10298_vm4, %v842_v33, 0 }
 0x23f   :  { %v6855_v58 = vpop.eup %6854  ;;  %6176 = vmatpush3.bf16.xpose.msra.mxu0 %v878_v55  ;;  %v5309_v55 = vld [vmem:[%s10249_s1 + $0xa0] sm:$0xff] }
 0x240   :  { %v6857_v61 = vpop.eup %6856  ;;  %6765 = vmatprep.subr.msk.bf16.mxu0 %vm10298_vm4, %v840_v59  ;;  %v833_v40 = vpack.c.bf16 %v6855_v58, %v6851_v56  ;;  %v5306_v56 = vld [vmem:[%s10249_s1 + $0x88] sm:$0xff]  ;;  %v890_v59 = vsel %vm10298_vm4, %v843_v24, 0 }
 0x241   :  { %v832_v11 = vpack.c.bf16 %v6857_v61, %v6853_v28  ;;  %v5305_v28 = vld [vmem:[%s10249_s1 + $0x80] sm:$0xff]  ;;  %v5310_v58 = vld [vmem:[%s10249_s1 + $0xa8] sm:$0xff] }
 0x242   :  { %v1269_v61 = vpack.c.bf16 %v5310_v58, %v5309_v55 }
 0x245   :  { %v6859_v22 = vpop.eup %6858 }
 0x246   :  { %v6861_v18 = vpop.eup %6860 }
 0x247   :  { %v6863_v57 = vpop.eup %6862  ;;  %6178 = vmatpush3.bf16.xpose.msra.mxu0 %v881_v34  ;;  %v5312_v34 = vld [vmem:[%s10249_s1 + $0xb8] sm:$0xff] }
 0x248   :  { %v6865_v36 = vpop.eup %6864  ;;  %6766 = vmatprep.subr.msk.bf16.mxu0 %vm10298_vm4, %v841_v3  ;;  %v835_v1 = vpack.c.bf16 %v6863_v57, %v6859_v22  ;;  %v1267_v22 = vpack.c.bf16 %v5306_v56, %v5305_v28  ;;  %v5308_v3 = vld [vmem:[%s10249_s1 + $0x98] sm:$0xff]  ;;  %v10330_v57 = vmov 1.0|1.0  }
 0x249   :  { %v834_v15 = vpack.c.bf16 %v6865_v36, %v6861_v18  ;;  %v5311_v18 = vld [vmem:[%s10249_s1 + $0xb0] sm:$0xff] }
 0x24f   :  { %6180 = vmatpush3.bf16.xpose.msra.mxu0 %v884_v39 }
 0x250   :  { %6767 = vmatprep.subr.msk.bf16.mxu0 %vm10298_vm4, %v842_v33  ;;  %v5307_v33 = vld [vmem:[%s10249_s1 + $0x90] sm:$0xff] }
 0x251   :  { %v1268_v30 = vpack.c.bf16 %v5308_v3, %v5307_v33 }
 0x257   :  { %6182 = vmatpush3.bf16.xpose.msra.mxu0 %v887_v60 }
 0x258   :  { %6768 = vmatprep.subr.msk.bf16.mxu0 %vm10298_vm4, %v843_v24  ;;  %v10327_v24 = vpack.c.bf16 %v7686_v0, %v7683_v62  ;;  %v7749_v0 = vld [vmem:[%s10251_s4 + $0x2] ss:$0 sm:$0xff]  ;;  %v1270_v62 = vpack.c.bf16 %v5312_v34, %v5311_v18 }
 0x259   :  { %vm1637_vm11 = vcmp.eq.s32.totalorder %v7749_v0, %v7298_v37  ;;  %vm1638_vm12 = vcmp.eq.s32.totalorder %v7749_v0, %v7301_v38  ;;  %vm1639_vm14 = vcmp.eq.s32.totalorder %v7749_v0, %v7311_v41  ;;  %vm1640_vm15 = vcmp.eq.s32.totalorder %v7749_v0, %v7314_v42 }
 0x25a   :  { %vm7757_vm13 = vmpackc.low %vm1638_vm12, %vm1637_vm11  ;;  %vm1641_vm2 = vcmp.eq.s32.totalorder %v7749_v0, %v7321_v43  ;;  %vm1642_vm3 = vcmp.eq.s32.totalorder %v7749_v0, %v7324_v44  ;;  %vm1643_vm6 = vcmp.eq.s32.totalorder %v7749_v0, %v7331_v45  ;;  %vm1644_vm7 = vcmp.eq.s32.totalorder %v7749_v0, %v7334_v46 }
 0x25b   :  { %vm5369_vm1 = vmpackc.low %vm1640_vm15, %vm1639_vm14  ;;  %vm1645_vm11 = vcmp.eq.s32.totalorder %v7749_v0, %v7341_v47  ;;  %vm1646_vm12 = vcmp.eq.s32.totalorder %v7749_v0, %v7344_v48  ;;  %vm1647_vm15 = vcmp.eq.s32.totalorder %v7749_v0, %v7351_v49 }
 0x25c   :  { %vm5371_vm5 = vmpackc.low %vm1642_vm3, %vm1641_vm2  ;;  %vm1649_vm3 = vcmp.eq.s32.totalorder %v7749_v0, %v7361_v51 }
 0x25d   :  { %vm5373_vm8 = vmpackc.low %vm1644_vm7, %vm1643_vm6  ;;  %vm1651_vm7 = vcmp.eq.s32.totalorder %v7749_v0, %v7371_v53 }
 0x25e   :  { %vm7838_vm14 = vmpackc.low %vm1646_vm12, %vm1645_vm11 }
 0x25f   :  { %6184 = vmatpush3.bf16.xpose.msra.mxu0 %v890_v59 }
 0x260   :  { %6233 = vmatprep.subr.bf16.mxu0 %v1267_v22 }
 0x266   :  { %6186 = vmatmul.mubr.msk.bf16.vlgmr.msra.gmra.mrb[32].mxu0 %vm10298_vm4, %v10327_v24 }
 0x267   :  { %6189 = vmatprep.mubr.msk.bf16.mxu0 %vm10298_vm4, %v830_v29  ;;  %6234 = vmatpush3.bf16.msra.mxu0 %v1267_v22 }
 0x268   :  { %6235 = vmatprep.subr.bf16.mxu0 %v1268_v30 }
 0x26b   :  { %6236 = vmatpush3.bf16.msra.mxu0 %v1268_v30 }
 0x26c   :  { %6237 = vmatprep.subr.bf16.mxu0 %v1269_v61 }
 0x26e   :  { %6190 = vmatmul.mubr.msk.bf16.gmra.mrb[36].mxu0 %vm10298_vm4, %v831_v27  ;;  %v7766_v27 = vpop.f32.mrb[32].mxu1 }
 0x26f   :  { %6193 = vmatprep.mubr.msk.bf16.mxu0 %vm10298_vm4, %v832_v11  ;;  %6238 = vmatpush3.bf16.msra.mxu0 %v1269_v61  ;;  %v7770_v11 = vadd.f32 %v7766_v27, %v7536_v23  ;;  %v7772_v36 = vpop.f32.mrb[33].mxu1  ;;  %v7824_v23 = vld [vmem:[%s10252_s3 + $0x2] ss:$0 sm:$0xff] }
 0x270   :  { %6239 = vmatprep.subr.bf16.mxu0 %v1270_v62  ;;  %v7776_v39 = vadd.f32 %v7772_v36, %v7538_v63  ;;  %v7778_v60 = vpop.f32.mrb[34].mxu1  ;;  %vm1575_vm9 = vcmp.eq.s32.totalorder %v7824_v23, %v7298_v37  ;;  %vm1576_vm10 = vcmp.eq.s32.totalorder %v7824_v23, %v7301_v38  ;;  %vm1578_vm11 = vcmp.eq.s32.totalorder %v7824_v23, %v7314_v42 }
 0x271   :  { %v7782_v28 = vadd.f32 %v7778_v60, %v7540_v2  ;;  %vm1579_vm12 = vcmp.eq.s32.totalorder %v7824_v23, %v7321_v43 }
 0x273   :  { %6240 = vmatpush3.bf16.msra.mxu0 %v1270_v62 }
 0x274   :  { %6289 = vmatprep.subr.msk.bf16.mxu0 %vm7757_vm13, %v10330_v57 }
 0x276   :  { %6194 = vmatmul.mubr.msk.bf16.gmra.mrb[40].mxu0 %vm10298_vm4, %v833_v40  ;;  %v7784_v40 = vpop.f32.mrb[35].mxu1 }
 0x277   :  { %6197 = vmatprep.mubr.msk.bf16.mxu0 %vm10298_vm4, %v834_v15  ;;  %v7788_v15 = vadd.f32 %v7784_v40, %v7546_v4  ;;  %v7844_v2 = vpop.f32.mrb[36].mxu1 }
 0x278   :  { %v7850_v4 = vadd.f32 %v7844_v2, %v7550_v5 }
 0x27e   :  { %6198 = vmatmul.mubr.msk.bf16.gmra.mrb[44].mxu0 %vm10298_vm4, %v835_v1  ;;  %v7852_v1 = vpop.f32.mrb[37].mxu1 }
 0x27f   :  { %6241 = vmatprep.mubr.msk.bf16.mxu0 %vm10299_vm0, %v7218_v10  ;;  %v7859_v56 = vadd.f32 %v7852_v1, %v7552_v6  ;;  %v7861_v22 = vpop.f32.mrb[38].mxu1 }
 0x280   :  { %v7865_v59 = vadd.f32 %v7861_v22, %v7554_v7  ;;  %v7867_v33 = vpop.f32.mrb[39].mxu1 }
 0x281   :  { %v7875_v5 = vadd.f32 %v7867_v33, %v7560_v8  ;;  %v7877_v6 = vpop.f32.mrb[40].mxu1 }
 0x282   :  { %v7884_v7 = vadd.f32 %v7877_v6, %v7564_v9  ;;  %v7886_v3 = vpop.f32.mrb[41].mxu1 }
 0x283   :  { %v7891_v30 = vadd.f32 %v7886_v3, %v7566_v12  ;;  %v7893_v8 = vpop.f32.mrb[42].mxu1 }
 0x284   :  { %v7897_v55 = vadd.f32 %v7893_v8, %v7568_v13  ;;  %v7899_v58 = vpop.f32.mrb[43].mxu1 }
 0x285   :  { %v7907_v9 = vadd.f32 %v7899_v58, %v7574_v14  ;;  %v7909_v12 = vpop.f32.mrb[44].mxu1 }
 0x286   :  { %6242 = vmatmul.mubr.msk.bf16.vlgmr.msra.gmra.mrb[48].mxu0 %vm10299_vm0, %v7240_v19  ;;  %v7914_v13 = vadd.f32 %v7909_v12, %v7578_v16  ;;  %v7916_v24 = vpop.f32.mrb[45].mxu1  ;;  %v10333_v16 = vld [vmem:[#allocation12_spill] sm:$0xff] }
 0x287   :  { %6290 = vmatpush3.bf16.xpose.msk.msra.mxu0 %vm7757_vm13, %v10330_v57  ;;  %6245 = vmatprep.mubr.msk.bf16.mxu0 %vm10299_vm0, %v7242_v20  ;;  %vm5383_vm13 = vmpackc.low %vm1576_vm10, %vm1575_vm9  ;;  %v7921_v61 = vadd.f32 %v7916_v24, %v7580_v17  ;;  %v7923_v18 = vpop.f32.mrb[46].mxu1  ;;  %vm1577_vm10 = vcmp.eq.s32.totalorder %v7824_v23, %v7311_v41 }
 0x288   :  { %6291 = vmatprep.subr.msk.bf16.mxu0 %vm5369_vm1, %v10330_v57  ;;  %v7927_v14 = vadd.f32 %v7923_v18, %v7582_v21  ;;  %v7929_v34 = vpop.f32.mrb[47].mxu1 }
 0x289   :  { %v7937_v62 = vadd.f32 %v7929_v34, %v10333_v16  ;;  %v10334_v16 = vld [vmem:[#allocation13_spill] sm:$0xff] }
 0x28e   :  { %6246 = vmatmul.mubr.msk.bf16.gmra.mrb[52].mxu0 %vm10299_vm0, %v7260_v25 }
 0x28f   :  { %6292 = vmatpush3.bf16.xpose.msk.msra.mxu0 %vm5369_vm1, %v10330_v57  ;;  %6249 = vmatprep.mubr.msk.bf16.mxu0 %vm10299_vm0, %v7262_v26  ;;  %vm1648_vm1 = vcmp.eq.s32.totalorder %v7749_v0, %v7354_v50 }
 0x290   :  { %6293 = vmatprep.subr.msk.bf16.mxu0 %vm5371_vm5, %v10330_v57  ;;  %vm5377_vm2 = vmpackc.low %vm1648_vm1, %vm1647_vm15  ;;  %vm1581_vm1 = vcmp.eq.s32.totalorder %v7824_v23, %v7331_v45 }
 0x296   :  { %6250 = vmatmul.mubr.msk.bf16.gmra.mrb[56].mxu0 %vm10299_vm0, %v7280_v31 }
 0x297   :  { %6294 = vmatpush3.bf16.xpose.msk.msra.mxu0 %vm5371_vm5, %v10330_v57  ;;  %6253 = vmatprep.mubr.msk.bf16.mxu0 %vm10299_vm0, %v7282_v32  ;;  %vm1650_vm5 = vcmp.eq.s32.totalorder %v7749_v0, %v7364_v52 }
 0x298   :  { %6295 = vmatprep.subr.msk.bf16.mxu0 %vm5373_vm8, %v10330_v57  ;;  %vm5379_vm6 = vmpackc.low %vm1650_vm5, %vm1649_vm3  ;;  %vm1583_vm3 = vcmp.eq.s32.totalorder %v7824_v23, %v7341_v47  ;;  %vm1584_vm5 = vcmp.eq.s32.totalorder %v7824_v23, %v7344_v48  ;;  %v10337_v48 = vld [vmem:[#allocation16_spill] sm:$0xff] }
 0x29e   :  { %6254 = vmatmul.mubr.msk.bf16.gmra.mrb[60].mxu0 %vm10299_vm0, %v7294_v35 }
 0x29f   :  { %6296 = vmatpush3.bf16.xpose.msk.msra.mxu0 %vm5373_vm8, %v10330_v57  ;;  %6305 = vmatprep.mubr.msk.bf16.mxu0 %vm5383_vm13, %v10330_v57  ;;  %vm1652_vm8 = vcmp.eq.s32.totalorder %v7749_v0, %v7374_v54  ;;  %vm1580_vm13 = vcmp.eq.s32.totalorder %v7824_v23, %v7324_v44 }
 0x2a0   :  { %6297 = vmatprep.subr.msk.bf16.mxu0 %vm7838_vm14, %v10330_v57  ;;  %vm5381_vm9 = vmpackc.low %vm1652_vm8, %vm1651_vm7  ;;  %vm1585_vm8 = vcmp.eq.s32.totalorder %v7824_v23, %v7351_v49 }
 0x2a1   :  { %vm5387_vm15 = vmpackc.low %vm1580_vm13, %vm1579_vm12 }
 0x2a2   :  { %vm5391_vm7 = vmpackc.low %vm1584_vm5, %vm1583_vm3 }
 0x2a7   :  { %6298 = vmatpush3.bf16.xpose.msk.msra.mxu0 %vm7838_vm14, %v10330_v57  ;;  %vm5385_vm14 = vmpackc.low %vm1578_vm11, %vm1577_vm10  ;;  %vm1587_vm10 = vcmp.eq.s32.totalorder %v7824_v23, %v7361_v51  ;;  %vm1588_vm11 = vcmp.eq.s32.totalorder %v7824_v23, %v7364_v52 }
 0x2a8   :  { %6299 = vmatprep.subr.msk.bf16.mxu0 %vm5377_vm2, %v10330_v57  ;;  %vm5395_vm13 = vmpackc.low %vm1588_vm11, %vm1587_vm10 }
 0x2af   :  { %6300 = vmatpush3.bf16.xpose.msk.msra.mxu0 %vm5377_vm2, %v10330_v57  ;;  %vm1582_vm2 = vcmp.eq.s32.totalorder %v7824_v23, %v7334_v46 }
 0x2b0   :  { %6301 = vmatprep.subr.msk.bf16.mxu0 %vm5379_vm6, %v10330_v57 }
 0x2b7   :  { %6302 = vmatpush3.bf16.xpose.msk.msra.mxu0 %vm5379_vm6, %v10330_v57  ;;  %vm5389_vm6 = vmpackc.low %vm1582_vm2, %vm1581_vm1 }
 0x2b8   :  { %6303 = vmatprep.subr.msk.bf16.mxu0 %vm5381_vm9, %v10330_v57 }
 0x2bf   :  { %6304 = vmatpush3.bf16.xpose.msk.msra.mxu0 %vm5381_vm9, %v10330_v57  ;;  %vm1586_vm9 = vcmp.eq.s32.totalorder %v7824_v23, %v7354_v50 }
 0x2c0   :  { %vm5393_vm12 = vmpackc.low %vm1586_vm9, %vm1585_vm8 }
 0x2c6   :  { %6306 = vmatmul.mubr.msk.bf16.vlgmr.msra.gmra.mrb[64].mxu0 %vm5385_vm14, %v10330_v57  ;;  %vm1589_vm14 = vcmp.eq.s32.totalorder %v7824_v23, %v7371_v53  ;;  %v10335_v53 = vld [vmem:[#allocation14_spill] sm:$0xff] }
 0x2c7   :  { %6309 = vmatprep.mubr.msk.bf16.mxu0 %vm5387_vm15, %v10330_v57  ;;  %vm1590_vm15 = vcmp.eq.s32.totalorder %v7824_v23, %v7374_v54  ;;  %v10336_v54 = vld [vmem:[#allocation15_spill] sm:$0xff] }
 0x2c8   :  { %vm5397_vm1 = vmpackc.low %vm1590_vm15, %vm1589_vm14 }
 0x2ce   :  { %6310 = vmatmul.mubr.msk.bf16.gmra.mrb[68].mxu0 %vm5389_vm6, %v10330_v57 }
 0x2cf   :  { %6313 = vmatprep.mubr.msk.bf16.mxu0 %vm5391_vm7, %v10330_v57 }
 0x2d6   :  { %6314 = vmatmul.mubr.msk.bf16.gmra.mrb[72].mxu0 %vm5393_vm12, %v10330_v57 }
 0x2d7   :  { %6317 = vmatprep.mubr.msk.bf16.mxu0 %vm5395_vm13, %v10330_v57 }
 0x2de   :  { %6318 = vmatmul.mubr.msk.bf16.gmra.mrb[76].mxu0 %vm5397_vm1, %v10330_v57 }
 0x339   :  { %v6187_v17 = vpop.f32.mrb[32].mxu0 }
 0x33a   :  { %v1212_v21 = vmul.f32 %v7766_v27, %v6187_v17  ;;  %v926_v0 = vpop.f32.mrb[33].mxu0 }
 0x33b   :  { %v1210_v29 = vmul.f32 %v7772_v36, %v926_v0  ;;  %v6188_v63 = vpop.f32.mrb[34].mxu0 }
 0x33c   :  { %v7980_v52 = vadd.f32 %v1212_v21, %v10334_v16  ;;  %v1213_v51 = vmul.f32 %v7778_v60, %v6188_v63  ;;  %v929_v50 = vpop.f32.mrb[35].mxu0  ;;  %v10338_v60 = vld [vmem:[#allocation17_spill] sm:$0xff] }
 0x33d   :  { %v7984_v49 = vadd.f32 %v1210_v29, %v10335_v53  ;;  %v1211_v23 = vmul.f32 %v7784_v40, %v929_v50  ;;  %v10339_v50 = vld [vmem:[#allocation18_spill] sm:$0xff] }
 0x33e   :  { %v7988_v35 = vadd.f32 %v1213_v51, %v10336_v54 }
 0x33f   :  { %v7991_v27 = vadd.f32 %v1211_v23, %v10337_v48  ;;  %v10340_v48 = vld [vmem:[#allocation19_spill] sm:$0xff]  ;;  %v10341_v23 = vld [vmem:[#allocation20_spill] sm:$0xff] }
 0x341   :  { %v6191_v17 = vpop.f32.mrb[36].mxu0 }
 0x342   :  { %v1216_v36 = vmul.f32 %v7844_v2, %v6191_v17  ;;  %v942_v0 = vpop.f32.mrb[37].mxu0 }
 0x343   :  { %v1214_v21 = vmul.f32 %v7852_v1, %v942_v0  ;;  %v6192_v16 = vpop.f32.mrb[38].mxu0 }
 0x344   :  { %v7996_v63 = vadd.f32 %v1216_v36, %v10338_v60  ;;  %v1217_v53 = vmul.f32 %v7861_v22, %v6192_v16  ;;  %v945_v29 = vpop.f32.mrb[39].mxu0  ;;  %v10343_v22 = vld [vmem:[#allocation21_spill] sm:$0xff] }
 0x345   :  { %v8000_v40 = vadd.f32 %v1214_v21, %v10339_v50  ;;  %v1215_v51 = vmul.f32 %v7867_v33, %v945_v29  ;;  %v10345_v33 = vld [vmem:[#allocation22_spill] sm:$0xff] }
 0x346   :  { %v8004_v54 = vadd.f32 %v1217_v53, %v10340_v48 }
 0x347   :  { %v8007_v2 = vadd.f32 %v1215_v51, %v10341_v23  ;;  %v10347_v51 = vld [vmem:[#allocation23_spill] sm:$0xff]  ;;  %v10349_v23 = vld [vmem:[#allocation24_spill] sm:$0xff] }
 0x349   :  { %10342 = vst [vmem:[#allocation12_spill] sm:$0xff] %v8007_v2  ;;  %v6195_v17 = vpop.f32.mrb[40].mxu0 }
 0x34a   :  { %v1220_v1 = vmul.f32 %v7877_v6, %v6195_v17  ;;  %v958_v0 = vpop.f32.mrb[41].mxu0 }
 0x34b   :  { %v1218_v36 = vmul.f32 %v7886_v3, %v958_v0  ;;  %v6196_v60 = vpop.f32.mrb[42].mxu0 }
 0x34c   :  { %v8012_v16 = vadd.f32 %v1220_v1, %v10343_v22  ;;  %v1221_v21 = vmul.f32 %v7893_v8, %v6196_v60  ;;  %v961_v50 = vpop.f32.mrb[43].mxu0  ;;  %v10351_v8 = vld [vmem:[#allocation25_spill] sm:$0xff] }
 0x34d   :  { %v8016_v29 = vadd.f32 %v1218_v36, %v10345_v33  ;;  %v1219_v53 = vmul.f32 %v7899_v58, %v961_v50  ;;  %v10353_v58 = vld [vmem:[#allocation26_spill] sm:$0xff] }
 0x34e   :  { %10344 = vst [vmem:[#allocation13_spill] sm:$0xff] %v8012_v16  ;;  %v8020_v48 = vadd.f32 %v1221_v21, %v10347_v51 }
 0x34f   :  { %10346 = vst [vmem:[#allocation14_spill] sm:$0xff] %v8016_v29  ;;  %v8023_v6 = vadd.f32 %v1219_v53, %v10349_v23  ;;  %v10355_v53 = vld [vmem:[#allocation27_spill] sm:$0xff]  ;;  %v10357_v23 = vld [vmem:[#allocation28_spill] sm:$0xff] }
 0x350   :  { %10348 = vst [vmem:[#allocation15_spill] sm:$0xff] %v8020_v48 }
 0x351   :  { %10350 = vst [vmem:[#allocation16_spill] sm:$0xff] %v8023_v6  ;;  %v6199_v17 = vpop.f32.mrb[44].mxu0 }
 0x352   :  { %v1224_v3 = vmul.f32 %v7909_v12, %v6199_v17  ;;  %v974_v0 = vpop.f32.mrb[45].mxu0 }
 0x353   :  { %v1222_v1 = vmul.f32 %v7916_v24, %v974_v0  ;;  %v6200_v22 = vpop.f32.mrb[46].mxu0  ;;  %v8044_v24 = vld [vmem:[%s10253_s2 + $0x2] ss:$0 sm:$0xff] }
 0x354   :  { %v8028_v60 = vadd.f32 %v1224_v3, %v10351_v8  ;;  %v1225_v36 = vmul.f32 %v7923_v18, %v6200_v22  ;;  %v977_v33 = vpop.f32.mrb[47].mxu0 }
 0x355   :  { %v8032_v50 = vadd.f32 %v1222_v1, %v10353_v58  ;;  %v1223_v21 = vmul.f32 %v7929_v34, %v977_v33 }
 0x356   :  { %10352 = vst [vmem:[#allocation17_spill] sm:$0xff] %v8028_v60  ;;  %v8036_v51 = vadd.f32 %v1225_v36, %v10355_v53 }
 0x357   :  { %10354 = vst [vmem:[#allocation18_spill] sm:$0xff] %v8032_v50  ;;  %v8039_v12 = vadd.f32 %v1223_v21, %v10357_v23 }
 0x358   :  { %10356 = vst [vmem:[#allocation19_spill] sm:$0xff] %v8036_v51 }
 0x359   :  { %10358 = vst [vmem:[#allocation20_spill] sm:$0xff] %v8039_v12  ;;  %v6243_v17 = vpop.f32.mrb[48].mxu0 }
 0x35a   :  { %v1378_v18 = vadd.f32 %v6243_v17, %v8044_v24  ;;  %v1305_v3 = vpop.f32.mrb[49].mxu0 }
 0x35b   :  { %v1376_v0 = vadd.f32 %v8044_v24, %v1305_v3  ;;  %v6244_v1 = vpop.f32.mrb[50].mxu0 }
 0x35c   :  { %6866 = vtanh.f32 %v1378_v18  ;;  %v1379_v34 = vadd.f32 %v6244_v1, %v8044_v24  ;;  %v1417_v22 = vpack.c.bf16 %v6244_v1, %v6243_v17  ;;  %v1308_v8 = vpop.f32.mrb[51].mxu0 }
 0x35d   :  { %6868 = vtanh.f32 %v1376_v0  ;;  %v1377_v36 = vadd.f32 %v8044_v24, %v1308_v8  ;;  %v1416_v33 = vpack.c.bf16 %v1308_v8, %v1305_v3 }
 0x35e   :  { %6870 = vtanh.f32 %v1379_v34 }
 0x35f   :  { %6872 = vtanh.f32 %v1377_v36  ;;  %6769 = vmatprep.subr.msk.bf16.mxu1 %vm10298_vm4, %v1416_v33  ;;  %v1449_v58 = vsel %vm10298_vm4, %v1416_v33, 0 }
 0x360   :  { %6258 = vmatpush3.bf16.xpose.msra.mxu1 %v1449_v58  ;;  %v1452_v58 = vsel %vm10298_vm4, %v1417_v22, 0 }
 0x361   :  { %6770 = vmatprep.subr.msk.bf16.mxu1 %vm10298_vm4, %v1417_v22  ;;  %v6247_v21 = vpop.f32.mrb[52].mxu0 }
 0x362   :  { %v1382_v53 = vadd.f32 %v6247_v21, %v8044_v24  ;;  %v1321_v23 = vpop.f32.mrb[53].mxu0 }
 0x363   :  { %v1380_v17 = vadd.f32 %v8044_v24, %v1321_v23  ;;  %v6248_v18 = vpop.f32.mrb[54].mxu0 }
 0x364   :  { %6874 = vtanh.f32 %v1382_v53  ;;  %v1383_v0 = vadd.f32 %v6248_v18, %v8044_v24  ;;  %v1419_v3 = vpack.c.bf16 %v6248_v18, %v6247_v21  ;;  %v1324_v1 = vpop.f32.mrb[55].mxu0 }
 0x365   :  { %6876 = vtanh.f32 %v1380_v17  ;;  %v1381_v34 = vadd.f32 %v8044_v24, %v1324_v1  ;;  %v1418_v8 = vpack.c.bf16 %v1324_v1, %v1321_v23 }
 0x366   :  { %v8057_v36 = vpop.eup %6866  ;;  %6878 = vtanh.f32 %v1383_v0  ;;  %v1458_v2 = vsel %vm10298_vm4, %v1419_v3, 0 }
 0x367   :  { %v6869_v33 = vpop.eup %6868  ;;  %6880 = vtanh.f32 %v1381_v34 }
 0x368   :  { %v8060_v12 = vpop.eup %6870  ;;  %6260 = vmatpush3.bf16.xpose.msra.mxu1 %v1452_v58 }
 0x369   :  { %v6873_v51 = vpop.eup %6872  ;;  %6771 = vmatprep.subr.msk.bf16.mxu1 %vm10298_vm4, %v1418_v8  ;;  %v6251_v21 = vpop.f32.mrb[56].mxu0 }
 0x36a   :  { %v1408_v17 = vpack.c.bf16 %v6873_v51, %v6869_v33  ;;  %v1386_v23 = vadd.f32 %v6251_v21, %v8044_v24  ;;  %v1337_v18 = vpop.f32.mrb[57].mxu0  ;;  %v1455_v33 = vsel %vm10298_vm4, %v1418_v8, 0 }
 0x36b   :  { %v1384_v0 = vadd.f32 %v8044_v24, %v1337_v18  ;;  %v6252_v1 = vpop.f32.mrb[58].mxu0 }
 0x36c   :  { %6273 = vmatprep.mubr.msk.bf16.mxu1 %vm10298_vm4, %v1408_v17  ;;  %6882 = vtanh.f32 %v1386_v23  ;;  %v1387_v22 = vadd.f32 %v6252_v1, %v8044_v24  ;;  %v1421_v34 = vpack.c.bf16 %v6252_v1, %v6251_v21  ;;  %v1340_v58 = vpop.f32.mrb[59].mxu0 }
 0x36d   :  { %6884 = vtanh.f32 %v1384_v0  ;;  %v1385_v53 = vadd.f32 %v8044_v24, %v1340_v58  ;;  %v1420_v50 = vpack.c.bf16 %v1340_v58, %v1337_v18 }
 0x36e   :  { %v8070_v60 = vpop.eup %6874  ;;  %6886 = vtanh.f32 %v1387_v22 }
 0x36f   :  { %v8072_v51 = vpop.eup %6876  ;;  %6888 = vtanh.f32 %v1385_v53 }
 0x370   :  { %v8075_v6 = vpop.eup %6878  ;;  %6262 = vmatpush3.bf16.xpose.msra.mxu1 %v1455_v33 }
 0x371   :  { %v8077_v17 = vpop.eup %6880  ;;  %6772 = vmatprep.subr.msk.bf16.mxu1 %vm10298_vm4, %v1419_v3  ;;  %v6255_v21 = vpop.f32.mrb[60].mxu0 }
 0x372   :  { %v1390_v18 = vadd.f32 %v6255_v21, %v8044_v24  ;;  %v1353_v0 = vpop.f32.mrb[61].mxu0  ;;  %v1410_v1 = vpack.c.bf16 %v8077_v17, %v8072_v51 }
 0x373   :  { %v1388_v8 = vadd.f32 %v8044_v24, %v1353_v0  ;;  %v6256_v53 = vpop.f32.mrb[62].mxu0 }
 0x374   :  { %6890 = vtanh.f32 %v1390_v18  ;;  %v1391_v22 = vadd.f32 %v6256_v53, %v8044_v24  ;;  %v1423_v58 = vpack.c.bf16 %v6256_v53, %v6255_v21  ;;  %v1356_v33 = vpop.f32.mrb[63].mxu0  ;;  %v5403_v21 = vld [vmem:[%s10249_s1 + $0xe0] sm:$0xff] }
 0x375   :  { %6892 = vtanh.f32 %v1388_v8  ;;  %v1389_v48 = vadd.f32 %v8044_v24, %v1356_v33  ;;  %v1422_v29 = vpack.c.bf16 %v1356_v33, %v1353_v0  ;;  %v1461_v8 = vsel %vm10298_vm4, %v1420_v50, 0  ;;  %v5400_v33 = vld [vmem:[%s10249_s1 + $0xc8] sm:$0xff] }
 0x376   :  { %v8088_v16 = vpop.eup %6882  ;;  %6894 = vtanh.f32 %v1391_v22  ;;  %v5399_v22 = vld [vmem:[%s10249_s1 + $0xc0] sm:$0xff] }
 0x377   :  { %v8090_v23 = vpop.eup %6884  ;;  %6896 = vtanh.f32 %v1389_v48 }
 0x378   :  { %v8093_v51 = vpop.eup %6886  ;;  %6264 = vmatpush3.bf16.xpose.msra.mxu1 %v1458_v2 }
 0x379   :  { %v6889_v17 = vpop.eup %6888  ;;  %6773 = vmatprep.subr.msk.bf16.mxu1 %vm10298_vm4, %v1420_v50  ;;  %v1467_v50 = vsel %vm10298_vm4, %v1422_v29, 0 }
 0x37a   :  { %v1412_v24 = vpack.c.bf16 %v6889_v17, %v8090_v23  ;;  %v1464_v23 = vsel %vm10298_vm4, %v1421_v34, 0  ;;  %v1847_v17 = vpack.c.bf16 %v5400_v33, %v5399_v22  ;;  %v5402_v22 = vld [vmem:[%s10249_s1 + $0xd8] sm:$0xff] }
 0x37e   :  { %v8099_v18 = vpop.eup %6890 }
 0x37f   :  { %v8101_v0 = vpop.eup %6892 }
 0x380   :  { %v8104_v53 = vpop.eup %6894  ;;  %6266 = vmatpush3.bf16.xpose.msra.mxu1 %v1461_v8  ;;  %v1470_v8 = vsel %vm10298_vm4, %v1423_v58, 0 }
 0x381   :  { %v8106_v48 = vpop.eup %6896  ;;  %6774 = vmatprep.subr.msk.bf16.mxu1 %vm10298_vm4, %v1421_v34 }
 0x388   :  { %6268 = vmatpush3.bf16.xpose.msra.mxu1 %v1464_v23 }
 0x389   :  { %6775 = vmatprep.subr.msk.bf16.mxu1 %vm10298_vm4, %v1422_v29 }
 0x390   :  { %6270 = vmatpush3.bf16.xpose.msra.mxu1 %v1467_v50  ;;  %v5401_v50 = vld [vmem:[%s10249_s1 + $0xd0] sm:$0xff] }
 0x391   :  { %6776 = vmatprep.subr.msk.bf16.mxu1 %vm10298_vm4, %v1423_v58  ;;  %v1848_v3 = vpack.c.bf16 %v5402_v22, %v5401_v50 }
 0x398   :  { %6272 = vmatpush3.bf16.xpose.msra.mxu1 %v1470_v8 }
 0x399   :  { %v8124_v34 = vpop.f32.mrb[64].mxu0  ;;  %6321 = vmatprep.subr.bf16.mxu1 %v1847_v17 }
 0x39a   :  { %v8128_v29 = vadd.f32 %v8124_v34, %v7770_v11  ;;  %v8130_v23 = vpop.f32.mrb[65].mxu0 }
 0x39b   :  { %v8140_v58 = vadd.f32 %v8130_v23, %v7776_v39  ;;  %v8142_v33 = vpop.f32.mrb[66].mxu0  ;;  %v5404_v39 = vld [vmem:[%s10249_s1 + $0xe8] sm:$0xff] }
 0x39c   :  { %v8146_v11 = vadd.f32 %v8142_v33, %v7782_v28  ;;  %v8148_v8 = vpop.f32.mrb[67].mxu0 }
 0x39d   :  { %10359 = vst [vmem:[#allocation21_spill] sm:$0xff] %v8140_v58  ;;  %v8152_v2 = vadd.f32 %v8148_v8, %v7788_v15  ;;  %v10361_v58 = vpack.c.bf16 %v8060_v12, %v8057_v36  ;;  %v1849_v15 = vpack.c.bf16 %v5404_v39, %v5403_v21  ;;  %v5406_v12 = vld [vmem:[%s10249_s1 + $0xf8] sm:$0xff]  ;;  %v10362_v39 = vpack.c.bf16 %v8075_v6, %v8070_v60  ;;  %v10372_v6 = vld [vmem:[#allocation8_spill] sm:$0xff] }
 0x39f   :  { %10360 = vst [vmem:[#allocation22_spill] sm:$0xff] %v8152_v2  ;;  %6274 = vmatmul.mubr.msk.bf16.vlgmr.msra.gmra.mrb[48].mxu1 %vm10298_vm4, %v10361_v58  ;;  %v5405_v2 = vld [vmem:[%s10249_s1 + $0xf0] sm:$0xff] }
 0x3a0   :  { %6277 = vmatprep.mubr.msk.bf16.mxu1 %vm10298_vm4, %v1410_v1  ;;  %6322 = vmatpush3.bf16.msra.mxu1 %v1847_v17  ;;  %v8194_v17 = vld [vmem:[%s10251_s4 + $0x3] ss:$0 sm:$0xff] }
 0x3a1   :  { %v8165_v28 = vpop.f32.mrb[68].mxu0  ;;  %6323 = vmatprep.subr.bf16.mxu1 %v1848_v3  ;;  %vm2217_vm2 = vcmp.eq.s32.totalorder %v8194_v17, %v7298_v37  ;;  %vm2218_vm3 = vcmp.eq.s32.totalorder %v8194_v17, %v7301_v38  ;;  %vm2219_vm6 = vcmp.eq.s32.totalorder %v8194_v17, %v7311_v41  ;;  %vm2220_vm7 = vcmp.eq.s32.totalorder %v8194_v17, %v7314_v42 }
 0x3a2   :  { %v8169_v50 = vadd.f32 %v8165_v28, %v7850_v4  ;;  %v8171_v22 = vpop.f32.mrb[69].mxu0  ;;  %vm8217_vm5 = vmpackc.low %vm2218_vm3, %vm2217_vm2  ;;  %vm2221_vm9 = vcmp.eq.s32.totalorder %v8194_v17, %v7321_v43  ;;  %vm2222_vm10 = vcmp.eq.s32.totalorder %v8194_v17, %v7324_v44  ;;  %vm2223_vm12 = vcmp.eq.s32.totalorder %v8194_v17, %v7331_v45 }
 0x3a3   :  { %v8181_v36 = vadd.f32 %v8171_v22, %v7859_v56  ;;  %v8183_v1 = vpop.f32.mrb[70].mxu0  ;;  %v1850_v56 = vpack.c.bf16 %v5406_v12, %v5405_v2  ;;  %vm5463_vm8 = vmpackc.low %vm2220_vm7, %vm2219_vm6  ;;  %vm2224_vm13 = vcmp.eq.s32.totalorder %v8194_v17, %v7334_v46  ;;  %vm2225_vm2 = vcmp.eq.s32.totalorder %v8194_v17, %v7341_v47 }
 0x3a4   :  { %v8187_v4 = vadd.f32 %v8183_v1, %v7865_v59  ;;  %v8189_v21 = vpop.f32.mrb[71].mxu0  ;;  %6324 = vmatpush3.bf16.msra.mxu1 %v1848_v3  ;;  %vm5465_vm11 = vmpackc.low %vm2222_vm10, %vm2221_vm9  ;;  %vm2229_vm10 = vcmp.eq.s32.totalorder %v8194_v17, %v10372_v6 }
 0x3a5   :  { %v8198_v58 = vadd.f32 %v8189_v21, %v7875_v5  ;;  %6325 = vmatprep.subr.bf16.mxu1 %v1849_v15  ;;  %vm5467_vm14 = vmpackc.low %vm2224_vm13, %vm2223_vm12 }
 0x3a7   :  { %6278 = vmatmul.mubr.msk.bf16.gmra.mrb[52].mxu1 %vm10298_vm4, %v10362_v39 }
 0x3a8   :  { %6281 = vmatprep.mubr.msk.bf16.mxu1 %vm10298_vm4, %v1412_v24  ;;  %6326 = vmatpush3.bf16.msra.mxu1 %v1849_v15 }
 0x3a9   :  { %v8209_v59 = vpop.f32.mrb[72].mxu0  ;;  %6327 = vmatprep.subr.bf16.mxu1 %v1850_v56 }
 0x3aa   :  { %v8213_v5 = vadd.f32 %v8209_v59, %v7884_v7  ;;  %v8215_v2 = vpop.f32.mrb[73].mxu0 }
 0x3ab   :  { %v8223_v60 = vadd.f32 %v8215_v2, %v7891_v30  ;;  %v8225_v3 = vpop.f32.mrb[74].mxu0  ;;  %v10365_v30 = vpack.c.bf16 %v8093_v51, %v8088_v16 }
 0x3ac   :  { %v8229_v24 = vadd.f32 %v8225_v3, %v7897_v55  ;;  %v8231_v15 = vpop.f32.mrb[75].mxu0  ;;  %6328 = vmatpush3.bf16.msra.mxu1 %v1850_v56  ;;  %v10366_v55 = vpack.c.bf16 %v8106_v48, %v8101_v0 }
 0x3ad   :  { %v8235_v7 = vadd.f32 %v8231_v15, %v7907_v9  ;;  %6377 = vmatprep.subr.msk.bf16.mxu1 %vm8217_vm5, %v10330_v57 }
 0x3af   :  { %6282 = vmatmul.mubr.msk.bf16.gmra.mrb[56].mxu1 %vm10298_vm4, %v10365_v30  ;;  %v10373_v30 = vld [vmem:[#allocation9_spill] sm:$0xff] }
 0x3b0   :  { %6285 = vmatprep.mubr.msk.bf16.mxu1 %vm10298_vm4, %v10366_v55  ;;  %v10374_v55 = vld [vmem:[#allocation10_spill] sm:$0xff] }
 0x3b1   :  { %v8248_v12 = vpop.f32.mrb[76].mxu0  ;;  %vm2231_vm13 = vcmp.eq.s32.totalorder %v8194_v17, %v10374_v55 }
 0x3b2   :  { %v8252_v9 = vadd.f32 %v8248_v12, %v7914_v13  ;;  %v8254_v56 = vpop.f32.mrb[77].mxu0  ;;  %v10367_v13 = vpack.c.bf16 %v8104_v53, %v8099_v18  ;;  %v10370_v18 = vld [vmem:[#allocation6_spill] sm:$0xff]  ;;  %v10371_v53 = vld [vmem:[#allocation7_spill] sm:$0xff] }
 0x3b3   :  { %v8258_v39 = vadd.f32 %v8254_v56, %v7921_v61  ;;  %v8260_v16 = vpop.f32.mrb[78].mxu0  ;;  %v5426_v61 = vld [vmem:[%s10252_s3 + $0x3] ss:$0 sm:$0xff]  ;;  %vm2227_vm7 = vcmp.eq.s32.totalorder %v8194_v17, %v10370_v18 }
 0x3b4   :  { %v8264_v51 = vadd.f32 %v8260_v16, %v7927_v14  ;;  %v8266_v0 = vpop.f32.mrb[79].mxu0  ;;  %vm2155_vm15 = vcmp.eq.s32.totalorder %v5426_v61, %v7298_v37  ;;  %vm2156_vm1 = vcmp.eq.s32.totalorder %v5426_v61, %v7301_v38  ;;  %v10368_v14 = vld [vmem:[#allocation5_spill] sm:$0xff] }
 0x3b5   :  { %v8270_v48 = vadd.f32 %v8266_v0, %v7937_v62  ;;  %vm2226_vm3 = vcmp.eq.s32.totalorder %v8194_v17, %v10368_v14  ;;  %v10369_v62 = vld [vmem:[#allocation3_spill] sm:$0xff] }
 0x3b6   :  { %vm5469_vm6 = vmpackc.low %vm2226_vm3, %vm2225_vm2  ;;  %vm2158_vm2 = vcmp.eq.s32.totalorder %v5426_v61, %v7314_v42  ;;  %vm2159_vm3 = vcmp.eq.s32.totalorder %v5426_v61, %v7321_v43 }
 0x3b7   :  { %6286 = vmatmul.mubr.msk.bf16.gmra.mrb[60].mxu1 %vm10298_vm4, %v10367_v13  ;;  %v10375_v13 = vld [vmem:[#allocation11_spill] sm:$0xff] }
 0x3b8   :  { %6329 = vmatprep.mubr.msk.bf16.mxu1 %vm10299_vm0, %v7218_v10 }
 0x3bf   :  { %6330 = vmatmul.mubr.msk.bf16.vlgmr.msra.gmra.mrb[64].mxu1 %vm10299_vm0, %v7240_v19 }
 0x3c0   :  { %6378 = vmatpush3.bf16.xpose.msk.msra.mxu1 %vm8217_vm5, %v10330_v57  ;;  %6333 = vmatprep.mubr.msk.bf16.mxu1 %vm10299_vm0, %v7242_v20  ;;  %vm5477_vm5 = vmpackc.low %vm2156_vm1, %vm2155_vm15  ;;  %vm2157_vm1 = vcmp.eq.s32.totalorder %v5426_v61, %v7311_v41 }
 0x3c1   :  { %6379 = vmatprep.subr.msk.bf16.mxu1 %vm5463_vm8, %v10330_v57 }
 0x3c7   :  { %6334 = vmatmul.mubr.msk.bf16.gmra.mrb[68].mxu1 %vm10299_vm0, %v7260_v25 }
 0x3c8   :  { %6380 = vmatpush3.bf16.xpose.msk.msra.mxu1 %vm5463_vm8, %v10330_v57  ;;  %6337 = vmatprep.mubr.msk.bf16.mxu1 %vm10299_vm0, %v7262_v26  ;;  %vm2228_vm8 = vcmp.eq.s32.totalorder %v8194_v17, %v10371_v53 }
 0x3c9   :  { %6381 = vmatprep.subr.msk.bf16.mxu1 %vm5465_vm11, %v10330_v57  ;;  %vm5471_vm9 = vmpackc.low %vm2228_vm8, %vm2227_vm7  ;;  %vm2161_vm8 = vcmp.eq.s32.totalorder %v5426_v61, %v7331_v45 }
 0x3cf   :  { %6338 = vmatmul.mubr.msk.bf16.gmra.mrb[72].mxu1 %vm10299_vm0, %v7280_v31 }
 0x3d0   :  { %6382 = vmatpush3.bf16.xpose.msk.msra.mxu1 %vm5465_vm11, %v10330_v57  ;;  %6341 = vmatprep.mubr.msk.bf16.mxu1 %vm10299_vm0, %v7282_v32  ;;  %vm2230_vm11 = vcmp.eq.s32.totalorder %v8194_v17, %v10373_v30 }
 0x3d1   :  { %6383 = vmatprep.subr.msk.bf16.mxu1 %vm5467_vm14, %v10330_v57  ;;  %vm5473_vm12 = vmpackc.low %vm2230_vm11, %vm2229_vm10  ;;  %vm2163_vm10 = vcmp.eq.s32.totalorder %v5426_v61, %v7341_v47  ;;  %vm2164_vm11 = vcmp.eq.s32.totalorder %v5426_v61, %v10368_v14 }
 0x3d7   :  { %6342 = vmatmul.mubr.msk.bf16.gmra.mrb[76].mxu1 %vm10299_vm0, %v10369_v62 }
 0x3d8   :  { %6384 = vmatpush3.bf16.xpose.msk.msra.mxu1 %vm5467_vm14, %v10330_v57  ;;  %6393 = vmatprep.mubr.msk.bf16.mxu1 %vm5477_vm5, %v10330_v57  ;;  %vm2232_vm14 = vcmp.eq.s32.totalorder %v8194_v17, %v10375_v13  ;;  %vm2160_vm5 = vcmp.eq.s32.totalorder %v5426_v61, %v7324_v44 }
 0x3d9   :  { %6385 = vmatprep.subr.msk.bf16.mxu1 %vm5469_vm6, %v10330_v57  ;;  %vm5475_vm15 = vmpackc.low %vm2232_vm14, %vm2231_vm13  ;;  %vm2165_vm14 = vcmp.eq.s32.totalorder %v5426_v61, %v10370_v18 }
 0x3da   :  { %vm5481_vm7 = vmpackc.low %vm2160_vm5, %vm2159_vm3 }
 0x3db   :  { %vm5485_vm13 = vmpackc.low %vm2164_vm11, %vm2163_vm10 }
 0x3e0   :  { %6386 = vmatpush3.bf16.xpose.msk.msra.mxu1 %vm5469_vm6, %v10330_v57  ;;  %vm5479_vm6 = vmpackc.low %vm2158_vm2, %vm2157_vm1  ;;  %vm2167_vm1 = vcmp.eq.s32.totalorder %v5426_v61, %v10372_v6  ;;  %vm2168_vm2 = vcmp.eq.s32.totalorder %v5426_v61, %v10373_v30 }
 0x3e1   :  { %6387 = vmatprep.subr.msk.bf16.mxu1 %vm5471_vm9, %v10330_v57  ;;  %vm5489_vm5 = vmpackc.low %vm2168_vm2, %vm2167_vm1 }
 0x3e8   :  { %6388 = vmatpush3.bf16.xpose.msk.msra.mxu1 %vm5471_vm9, %v10330_v57  ;;  %vm2162_vm9 = vcmp.eq.s32.totalorder %v5426_v61, %v7334_v46 }
 0x3e9   :  { %6389 = vmatprep.subr.msk.bf16.mxu1 %vm5473_vm12, %v10330_v57 }
 0x3f0   :  { %6390 = vmatpush3.bf16.xpose.msk.msra.mxu1 %vm5473_vm12, %v10330_v57  ;;  %vm5483_vm12 = vmpackc.low %vm2162_vm9, %vm2161_vm8 }
 0x3f1   :  { %6391 = vmatprep.subr.msk.bf16.mxu1 %vm5475_vm15, %v10330_v57 }
 0x3f8   :  { %6392 = vmatpush3.bf16.xpose.msk.msra.mxu1 %vm5475_vm15, %v10330_v57  ;;  %vm2166_vm15 = vcmp.eq.s32.totalorder %v5426_v61, %v10371_v53 }
 0x3f9   :  { %vm5487_vm3 = vmpackc.low %vm2166_vm15, %vm2165_vm14 }
 0x3ff   :  { %6394 = vmatmul.mubr.msk.bf16.vlgmr.msra.gmra.mrb[80].mxu1 %vm5479_vm6, %v10330_v57  ;;  %vm2169_vm6 = vcmp.eq.s32.totalorder %v5426_v61, %v10374_v55 }
 0x400   :  { %6397 = vmatprep.mubr.msk.bf16.mxu1 %vm5481_vm7, %v10330_v57  ;;  %vm2170_vm7 = vcmp.eq.s32.totalorder %v5426_v61, %v10375_v13 }
 0x401   :  { %vm5491_vm8 = vmpackc.low %vm2170_vm7, %vm2169_vm6 }
 0x407   :  { %6398 = vmatmul.mubr.msk.bf16.gmra.mrb[84].mxu1 %vm5483_vm12, %v10330_v57 }
 0x408   :  { %6401 = vmatprep.mubr.msk.bf16.mxu1 %vm5485_vm13, %v10330_v57 }
 0x40f   :  { %6402 = vmatmul.mubr.msk.bf16.gmra.mrb[88].mxu1 %vm5487_vm3, %v10330_v57 }
 0x410   :  { %6405 = vmatprep.mubr.msk.bf16.mxu1 %vm5489_vm5, %v10330_v57 }
 0x417   :  { %6406 = vmatmul.mubr.msk.bf16.gmra.mrb[92].mxu1 %vm5491_vm8, %v10330_v57 }
 0x472   :  { %v6275_v17 = vpop.f32.mrb[48].mxu1 }
 0x473   :  { %v1792_v53 = vmul.f32 %v8124_v34, %v6275_v17  ;;  %v1506_v18 = vpop.f32.mrb[49].mxu1 }
 0x474   :  { %v1790_v6 = vmul.f32 %v8130_v23, %v1506_v18  ;;  %v6276_v30 = vpop.f32.mrb[50].mxu1 }
 0x475   :  { %v8367_v62 = vadd.f32 %v1792_v53, %v7980_v52  ;;  %v1793_v14 = vmul.f32 %v8142_v33, %v6276_v30  ;;  %v1509_v47 = vpop.f32.mrb[51].mxu1 }
 0x476   :  { %v8371_v55 = vadd.f32 %v1790_v6, %v7984_v49  ;;  %v1791_v61 = vmul.f32 %v8148_v8, %v1509_v47  ;;  %v10376_v8 = vld [vmem:[#allocation12_spill] sm:$0xff] }
 0x477   :  { %v8375_v13 = vadd.f32 %v1793_v14, %v7988_v35 }
 0x478   :  { %v8378_v34 = vadd.f32 %v1791_v61, %v7991_v27 }
 0x47a   :  { %v6279_v17 = vpop.f32.mrb[52].mxu1 }
 0x47b   :  { %v1796_v23 = vmul.f32 %v8165_v28, %v6279_v17  ;;  %v1522_v18 = vpop.f32.mrb[53].mxu1 }
 0x47c   :  { %v1794_v52 = vmul.f32 %v8171_v22, %v1522_v18  ;;  %v6280_v53 = vpop.f32.mrb[54].mxu1 }
 0x47d   :  { %v8383_v33 = vadd.f32 %v1796_v23, %v7996_v63  ;;  %v1797_v49 = vmul.f32 %v8183_v1, %v6280_v53  ;;  %v1525_v6 = vpop.f32.mrb[55].mxu1  ;;  %v10377_v1 = vld [vmem:[#allocation13_spill] sm:$0xff] }
 0x47e   :  { %v8387_v47 = vadd.f32 %v1794_v52, %v8000_v40  ;;  %v1795_v35 = vmul.f32 %v8189_v21, %v1525_v6  ;;  %v10378_v21 = vld [vmem:[#allocation14_spill] sm:$0xff]  ;;  %v10380_v52 = vld [vmem:[#allocation15_spill] sm:$0xff] }
 0x47f   :  { %v8391_v27 = vadd.f32 %v1797_v49, %v8004_v54  ;;  %v10382_v49 = vld [vmem:[#allocation16_spill] sm:$0xff] }
 0x480   :  { %v8394_v28 = vadd.f32 %v1795_v35, %v10376_v8 }
 0x482   :  { %v6283_v14 = vpop.f32.mrb[56].mxu1 }
 0x483   :  { %v1800_v22 = vmul.f32 %v8209_v59, %v6283_v14  ;;  %v1538_v30 = vpop.f32.mrb[57].mxu1 }
 0x484   :  { %v1798_v63 = vmul.f32 %v8215_v2, %v1538_v30  ;;  %v6284_v61 = vpop.f32.mrb[58].mxu1 }
 0x485   :  { %v8399_v17 = vadd.f32 %v1800_v22, %v10377_v1  ;;  %v1801_v40 = vmul.f32 %v8225_v3, %v6284_v61  ;;  %v1541_v23 = vpop.f32.mrb[59].mxu1  ;;  %v10384_v3 = vld [vmem:[#allocation17_spill] sm:$0xff] }
 0x486   :  { %v8403_v18 = vadd.f32 %v1798_v63, %v10378_v21  ;;  %v1799_v54 = vmul.f32 %v8231_v15, %v1541_v23  ;;  %v10386_v15 = vld [vmem:[#allocation18_spill] sm:$0xff]  ;;  %v10390_v21 = vld [vmem:[#allocation20_spill] sm:$0xff] }
 0x487   :  { %v8407_v53 = vadd.f32 %v1801_v40, %v10380_v52  ;;  %v10388_v40 = vld [vmem:[#allocation19_spill] sm:$0xff] }
 0x488   :  { %10379 = vst [vmem:[#allocation23_spill] sm:$0xff] %v8403_v18  ;;  %v8410_v59 = vadd.f32 %v1799_v54, %v10382_v49  ;;  %v5497_v18 = vld [vmem:[%s10249_s1 + $0x120] sm:$0xff] }
 0x489   :  { %10381 = vst [vmem:[#allocation24_spill] sm:$0xff] %v8407_v53 }
 0x48a   :  { %10383 = vst [vmem:[#allocation25_spill] sm:$0xff] %v8410_v59  ;;  %v6287_v6 = vpop.f32.mrb[60].mxu1 }
 0x48b   :  { %v1804_v2 = vmul.f32 %v8248_v12, %v6287_v6  ;;  %v1554_v35 = vpop.f32.mrb[61].mxu1 }
 0x48c   :  { %v1802_v8 = vmul.f32 %v8254_v56, %v1554_v35  ;;  %v6288_v14 = vpop.f32.mrb[62].mxu1  ;;  %v8431_v56 = vld [vmem:[%s10253_s2 + $0x3] ss:$0 sm:$0xff] }
 0x48d   :  { %v8415_v22 = vadd.f32 %v1804_v2, %v10384_v3  ;;  %v1805_v30 = vmul.f32 %v8260_v16, %v6288_v14  ;;  %v1557_v63 = vpop.f32.mrb[63].mxu1 }
 0x48e   :  { %v8419_v61 = vadd.f32 %v1802_v8, %v10386_v15  ;;  %v1803_v1 = vmul.f32 %v8266_v0, %v1557_v63 }
 0x48f   :  { %10385 = vst [vmem:[#allocation26_spill] sm:$0xff] %v8415_v22  ;;  %v8423_v23 = vadd.f32 %v1805_v30, %v10388_v40 }
 0x490   :  { %10387 = vst [vmem:[#allocation27_spill] sm:$0xff] %v8419_v61  ;;  %v8426_v12 = vadd.f32 %v1803_v1, %v10390_v21 }
 0x491   :  { %10389 = vst [vmem:[#allocation28_spill] sm:$0xff] %v8423_v23 }
 0x492   :  { %10391 = vst [vmem:[#allocation12_spill] sm:$0xff] %v8426_v12  ;;  %v6331_v54 = vpop.f32.mrb[64].mxu1 }
 0x493   :  { %v1958_v16 = vadd.f32 %v6331_v54, %v8431_v56  ;;  %v1885_v52 = vpop.f32.mrb[65].mxu1 }
 0x494   :  { %v1956_v49 = vadd.f32 %v8431_v56, %v1885_v52  ;;  %v6332_v6 = vpop.f32.mrb[66].mxu1 }
 0x495   :  { %6898 = vtanh.f32 %v1958_v16  ;;  %v1959_v0 = vadd.f32 %v6332_v6, %v8431_v56  ;;  %v1997_v2 = vpack.c.bf16 %v6332_v6, %v6331_v54  ;;  %v1888_v35 = vpop.f32.mrb[67].mxu1 }
 0x496   :  { %6900 = vtanh.f32 %v1956_v49  ;;  %v1957_v8 = vadd.f32 %v8431_v56, %v1888_v35  ;;  %v1996_v14 = vpack.c.bf16 %v1888_v35, %v1885_v52 }
 0x497   :  { %6902 = vtanh.f32 %v1959_v0  ;;  %v2032_v35 = vsel %vm10298_vm4, %v1997_v2, 0 }
 0x498   :  { %6904 = vtanh.f32 %v1957_v8  ;;  %6777 = vmatprep.subr.msk.bf16.mxu0 %vm10298_vm4, %v1996_v14  ;;  %v2029_v3 = vsel %vm10298_vm4, %v1996_v14, 0 }
 0x499   :  { %6346 = vmatpush3.bf16.xpose.msra.mxu0 %v2029_v3 }
 0x49a   :  { %6778 = vmatprep.subr.msk.bf16.mxu0 %vm10298_vm4, %v1997_v2  ;;  %v6335_v30 = vpop.f32.mrb[68].mxu1 }
 0x49b   :  { %v1962_v63 = vadd.f32 %v6335_v30, %v8431_v56  ;;  %v1901_v15 = vpop.f32.mrb[69].mxu1 }
 0x49c   :  { %v1960_v1 = vadd.f32 %v8431_v56, %v1901_v15  ;;  %v6336_v40 = vpop.f32.mrb[70].mxu1 }
 0x49d   :  { %6906 = vtanh.f32 %v1962_v63  ;;  %v1963_v21 = vadd.f32 %v6336_v40, %v8431_v56  ;;  %v1999_v54 = vpack.c.bf16 %v6336_v40, %v6335_v30  ;;  %v1904_v16 = vpop.f32.mrb[71].mxu1 }
 0x49e   :  { %6908 = vtanh.f32 %v1960_v1  ;;  %v1961_v52 = vadd.f32 %v8431_v56, %v1904_v16  ;;  %v1998_v49 = vpack.c.bf16 %v1904_v16, %v1901_v15 }
 0x49f   :  { %v8444_v6 = vpop.eup %6898  ;;  %6910 = vtanh.f32 %v1963_v21  ;;  %v2038_v53 = vsel %vm10298_vm4, %v1999_v54, 0 }
 0x4a0   :  { %v6901_v0 = vpop.eup %6900  ;;  %6912 = vtanh.f32 %v1961_v52 }
 0x4a1   :  { %v8447_v8 = vpop.eup %6902  ;;  %6348 = vmatpush3.bf16.xpose.msra.mxu0 %v2032_v35 }
 0x4a2   :  { %v6905_v14 = vpop.eup %6904  ;;  %6779 = vmatprep.subr.msk.bf16.mxu0 %vm10298_vm4, %v1998_v49  ;;  %v6339_v30 = vpop.f32.mrb[72].mxu1 }
 0x4a3   :  { %v1988_v63 = vpack.c.bf16 %v6905_v14, %v6901_v0  ;;  %v1966_v15 = vadd.f32 %v6339_v30, %v8431_v56  ;;  %v1917_v1 = vpop.f32.mrb[73].mxu1  ;;  %v2035_v14 = vsel %vm10298_vm4, %v1998_v49, 0 }
 0x4a4   :  { %v1964_v40 = vadd.f32 %v8431_v56, %v1917_v1  ;;  %v6340_v21 = vpop.f32.mrb[74].mxu1 }
 0x4a5   :  { %6361 = vmatprep.mubr.msk.bf16.mxu0 %vm10298_vm4, %v1988_v63  ;;  %6914 = vtanh.f32 %v1966_v15  ;;  %v1967_v2 = vadd.f32 %v6340_v21, %v8431_v56  ;;  %v2001_v16 = vpack.c.bf16 %v6340_v21, %v6339_v30  ;;  %v1920_v52 = vpop.f32.mrb[75].mxu1 }
 0x4a6   :  { %6916 = vtanh.f32 %v1964_v40  ;;  %v1965_v35 = vadd.f32 %v8431_v56, %v1920_v52  ;;  %v2000_v3 = vpack.c.bf16 %v1920_v52, %v1917_v1 }
 0x4a7   :  { %v8457_v12 = vpop.eup %6906  ;;  %6918 = vtanh.f32 %v1967_v2 }
 0x4a8   :  { %v8459_v0 = vpop.eup %6908  ;;  %6920 = vtanh.f32 %v1965_v35 }
 0x4a9   :  { %v8462_v23 = vpop.eup %6910  ;;  %6350 = vmatpush3.bf16.xpose.msra.mxu0 %v2035_v14 }
 0x4aa   :  { %v8464_v63 = vpop.eup %6912  ;;  %6780 = vmatprep.subr.msk.bf16.mxu0 %vm10298_vm4, %v1999_v54  ;;  %v6343_v30 = vpop.f32.mrb[76].mxu1  ;;  %v10395_v54 = vld [vmem:[#allocation22_spill] sm:$0xff] }
 0x4ab   :  { %v1970_v1 = vadd.f32 %v6343_v30, %v8431_v56  ;;  %v1933_v40 = vpop.f32.mrb[77].mxu1  ;;  %v1990_v21 = vpack.c.bf16 %v8464_v63, %v8459_v0 }
 0x4ac   :  { %v1968_v49 = vadd.f32 %v8431_v56, %v1933_v40  ;;  %v6344_v2 = vpop.f32.mrb[78].mxu1 }
 0x4ad   :  { %6922 = vtanh.f32 %v1970_v1  ;;  %v1971_v52 = vadd.f32 %v6344_v2, %v8431_v56  ;;  %v2003_v35 = vpack.c.bf16 %v6344_v2, %v6343_v30  ;;  %v1936_v14 = vpop.f32.mrb[79].mxu1 }
 0x4ae   :  { %6924 = vtanh.f32 %v1968_v49  ;;  %v1969_v61 = vadd.f32 %v8431_v56, %v1936_v14  ;;  %v2002_v22 = vpack.c.bf16 %v1936_v14, %v1933_v40  ;;  %v2041_v49 = vsel %vm10298_vm4, %v2000_v3, 0  ;;  %v5494_v14 = vld [vmem:[%s10249_s1 + $0x108] sm:$0xff] }
 0x4af   :  { %v8475_v59 = vpop.eup %6914  ;;  %6926 = vtanh.f32 %v1971_v52  ;;  %v5493_v52 = vld [vmem:[%s10249_s1 + $0x100] sm:$0xff] }
 0x4b0   :  { %v8477_v15 = vpop.eup %6916  ;;  %6928 = vtanh.f32 %v1969_v61 }
 0x4b1   :  { %v8480_v0 = vpop.eup %6918  ;;  %6352 = vmatpush3.bf16.xpose.msra.mxu0 %v2038_v53 }
 0x4b2   :  { %v6921_v63 = vpop.eup %6920  ;;  %6781 = vmatprep.subr.msk.bf16.mxu0 %vm10298_vm4, %v2000_v3  ;;  %v2047_v3 = vsel %vm10298_vm4, %v2002_v22, 0 }
 0x4b3   :  { %v1992_v56 = vpack.c.bf16 %v6921_v63, %v8477_v15  ;;  %v2044_v15 = vsel %vm10298_vm4, %v2001_v16, 0  ;;  %v2427_v63 = vpack.c.bf16 %v5494_v14, %v5493_v52  ;;  %v5496_v52 = vld [vmem:[%s10249_s1 + $0x118] sm:$0xff] }
 0x4b4   :  { %v10393_v14 = vld [vmem:[#allocation21_spill] sm:$0xff] }
 0x4b7   :  { %v8486_v1 = vpop.eup %6922 }
 0x4b8   :  { %v8488_v40 = vpop.eup %6924 }
 0x4b9   :  { %v8491_v2 = vpop.eup %6926  ;;  %6354 = vmatpush3.bf16.xpose.msra.mxu0 %v2041_v49  ;;  %v2050_v49 = vsel %vm10298_vm4, %v2003_v35, 0 }
 0x4ba   :  { %v8493_v61 = vpop.eup %6928  ;;  %6782 = vmatprep.subr.msk.bf16.mxu0 %vm10298_vm4, %v2001_v16 }
 0x4c1   :  { %6356 = vmatpush3.bf16.xpose.msra.mxu0 %v2044_v15 }
 0x4c2   :  { %6783 = vmatprep.subr.msk.bf16.mxu0 %vm10298_vm4, %v2002_v22 }
 0x4c9   :  { %6358 = vmatpush3.bf16.xpose.msra.mxu0 %v2047_v3  ;;  %v5495_v3 = vld [vmem:[%s10249_s1 + $0x110] sm:$0xff] }
 0x4ca   :  { %6784 = vmatprep.subr.msk.bf16.mxu0 %vm10298_vm4, %v2003_v35 }
 0x4d1   :  { %6360 = vmatpush3.bf16.xpose.msra.mxu0 %v2050_v49 }
 0x4d2   :  { %v8511_v16 = vpop.f32.mrb[80].mxu1  ;;  %6409 = vmatprep.subr.bf16.mxu0 %v2427_v63 }
 0x4d3   :  { %v8515_v22 = vadd.f32 %v8511_v16, %v8128_v29  ;;  %v8517_v15 = vpop.f32.mrb[81].mxu1 }
 0x4d4   :  { %v8527_v35 = vadd.f32 %v8517_v15, %v10393_v14  ;;  %v8529_v49 = vpop.f32.mrb[82].mxu1  ;;  %v5498_v14 = vld [vmem:[%s10249_s1 + $0x128] sm:$0xff] }
 0x4d5   :  { %10392 = vst [vmem:[#allocation13_spill] sm:$0xff] %v8515_v22  ;;  %v8533_v29 = vadd.f32 %v8529_v49, %v8146_v11  ;;  %v8535_v53 = vpop.f32.mrb[83].mxu1  ;;  %v2428_v22 = vpack.c.bf16 %v5496_v52, %v5495_v3 }
 0x4d6   :  { %10394 = vst [vmem:[#allocation14_spill] sm:$0xff] %v8527_v35  ;;  %v8539_v30 = vadd.f32 %v8535_v53, %v10395_v54  ;;  %v10397_v35 = vpack.c.bf16 %v8447_v8, %v8444_v6  ;;  %v2429_v54 = vpack.c.bf16 %v5498_v14, %v5497_v18  ;;  %v5500_v6 = vld [vmem:[%s10249_s1 + $0x138] sm:$0xff]  ;;  %v10398_v14 = vpack.c.bf16 %v8462_v23, %v8457_v12  ;;  %v10408_v23 = vld [vmem:[#allocation7_spill] sm:$0xff] }
 0x4d8   :  { %10396 = vst [vmem:[#allocation15_spill] sm:$0xff] %v8539_v30  ;;  %6362 = vmatmul.mubr.msk.bf16.vlgmr.msra.gmra.mrb[80].mxu0 %vm10298_vm4, %v10397_v35  ;;  %v5499_v30 = vld [vmem:[%s10249_s1 + $0x130] sm:$0xff] }
 0x4d9   :  { %6365 = vmatprep.mubr.msk.bf16.mxu0 %vm10298_vm4, %v1990_v21  ;;  %6410 = vmatpush3.bf16.msra.mxu0 %v2427_v63  ;;  %v8581_v63 = vld [vmem:[%s10251_s4 + $0x4] ss:$0 sm:$0xff] }
 0x4da   :  { %v8552_v11 = vpop.f32.mrb[84].mxu1  ;;  %6411 = vmatprep.subr.bf16.mxu0 %v2428_v22  ;;  %vm2797_vm9 = vcmp.eq.s32.totalorder %v8581_v63, %v7298_v37  ;;  %vm2798_vm10 = vcmp.eq.s32.totalorder %v8581_v63, %v7301_v38  ;;  %vm2799_vm12 = vcmp.eq.s32.totalorder %v8581_v63, %v7311_v41  ;;  %vm2800_vm13 = vcmp.eq.s32.totalorder %v8581_v63, %v7314_v42 }
 0x4db   :  { %v8556_v3 = vadd.f32 %v8552_v11, %v8169_v50  ;;  %v8558_v52 = vpop.f32.mrb[85].mxu1  ;;  %vm8604_vm11 = vmpackc.low %vm2798_vm10, %vm2797_vm9  ;;  %vm2801_vm15 = vcmp.eq.s32.totalorder %v8581_v63, %v7321_v43  ;;  %vm2802_vm1 = vcmp.eq.s32.totalorder %v8581_v63, %v7324_v44  ;;  %vm2803_vm3 = vcmp.eq.s32.totalorder %v8581_v63, %v7331_v45 }
 0x4dc   :  { %v8568_v8 = vadd.f32 %v8558_v52, %v8181_v36  ;;  %v8570_v21 = vpop.f32.mrb[86].mxu1  ;;  %v2430_v36 = vpack.c.bf16 %v5500_v6, %v5499_v30  ;;  %vm5557_vm14 = vmpackc.low %vm2800_vm13, %vm2799_vm12  ;;  %vm2804_vm5 = vcmp.eq.s32.totalorder %v8581_v63, %v7334_v46 }
 0x4dd   :  { %v8574_v50 = vadd.f32 %v8570_v21, %v8187_v4  ;;  %v8576_v18 = vpop.f32.mrb[87].mxu1  ;;  %6412 = vmatpush3.bf16.msra.mxu0 %v2428_v22  ;;  %vm5559_vm2 = vmpackc.low %vm2802_vm1, %vm2801_vm15 }
 0x4de   :  { %v8585_v35 = vadd.f32 %v8576_v18, %v8198_v58  ;;  %6413 = vmatprep.subr.bf16.mxu0 %v2429_v54  ;;  %vm5561_vm6 = vmpackc.low %vm2804_vm5, %vm2803_vm3 }
 0x4e0   :  { %6366 = vmatmul.mubr.msk.bf16.gmra.mrb[84].mxu0 %vm10298_vm4, %v10398_v14 }
 0x4e1   :  { %6369 = vmatprep.mubr.msk.bf16.mxu0 %vm10298_vm4, %v1992_v56  ;;  %6414 = vmatpush3.bf16.msra.mxu0 %v2429_v54 }
 0x4e2   :  { %v8596_v4 = vpop.f32.mrb[88].mxu1  ;;  %6415 = vmatprep.subr.bf16.mxu0 %v2430_v36 }
 0x4e3   :  { %v8600_v58 = vadd.f32 %v8596_v4, %v8213_v5  ;;  %v8602_v30 = vpop.f32.mrb[89].mxu1 }
 0x4e4   :  { %v8610_v12 = vadd.f32 %v8602_v30, %v8223_v60  ;;  %v8612_v22 = vpop.f32.mrb[90].mxu1  ;;  %v10401_v60 = vpack.c.bf16 %v8480_v0, %v8475_v59 }
 0x4e5   :  { %v8616_v56 = vadd.f32 %v8612_v22, %v8229_v24  ;;  %v8618_v54 = vpop.f32.mrb[91].mxu1  ;;  %6416 = vmatpush3.bf16.msra.mxu0 %v2430_v36  ;;  %v10402_v24 = vpack.c.bf16 %v8493_v61, %v8488_v40 }
 0x4e6   :  { %v8622_v5 = vadd.f32 %v8618_v54, %v8235_v7  ;;  %6465 = vmatprep.subr.msk.bf16.mxu0 %vm8604_vm11, %v10330_v57 }
 0x4e8   :  { %6370 = vmatmul.mubr.msk.bf16.gmra.mrb[88].mxu0 %vm10298_vm4, %v10401_v60  ;;  %v10409_v60 = vld [vmem:[#allocation8_spill] sm:$0xff] }
 0x4e9   :  { %6373 = vmatprep.mubr.msk.bf16.mxu0 %vm10298_vm4, %v10402_v24  ;;  %vm2809_vm1 = vcmp.eq.s32.totalorder %v8581_v63, %v10409_v60  ;;  %v10410_v24 = vld [vmem:[#allocation9_spill] sm:$0xff] }
 0x4ea   :  { %v8635_v6 = vpop.f32.mrb[92].mxu1 }
 0x4eb   :  { %v8639_v7 = vadd.f32 %v8635_v6, %v8252_v9  ;;  %v8641_v36 = vpop.f32.mrb[93].mxu1  ;;  %v10403_v9 = vpack.c.bf16 %v8491_v2, %v8486_v1  ;;  %v10406_v1 = vld [vmem:[#allocation3_spill] sm:$0xff]  ;;  %v10407_v2 = vld [vmem:[#allocation6_spill] sm:$0xff] }
 0x4ec   :  { %v8645_v14 = vadd.f32 %v8641_v36, %v8258_v39  ;;  %v8647_v59 = vpop.f32.mrb[94].mxu1  ;;  %v5520_v39 = vld [vmem:[%s10252_s3 + $0x4] ss:$0 sm:$0xff]  ;;  %vm2807_vm13 = vcmp.eq.s32.totalorder %v8581_v63, %v10407_v2 }
 0x4ed   :  { %v8651_v0 = vadd.f32 %v8647_v59, %v8264_v51  ;;  %v8653_v40 = vpop.f32.mrb[95].mxu1  ;;  %vm2735_vm7 = vcmp.eq.s32.totalorder %v5520_v39, %v7298_v37  ;;  %vm2736_vm8 = vcmp.eq.s32.totalorder %v5520_v39, %v7301_v38  ;;  %v10404_v51 = vld [vmem:[#allocation4_spill] sm:$0xff] }
 0x4ee   :  { %v8657_v61 = vadd.f32 %v8653_v40, %v8270_v48  ;;  %vm2805_vm9 = vcmp.eq.s32.totalorder %v8581_v63, %v10404_v51  ;;  %v10405_v48 = vld [vmem:[#allocation5_spill] sm:$0xff] }
 0x4ef   :  { %vm2806_vm10 = vcmp.eq.s32.totalorder %v8581_v63, %v10405_v48 }
 0x4f0   :  { %6374 = vmatmul.mubr.msk.bf16.gmra.mrb[92].mxu0 %vm10298_vm4, %v10403_v9  ;;  %vm5563_vm12 = vmpackc.low %vm2806_vm10, %vm2805_vm9  ;;  %v10411_v9 = vld [vmem:[#allocation10_spill] sm:$0xff]  ;;  %vm2738_vm9 = vcmp.eq.s32.totalorder %v5520_v39, %v7314_v42  ;;  %vm2739_vm10 = vcmp.eq.s32.totalorder %v5520_v39, %v7321_v43 }
 0x4f1   :  { %6417 = vmatprep.mubr.msk.bf16.mxu0 %vm10299_vm0, %v7218_v10  ;;  %vm2811_vm5 = vcmp.eq.s32.totalorder %v8581_v63, %v10411_v9 }
 0x4f8   :  { %6418 = vmatmul.mubr.msk.bf16.vlgmr.msra.gmra.mrb[96].mxu0 %vm10299_vm0, %v7240_v19 }
 0x4f9   :  { %6466 = vmatpush3.bf16.xpose.msk.msra.mxu0 %vm8604_vm11, %v10330_v57  ;;  %6421 = vmatprep.mubr.msk.bf16.mxu0 %vm10299_vm0, %v7242_v20  ;;  %vm5571_vm11 = vmpackc.low %vm2736_vm8, %vm2735_vm7  ;;  %vm2737_vm8 = vcmp.eq.s32.totalorder %v5520_v39, %v7311_v41 }
 0x4fa   :  { %6467 = vmatprep.subr.msk.bf16.mxu0 %vm5557_vm14, %v10330_v57 }
 0x500   :  { %6422 = vmatmul.mubr.msk.bf16.gmra.mrb[100].mxu0 %vm10299_vm0, %v7260_v25 }
 0x501   :  { %6468 = vmatpush3.bf16.xpose.msk.msra.mxu0 %vm5557_vm14, %v10330_v57  ;;  %6425 = vmatprep.mubr.msk.bf16.mxu0 %vm10299_vm0, %v7262_v26  ;;  %vm2808_vm14 = vcmp.eq.s32.totalorder %v8581_v63, %v10408_v23 }
 0x502   :  { %6469 = vmatprep.subr.msk.bf16.mxu0 %vm5559_vm2, %v10330_v57  ;;  %vm5565_vm15 = vmpackc.low %vm2808_vm14, %vm2807_vm13  ;;  %vm2741_vm14 = vcmp.eq.s32.totalorder %v5520_v39, %v7331_v45 }
 0x508   :  { %6426 = vmatmul.mubr.msk.bf16.gmra.mrb[104].mxu0 %vm10299_vm0, %v7280_v31 }
 0x509   :  { %6470 = vmatpush3.bf16.xpose.msk.msra.mxu0 %vm5559_vm2, %v10330_v57  ;;  %6429 = vmatprep.mubr.msk.bf16.mxu0 %vm10299_vm0, %v7282_v32  ;;  %vm2810_vm2 = vcmp.eq.s32.totalorder %v8581_v63, %v10410_v24 }
 0x50a   :  { %6471 = vmatprep.subr.msk.bf16.mxu0 %vm5561_vm6, %v10330_v57  ;;  %vm5567_vm3 = vmpackc.low %vm2810_vm2, %vm2809_vm1  ;;  %vm2743_vm1 = vcmp.eq.s32.totalorder %v5520_v39, %v10404_v51  ;;  %vm2744_vm2 = vcmp.eq.s32.totalorder %v5520_v39, %v10405_v48 }
 0x510   :  { %6430 = vmatmul.mubr.msk.bf16.gmra.mrb[108].mxu0 %vm10299_vm0, %v10406_v1  ;;  %v10412_v1 = vld [vmem:[#allocation11_spill] sm:$0xff] }
 0x511   :  { %6472 = vmatpush3.bf16.xpose.msk.msra.mxu0 %vm5561_vm6, %v10330_v57  ;;  %6481 = vmatprep.mubr.msk.bf16.mxu0 %vm5571_vm11, %v10330_v57  ;;  %vm2812_vm6 = vcmp.eq.s32.totalorder %v8581_v63, %v10412_v1  ;;  %vm2740_vm11 = vcmp.eq.s32.totalorder %v5520_v39, %v7324_v44 }
 0x512   :  { %6473 = vmatprep.subr.msk.bf16.mxu0 %vm5563_vm12, %v10330_v57  ;;  %vm5569_vm7 = vmpackc.low %vm2812_vm6, %vm2811_vm5  ;;  %vm2745_vm6 = vcmp.eq.s32.totalorder %v5520_v39, %v10407_v2 }
 0x513   :  { %vm5575_vm13 = vmpackc.low %vm2740_vm11, %vm2739_vm10 }
 0x514   :  { %vm5579_vm5 = vmpackc.low %vm2744_vm2, %vm2743_vm1 }
 0x519   :  { %6474 = vmatpush3.bf16.xpose.msk.msra.mxu0 %vm5563_vm12, %v10330_v57  ;;  %vm5573_vm12 = vmpackc.low %vm2738_vm9, %vm2737_vm8  ;;  %vm2747_vm8 = vcmp.eq.s32.totalorder %v5520_v39, %v10409_v60  ;;  %vm2748_vm9 = vcmp.eq.s32.totalorder %v5520_v39, %v10410_v24 }
 0x51a   :  { %6475 = vmatprep.subr.msk.bf16.mxu0 %vm5565_vm15, %v10330_v57  ;;  %vm5583_vm11 = vmpackc.low %vm2748_vm9, %vm2747_vm8 }
 0x521   :  { %6476 = vmatpush3.bf16.xpose.msk.msra.mxu0 %vm5565_vm15, %v10330_v57  ;;  %vm2742_vm15 = vcmp.eq.s32.totalorder %v5520_v39, %v7334_v46 }
 0x522   :  { %6477 = vmatprep.subr.msk.bf16.mxu0 %vm5567_vm3, %v10330_v57 }
 0x529   :  { %6478 = vmatpush3.bf16.xpose.msk.msra.mxu0 %vm5567_vm3, %v10330_v57  ;;  %vm5577_vm3 = vmpackc.low %vm2742_vm15, %vm2741_vm14 }
 0x52a   :  { %6479 = vmatprep.subr.msk.bf16.mxu0 %vm5569_vm7, %v10330_v57 }
 0x531   :  { %6480 = vmatpush3.bf16.xpose.msk.msra.mxu0 %vm5569_vm7, %v10330_v57  ;;  %vm2746_vm7 = vcmp.eq.s32.totalorder %v5520_v39, %v10408_v23 }
 0x532   :  { %vm5581_vm10 = vmpackc.low %vm2746_vm7, %vm2745_vm6 }
 0x538   :  { %6482 = vmatmul.mubr.msk.bf16.vlgmr.msra.gmra.mrb[112].mxu0 %vm5573_vm12, %v10330_v57  ;;  %vm2749_vm12 = vcmp.eq.s32.totalorder %v5520_v39, %v10411_v9 }
 0x539   :  { %6485 = vmatprep.mubr.msk.bf16.mxu0 %vm5575_vm13, %v10330_v57  ;;  %vm2750_vm13 = vcmp.eq.s32.totalorder %v5520_v39, %v10412_v1 }
 0x53a   :  { %vm5585_vm14 = vmpackc.low %vm2750_vm13, %vm2749_vm12 }
 0x540   :  { %6486 = vmatmul.mubr.msk.bf16.gmra.mrb[116].mxu0 %vm5577_vm3, %v10330_v57 }
 0x541   :  { %6489 = vmatprep.mubr.msk.bf16.mxu0 %vm5579_vm5, %v10330_v57 }
 0x548   :  { %6490 = vmatmul.mubr.msk.bf16.gmra.mrb[120].mxu0 %vm5581_vm10, %v10330_v57 }
 0x549   :  { %6493 = vmatprep.mubr.msk.bf16.mxu0 %vm5583_vm11, %v10330_v57 }
 0x550   :  { %6494 = vmatmul.mubr.msk.bf16.gmra.mrb[124].mxu0 %vm5585_vm14, %v10330_v57 }
 0x5ab   :  { %v6363_v63 = vpop.f32.mrb[80].mxu0 }
 0x5ac   :  { %v2372_v23 = vmul.f32 %v8511_v16, %v6363_v63  ;;  %v2086_v2 = vpop.f32.mrb[81].mxu0 }
 0x5ad   :  { %v2370_v60 = vmul.f32 %v8517_v15, %v2086_v2  ;;  %v6364_v24 = vpop.f32.mrb[82].mxu0 }
 0x5ae   :  { %v8754_v48 = vadd.f32 %v2372_v23, %v8367_v62  ;;  %v2373_v51 = vmul.f32 %v8529_v49, %v6364_v24  ;;  %v2089_v32 = vpop.f32.mrb[83].mxu0 }
 0x5af   :  { %v8758_v9 = vadd.f32 %v2370_v60, %v8371_v55  ;;  %v2371_v39 = vmul.f32 %v8535_v53, %v2089_v32 }
 0x5b0   :  { %v8762_v1 = vadd.f32 %v2373_v51, %v8375_v13 }
 0x5b1   :  { %v8765_v16 = vadd.f32 %v2371_v39, %v8378_v34 }
 0x5b3   :  { %v6367_v63 = vpop.f32.mrb[84].mxu0 }
 0x5b4   :  { %v2376_v15 = vmul.f32 %v8552_v11, %v6367_v63  ;;  %v2102_v2 = vpop.f32.mrb[85].mxu0 }
 0x5b5   :  { %v2374_v62 = vmul.f32 %v8558_v52, %v2102_v2  ;;  %v6368_v23 = vpop.f32.mrb[86].mxu0  ;;  %v10416_v2 = vld [vmem:[#allocation25_spill] sm:$0xff] }
 0x5b6   :  { %v8770_v49 = vadd.f32 %v2376_v15, %v8383_v33  ;;  %v2377_v55 = vmul.f32 %v8570_v21, %v6368_v23  ;;  %v2105_v60 = vpop.f32.mrb[87].mxu0 }
 0x5b7   :  { %v8774_v32 = vadd.f32 %v2374_v62, %v8387_v47  ;;  %v2375_v13 = vmul.f32 %v8576_v18, %v2105_v60  ;;  %v10413_v18 = vld [vmem:[#allocation23_spill] sm:$0xff] }
 0x5b8   :  { %v8778_v34 = vadd.f32 %v2377_v55, %v8391_v27 }
 0x5b9   :  { %v8781_v53 = vadd.f32 %v2375_v13, %v8394_v28  ;;  %v10414_v28 = vld [vmem:[#allocation24_spill] sm:$0xff] }
 0x5bb   :  { %v6371_v11 = vpop.f32.mrb[88].mxu0 }
 0x5bc   :  { %v2380_v52 = vmul.f32 %v8596_v4, %v6371_v11  ;;  %v2118_v51 = vpop.f32.mrb[89].mxu0 }
 0x5bd   :  { %v2378_v33 = vmul.f32 %v8602_v30, %v2118_v51  ;;  %v6372_v24 = vpop.f32.mrb[90].mxu0 }
 0x5be   :  { %v8786_v21 = vadd.f32 %v2380_v52, %v8399_v17  ;;  %v2381_v47 = vmul.f32 %v8612_v22, %v6372_v24  ;;  %v2121_v39 = vpop.f32.mrb[91].mxu0  ;;  %v10418_v22 = vld [vmem:[#allocation26_spill] sm:$0xff] }
 0x5bf   :  { %v8790_v63 = vadd.f32 %v2378_v33, %v10413_v18  ;;  %v2379_v27 = vmul.f32 %v8618_v54, %v2121_v39  ;;  %v10420_v54 = vld [vmem:[#allocation27_spill] sm:$0xff]  ;;  %v10422_v33 = vld [vmem:[#allocation28_spill] sm:$0xff] }
 0x5c0   :  { %v8794_v15 = vadd.f32 %v2381_v47, %v10414_v28  ;;  %v10424_v47 = vld [vmem:[#allocation12_spill] sm:$0xff] }
 0x5c1   :  { %v8797_v4 = vadd.f32 %v2379_v27, %v10416_v2 }
 0x5c2   :  { %10415 = vst [vmem:[#allocation16_spill] sm:$0xff] %v8794_v15  ;;  %v5591_v15 = vld [vmem:[%s10249_s1 + $0x160] sm:$0xff] }
 0x5c3   :  { %10417 = vst [vmem:[#allocation17_spill] sm:$0xff] %v8797_v4  ;;  %v6375_v62 = vpop.f32.mrb[92].mxu0 }
 0x5c4   :  { %v2384_v30 = vmul.f32 %v8635_v6, %v6375_v62  ;;  %v2134_v23 = vpop.f32.mrb[93].mxu0 }
 0x5c5   :  { %v2382_v17 = vmul.f32 %v8641_v36, %v2134_v23  ;;  %v6376_v55 = vpop.f32.mrb[94].mxu0  ;;  %v8818_v36 = vld [vmem:[%s10253_s2 + $0x4] ss:$0 sm:$0xff] }
 0x5c6   :  { %v8802_v60 = vadd.f32 %v2384_v30, %v10418_v22  ;;  %v2385_v13 = vmul.f32 %v8647_v59, %v6376_v55  ;;  %v2137_v11 = vpop.f32.mrb[95].mxu0 }
 0x5c7   :  { %v8806_v52 = vadd.f32 %v2382_v17, %v10420_v54  ;;  %v2383_v51 = vmul.f32 %v8653_v40, %v2137_v11 }
 0x5c8   :  { %10419 = vst [vmem:[#allocation18_spill] sm:$0xff] %v8802_v60  ;;  %v8810_v24 = vadd.f32 %v2385_v13, %v10422_v33 }
 0x5c9   :  { %10421 = vst [vmem:[#allocation19_spill] sm:$0xff] %v8806_v52  ;;  %v8813_v6 = vadd.f32 %v2383_v51, %v10424_v47 }
 0x5ca   :  { %10423 = vst [vmem:[#allocation20_spill] sm:$0xff] %v8810_v24 }
 0x5cb   :  { %10425 = vst [vmem:[#allocation21_spill] sm:$0xff] %v8813_v6  ;;  %v6419_v39 = vpop.f32.mrb[96].mxu0 }
 0x5cc   :  { %v2538_v59 = vadd.f32 %v6419_v39, %v8818_v36  ;;  %v2465_v18 = vpop.f32.mrb[97].mxu0 }
 0x5cd   :  { %v2536_v27 = vadd.f32 %v8818_v36, %v2465_v18  ;;  %v6420_v28 = vpop.f32.mrb[98].mxu0 }
 0x5ce   :  { %6930 = vtanh.f32 %v2538_v59  ;;  %v2539_v40 = vadd.f32 %v6420_v28, %v8818_v36  ;;  %v2577_v2 = vpack.c.bf16 %v6420_v28, %v6419_v39  ;;  %v2468_v62 = vpop.f32.mrb[99].mxu0 }
 0x5cf   :  { %6932 = vtanh.f32 %v2536_v27  ;;  %v2537_v30 = vadd.f32 %v8818_v36, %v2468_v62  ;;  %v2576_v23 = vpack.c.bf16 %v2468_v62, %v2465_v18 }
 0x5d0   :  { %6934 = vtanh.f32 %v2539_v40  ;;  %v2612_v28 = vsel %vm10298_vm4, %v2577_v2, 0 }
 0x5d1   :  { %6936 = vtanh.f32 %v2537_v30  ;;  %6785 = vmatprep.subr.msk.bf16.mxu1 %vm10298_vm4, %v2576_v23  ;;  %v2609_v17 = vsel %vm10298_vm4, %v2576_v23, 0 }
 0x5d2   :  { %6434 = vmatpush3.bf16.xpose.msra.mxu1 %v2609_v17 }
 0x5d3   :  { %6786 = vmatprep.subr.msk.bf16.mxu1 %vm10298_vm4, %v2577_v2  ;;  %v6423_v55 = vpop.f32.mrb[100].mxu0 }
 0x5d4   :  { %v2542_v22 = vadd.f32 %v6423_v55, %v8818_v36  ;;  %v2481_v13 = vpop.f32.mrb[101].mxu0 }
 0x5d5   :  { %v2540_v11 = vadd.f32 %v8818_v36, %v2481_v13  ;;  %v6424_v54 = vpop.f32.mrb[102].mxu0 }
 0x5d6   :  { %6938 = vtanh.f32 %v2542_v22  ;;  %v2543_v51 = vadd.f32 %v6424_v54, %v8818_v36  ;;  %v2579_v33 = vpack.c.bf16 %v6424_v54, %v6423_v55  ;;  %v2484_v47 = vpop.f32.mrb[103].mxu0 }
 0x5d7   :  { %6940 = vtanh.f32 %v2540_v11  ;;  %v2541_v39 = vadd.f32 %v8818_v36, %v2484_v47  ;;  %v2578_v59 = vpack.c.bf16 %v2484_v47, %v2481_v13 }
 0x5d8   :  { %v8831_v18 = vpop.eup %6930  ;;  %6942 = vtanh.f32 %v2543_v51  ;;  %v2618_v60 = vsel %vm10298_vm4, %v2579_v33, 0 }
 0x5d9   :  { %v6933_v27 = vpop.eup %6932  ;;  %6944 = vtanh.f32 %v2541_v39 }
 0x5da   :  { %v8834_v40 = vpop.eup %6934  ;;  %6436 = vmatpush3.bf16.xpose.msra.mxu1 %v2612_v28 }
 0x5db   :  { %v6937_v62 = vpop.eup %6936  ;;  %6787 = vmatprep.subr.msk.bf16.mxu1 %vm10298_vm4, %v2578_v59  ;;  %v6427_v23 = vpop.f32.mrb[104].mxu0 }
 0x5dc   :  { %v2568_v17 = vpack.c.bf16 %v6937_v62, %v6933_v27  ;;  %v2546_v55 = vadd.f32 %v6427_v23, %v8818_v36  ;;  %v2497_v22 = vpop.f32.mrb[105].mxu0  ;;  %v2615_v62 = vsel %vm10298_vm4, %v2578_v59, 0 }
 0x5dd   :  { %v2544_v13 = vadd.f32 %v8818_v36, %v2497_v22  ;;  %v6428_v11 = vpop.f32.mrb[106].mxu0 }
 0x5de   :  { %6449 = vmatprep.mubr.msk.bf16.mxu1 %vm10298_vm4, %v2568_v17  ;;  %6946 = vtanh.f32 %v2546_v55  ;;  %v2547_v2 = vadd.f32 %v6428_v11, %v8818_v36  ;;  %v2581_v54 = vpack.c.bf16 %v6428_v11, %v6427_v23  ;;  %v2500_v51 = vpop.f32.mrb[107].mxu0 }
 0x5df   :  { %6948 = vtanh.f32 %v2544_v13  ;;  %v2545_v47 = vadd.f32 %v8818_v36, %v2500_v51  ;;  %v2580_v39 = vpack.c.bf16 %v2500_v51, %v2497_v22 }
 0x5e0   :  { %v8844_v28 = vpop.eup %6938  ;;  %6950 = vtanh.f32 %v2547_v2 }
 0x5e1   :  { %v8846_v27 = vpop.eup %6940  ;;  %6952 = vtanh.f32 %v2545_v47 }
 0x5e2   :  { %v8849_v30 = vpop.eup %6942  ;;  %6438 = vmatpush3.bf16.xpose.msra.mxu1 %v2615_v62 }
 0x5e3   :  { %v8851_v17 = vpop.eup %6944  ;;  %6788 = vmatprep.subr.msk.bf16.mxu1 %vm10298_vm4, %v2579_v33  ;;  %v6431_v23 = vpop.f32.mrb[108].mxu0 }
 0x5e4   :  { %v2550_v22 = vadd.f32 %v6431_v23, %v8818_v36  ;;  %v2513_v13 = vpop.f32.mrb[109].mxu0  ;;  %v2570_v11 = vpack.c.bf16 %v8851_v17, %v8846_v27 }
 0x5e5   :  { %v2548_v59 = vadd.f32 %v8818_v36, %v2513_v13  ;;  %v6432_v2 = vpop.f32.mrb[110].mxu0 }
 0x5e6   :  { %6954 = vtanh.f32 %v2550_v22  ;;  %v2551_v51 = vadd.f32 %v6432_v2, %v8818_v36  ;;  %v2583_v47 = vpack.c.bf16 %v6432_v2, %v6431_v23  ;;  %v2516_v62 = vpop.f32.mrb[111].mxu0  ;;  %v10430_v23 = vld [vmem:[#allocation15_spill] sm:$0xff] }
 0x5e7   :  { %6956 = vtanh.f32 %v2548_v59  ;;  %v2549_v6 = vadd.f32 %v8818_v36, %v2516_v62  ;;  %v2582_v24 = vpack.c.bf16 %v2516_v62, %v2513_v13  ;;  %v2621_v59 = vsel %vm10298_vm4, %v2580_v39, 0  ;;  %v5588_v62 = vld [vmem:[%s10249_s1 + $0x148] sm:$0xff] }
 0x5e8   :  { %v8862_v52 = vpop.eup %6946  ;;  %6958 = vtanh.f32 %v2551_v51  ;;  %v5587_v51 = vld [vmem:[%s10249_s1 + $0x140] sm:$0xff] }
 0x5e9   :  { %v8864_v55 = vpop.eup %6948  ;;  %6960 = vtanh.f32 %v2549_v6 }
 0x5ea   :  { %v8867_v27 = vpop.eup %6950  ;;  %6440 = vmatpush3.bf16.xpose.msra.mxu1 %v2618_v60  ;;  %v5589_v60 = vld [vmem:[%s10249_s1 + $0x150] sm:$0xff] }
 0x5eb   :  { %v6953_v17 = vpop.eup %6952  ;;  %6789 = vmatprep.subr.msk.bf16.mxu1 %vm10298_vm4, %v2580_v39  ;;  %v2627_v39 = vsel %vm10298_vm4, %v2582_v24, 0 }
 0x5ec   :  { %v2572_v36 = vpack.c.bf16 %v6953_v17, %v8864_v55  ;;  %v2624_v55 = vsel %vm10298_vm4, %v2581_v54, 0  ;;  %v3007_v17 = vpack.c.bf16 %v5588_v62, %v5587_v51  ;;  %v5590_v51 = vld [vmem:[%s10249_s1 + $0x158] sm:$0xff]  ;;  %v10428_v62 = vld [vmem:[#allocation14_spill] sm:$0xff] }
 0x5ed   :  { %v3008_v4 = vpack.c.bf16 %v5590_v51, %v5589_v60 }
 0x5f0   :  { %v8873_v22 = vpop.eup %6954 }
 0x5f1   :  { %v8875_v13 = vpop.eup %6956 }
 0x5f2   :  { %v8878_v2 = vpop.eup %6958  ;;  %6442 = vmatpush3.bf16.xpose.msra.mxu1 %v2621_v59  ;;  %v2630_v59 = vsel %vm10298_vm4, %v2583_v47, 0 }
 0x5f3   :  { %v8880_v6 = vpop.eup %6960  ;;  %6790 = vmatprep.subr.msk.bf16.mxu1 %vm10298_vm4, %v2581_v54 }
 0x5fa   :  { %6444 = vmatpush3.bf16.xpose.msra.mxu1 %v2624_v55  ;;  %v10426_v55 = vld [vmem:[#allocation13_spill] sm:$0xff] }
 0x5fb   :  { %6791 = vmatprep.subr.msk.bf16.mxu1 %vm10298_vm4, %v2582_v24 }
 0x602   :  { %6446 = vmatpush3.bf16.xpose.msra.mxu1 %v2627_v39 }
 0x603   :  { %6792 = vmatprep.subr.msk.bf16.mxu1 %vm10298_vm4, %v2583_v47 }
 0x60a   :  { %6448 = vmatpush3.bf16.xpose.msra.mxu1 %v2630_v59 }
 0x60b   :  { %v8898_v54 = vpop.f32.mrb[112].mxu0  ;;  %6497 = vmatprep.subr.bf16.mxu1 %v3007_v17 }
 0x60c   :  { %v8902_v24 = vadd.f32 %v8898_v54, %v10426_v55  ;;  %v8904_v39 = vpop.f32.mrb[113].mxu0 }
 0x60d   :  { %v8914_v47 = vadd.f32 %v8904_v39, %v10428_v62  ;;  %v8916_v59 = vpop.f32.mrb[114].mxu0  ;;  %v5592_v62 = vld [vmem:[%s10249_s1 + $0x168] sm:$0xff] }
 0x60e   :  { %10427 = vst [vmem:[#allocation22_spill] sm:$0xff] %v8902_v24  ;;  %v8920_v55 = vadd.f32 %v8916_v59, %v8533_v29  ;;  %v8922_v33 = vpop.f32.mrb[115].mxu0 }
 0x60f   :  { %10429 = vst [vmem:[#allocation23_spill] sm:$0xff] %v8914_v47  ;;  %v8926_v24 = vadd.f32 %v8922_v33, %v10430_v23  ;;  %v10432_v47 = vpack.c.bf16 %v8834_v40, %v8831_v18  ;;  %v3009_v23 = vpack.c.bf16 %v5592_v62, %v5591_v15  ;;  %v5594_v18 = vld [vmem:[%s10249_s1 + $0x178] sm:$0xff]  ;;  %v10433_v62 = vpack.c.bf16 %v8849_v30, %v8844_v28  ;;  %v10445_v30 = vld [vmem:[#allocation8_spill] sm:$0xff] }
 0x611   :  { %10431 = vst [vmem:[#allocation24_spill] sm:$0xff] %v8926_v24  ;;  %6450 = vmatmul.mubr.msk.bf16.vlgmr.msra.gmra.mrb[96].mxu1 %vm10298_vm4, %v10432_v47  ;;  %v5593_v24 = vld [vmem:[%s10249_s1 + $0x170] sm:$0xff] }
 0x612   :  { %6453 = vmatprep.mubr.msk.bf16.mxu1 %vm10298_vm4, %v2570_v11  ;;  %6498 = vmatpush3.bf16.msra.mxu1 %v3007_v17  ;;  %v8968_v17 = vld [vmem:[%s10251_s4 + $0x5] ss:$0 sm:$0xff] }
 0x613   :  { %v8939_v29 = vpop.f32.mrb[116].mxu0  ;;  %6499 = vmatprep.subr.bf16.mxu1 %v3008_v4  ;;  %vm3377_vm15 = vcmp.eq.s32.totalorder %v8968_v17, %v7298_v37  ;;  %vm3378_vm1 = vcmp.eq.s32.totalorder %v8968_v17, %v7301_v38  ;;  %vm3379_vm3 = vcmp.eq.s32.totalorder %v8968_v17, %v7311_v41  ;;  %vm3380_vm5 = vcmp.eq.s32.totalorder %v8968_v17, %v7314_v42 }
 0x614   :  { %v8943_v60 = vadd.f32 %v8939_v29, %v8556_v3  ;;  %v8945_v51 = vpop.f32.mrb[117].mxu0  ;;  %vm8991_vm2 = vmpackc.low %vm3378_vm1, %vm3377_vm15  ;;  %vm3381_vm7 = vcmp.eq.s32.totalorder %v8968_v17, %v7321_v43  ;;  %vm3382_vm8 = vcmp.eq.s32.totalorder %v8968_v17, %v7324_v44  ;;  %vm3383_vm10 = vcmp.eq.s32.totalorder %v8968_v17, %v7331_v45 }
 0x615   :  { %v8955_v40 = vadd.f32 %v8945_v51, %v8568_v8  ;;  %v8957_v11 = vpop.f32.mrb[118].mxu0  ;;  %v3010_v8 = vpack.c.bf16 %v5594_v18, %v5593_v24  ;;  %vm5651_vm6 = vmpackc.low %vm3380_vm5, %vm3379_vm3  ;;  %vm3384_vm11 = vcmp.eq.s32.totalorder %v8968_v17, %v7334_v46 }
 0x616   :  { %v8961_v3 = vadd.f32 %v8957_v11, %v8574_v50  ;;  %v8963_v15 = vpop.f32.mrb[119].mxu0  ;;  %6500 = vmatpush3.bf16.msra.mxu1 %v3008_v4  ;;  %vm5653_vm9 = vmpackc.low %vm3382_vm8, %vm3381_vm7  ;;  %vm3389_vm8 = vcmp.eq.s32.totalorder %v8968_v17, %v10445_v30 }
 0x617   :  { %v8972_v47 = vadd.f32 %v8963_v15, %v8585_v35  ;;  %6501 = vmatprep.subr.bf16.mxu1 %v3009_v23  ;;  %vm5655_vm12 = vmpackc.low %vm3384_vm11, %vm3383_vm10 }
 0x619   :  { %6454 = vmatmul.mubr.msk.bf16.gmra.mrb[100].mxu1 %vm10298_vm4, %v10433_v62 }
 0x61a   :  { %6457 = vmatprep.mubr.msk.bf16.mxu1 %vm10298_vm4, %v2572_v36  ;;  %6502 = vmatpush3.bf16.msra.mxu1 %v3009_v23 }
 0x61b   :  { %v8983_v50 = vpop.f32.mrb[120].mxu0  ;;  %6503 = vmatprep.subr.bf16.mxu1 %v3010_v8 }
 0x61c   :  { %v8987_v35 = vadd.f32 %v8983_v50, %v8600_v58  ;;  %v8989_v4 = vpop.f32.mrb[121].mxu0 }
 0x61d   :  { %v8997_v28 = vadd.f32 %v8989_v4, %v8610_v12  ;;  %v8999_v24 = vpop.f32.mrb[122].mxu0  ;;  %v10436_v12 = vpack.c.bf16 %v8867_v27, %v8862_v52 }
 0x61e   :  { %v9003_v36 = vadd.f32 %v8999_v24, %v8616_v56  ;;  %v9005_v23 = vpop.f32.mrb[123].mxu0  ;;  %6504 = vmatpush3.bf16.msra.mxu1 %v3010_v8  ;;  %v10437_v56 = vpack.c.bf16 %v8880_v6, %v8875_v13 }
 0x61f   :  { %v9009_v58 = vadd.f32 %v9005_v23, %v8622_v5  ;;  %6553 = vmatprep.subr.msk.bf16.mxu1 %vm8991_vm2, %v10330_v57 }
 0x621   :  { %6458 = vmatmul.mubr.msk.bf16.gmra.mrb[104].mxu1 %vm10298_vm4, %v10436_v12  ;;  %v10446_v12 = vld [vmem:[#allocation9_spill] sm:$0xff] }
 0x622   :  { %6461 = vmatprep.mubr.msk.bf16.mxu1 %vm10298_vm4, %v10437_v56  ;;  %v10447_v56 = vld [vmem:[#allocation10_spill] sm:$0xff] }
 0x623   :  { %v9022_v18 = vpop.f32.mrb[124].mxu0  ;;  %vm3391_vm11 = vcmp.eq.s32.totalorder %v8968_v17, %v10447_v56 }
 0x624   :  { %v9026_v5 = vadd.f32 %v9022_v18, %v8639_v7  ;;  %v9028_v8 = vpop.f32.mrb[125].mxu0  ;;  %v10438_v7 = vpack.c.bf16 %v8878_v2, %v8873_v22  ;;  %v10441_v22 = vld [vmem:[#allocation5_spill] sm:$0xff]  ;;  %v10442_v2 = vld [vmem:[#allocation3_spill] sm:$0xff] }
 0x625   :  { %v9032_v62 = vadd.f32 %v9028_v8, %v8645_v14  ;;  %v9034_v52 = vpop.f32.mrb[126].mxu0  ;;  %v5614_v14 = vld [vmem:[%s10252_s3 + $0x5] ss:$0 sm:$0xff]  ;;  %vm3386_vm1 = vcmp.eq.s32.totalorder %v8968_v17, %v10441_v22 }
 0x626   :  { %v9038_v27 = vadd.f32 %v9034_v52, %v8651_v0  ;;  %v9040_v13 = vpop.f32.mrb[127].mxu0  ;;  %v10439_v0 = vld [vmem:[#allocation2_spill] sm:$0xff]  ;;  %vm3315_vm13 = vcmp.eq.s32.totalorder %v5614_v14, %v7298_v37  ;;  %vm3316_vm14 = vcmp.eq.s32.totalorder %v5614_v14, %v7301_v38  ;;  %v10444_v38 = vld [vmem:[#allocation7_spill] sm:$0xff] }
 0x627   :  { %v9044_v6 = vadd.f32 %v9040_v13, %v8657_v61  ;;  %v10440_v61 = vld [vmem:[#allocation4_spill] sm:$0xff]  ;;  %v10443_v37 = vld [vmem:[#allocation6_spill] sm:$0xff] }
 0x628   :  { %vm3385_vm15 = vcmp.eq.s32.totalorder %v8968_v17, %v10440_v61  ;;  %vm3387_vm5 = vcmp.eq.s32.totalorder %v8968_v17, %v10443_v37 }
 0x629   :  { %6462 = vmatmul.mubr.msk.bf16.gmra.mrb[108].mxu1 %vm10298_vm4, %v10438_v7  ;;  %vm5657_vm3 = vmpackc.low %vm3386_vm1, %vm3385_vm15  ;;  %v10448_v7 = vld [vmem:[#allocation11_spill] sm:$0xff]  ;;  %vm3318_vm15 = vcmp.eq.s32.totalorder %v5614_v14, %v7314_v42  ;;  %vm3319_vm1 = vcmp.eq.s32.totalorder %v5614_v14, %v7321_v43 }
 0x62a   :  { %6505 = vmatprep.mubr.msk.bf16.mxu1 %vm10299_vm0, %v7218_v10 }
 0x631   :  { %6506 = vmatmul.mubr.msk.bf16.vlgmr.msra.gmra.mrb[112].mxu1 %vm10299_vm0, %v7240_v19 }
 0x632   :  { %6554 = vmatpush3.bf16.xpose.msk.msra.mxu1 %vm8991_vm2, %v10330_v57  ;;  %6509 = vmatprep.mubr.msk.bf16.mxu1 %vm10299_vm0, %v7242_v20  ;;  %vm5665_vm2 = vmpackc.low %vm3316_vm14, %vm3315_vm13  ;;  %vm3317_vm14 = vcmp.eq.s32.totalorder %v5614_v14, %v7311_v41 }
 0x633   :  { %6555 = vmatprep.subr.msk.bf16.mxu1 %vm5651_vm6, %v10330_v57 }
 0x639   :  { %6510 = vmatmul.mubr.msk.bf16.gmra.mrb[116].mxu1 %vm10299_vm0, %v7260_v25 }
 0x63a   :  { %6556 = vmatpush3.bf16.xpose.msk.msra.mxu1 %vm5651_vm6, %v10330_v57  ;;  %6513 = vmatprep.mubr.msk.bf16.mxu1 %vm10299_vm0, %v7262_v26  ;;  %vm3388_vm6 = vcmp.eq.s32.totalorder %v8968_v17, %v10444_v38 }
 0x63b   :  { %6557 = vmatprep.subr.msk.bf16.mxu1 %vm5653_vm9, %v10330_v57  ;;  %vm5659_vm7 = vmpackc.low %vm3388_vm6, %vm3387_vm5  ;;  %vm3321_vm6 = vcmp.eq.s32.totalorder %v5614_v14, %v7331_v45 }
 0x641   :  { %6514 = vmatmul.mubr.msk.bf16.gmra.mrb[120].mxu1 %vm10299_vm0, %v7280_v31 }
 0x642   :  { %6558 = vmatpush3.bf16.xpose.msk.msra.mxu1 %vm5653_vm9, %v10330_v57  ;;  %6517 = vmatprep.mubr.msk.bf16.mxu1 %vm10299_vm0, %v10439_v0  ;;  %vm3390_vm9 = vcmp.eq.s32.totalorder %v8968_v17, %v10446_v12 }
 0x643   :  { %6559 = vmatprep.subr.msk.bf16.mxu1 %vm5655_vm12, %v10330_v57  ;;  %vm5661_vm10 = vmpackc.low %vm3390_vm9, %vm3389_vm8  ;;  %vm3323_vm8 = vcmp.eq.s32.totalorder %v5614_v14, %v10440_v61  ;;  %vm3324_vm9 = vcmp.eq.s32.totalorder %v5614_v14, %v10441_v22 }
 0x649   :  { %6518 = vmatmul.mubr.msk.bf16.gmra.mrb[124].mxu1 %vm10299_vm0, %v10442_v2 }
 0x64a   :  { %6560 = vmatpush3.bf16.xpose.msk.msra.mxu1 %vm5655_vm12, %v10330_v57  ;;  %6569 = vmatprep.mubr.msk.bf16.mxu1 %vm5665_vm2, %v10330_v57  ;;  %vm3392_vm12 = vcmp.eq.s32.totalorder %v8968_v17, %v10448_v7  ;;  %vm3320_vm2 = vcmp.eq.s32.totalorder %v5614_v14, %v7324_v44 }
 0x64b   :  { %6561 = vmatprep.subr.msk.bf16.mxu1 %vm5657_vm3, %v10330_v57  ;;  %vm5663_vm13 = vmpackc.low %vm3392_vm12, %vm3391_vm11  ;;  %vm3325_vm12 = vcmp.eq.s32.totalorder %v5614_v14, %v10443_v37 }
 0x64c   :  { %vm5669_vm5 = vmpackc.low %vm3320_vm2, %vm3319_vm1 }
 0x64d   :  { %vm5673_vm11 = vmpackc.low %vm3324_vm9, %vm3323_vm8 }
 0x652   :  { %6562 = vmatpush3.bf16.xpose.msk.msra.mxu1 %vm5657_vm3, %v10330_v57  ;;  %vm5667_vm3 = vmpackc.low %vm3318_vm15, %vm3317_vm14  ;;  %vm3327_vm14 = vcmp.eq.s32.totalorder %v5614_v14, %v10445_v30  ;;  %vm3328_vm15 = vcmp.eq.s32.totalorder %v5614_v14, %v10446_v12 }
 0x653   :  { %6563 = vmatprep.subr.msk.bf16.mxu1 %vm5659_vm7, %v10330_v57  ;;  %vm5677_vm2 = vmpackc.low %vm3328_vm15, %vm3327_vm14 }
 0x65a   :  { %6564 = vmatpush3.bf16.xpose.msk.msra.mxu1 %vm5659_vm7, %v10330_v57  ;;  %vm3322_vm7 = vcmp.eq.s32.totalorder %v5614_v14, %v7334_v46 }
 0x65b   :  { %6565 = vmatprep.subr.msk.bf16.mxu1 %vm5661_vm10, %v10330_v57 }
 0x662   :  { %6566 = vmatpush3.bf16.xpose.msk.msra.mxu1 %vm5661_vm10, %v10330_v57  ;;  %vm5671_vm10 = vmpackc.low %vm3322_vm7, %vm3321_vm6 }
 0x663   :  { %6567 = vmatprep.subr.msk.bf16.mxu1 %vm5663_vm13, %v10330_v57 }
 0x66a   :  { %6568 = vmatpush3.bf16.xpose.msk.msra.mxu1 %vm5663_vm13, %v10330_v57  ;;  %vm3326_vm13 = vcmp.eq.s32.totalorder %v5614_v14, %v10444_v38 }
 0x66b   :  { %vm5675_vm1 = vmpackc.low %vm3326_vm13, %vm3325_vm12 }
 0x671   :  { %6570 = vmatmul.mubr.msk.bf16.vlgmr.msra.gmra.mrb[128].mxu1 %vm5667_vm3, %v10330_v57  ;;  %vm3329_vm3 = vcmp.eq.s32.totalorder %v5614_v14, %v10447_v56 }
 0x672   :  { %6573 = vmatprep.mubr.msk.bf16.mxu1 %vm5669_vm5, %v10330_v57  ;;  %vm3330_vm5 = vcmp.eq.s32.totalorder %v5614_v14, %v10448_v7 }
 0x673   :  { %vm5679_vm6 = vmpackc.low %vm3330_vm5, %vm3329_vm3 }
 0x679   :  { %6574 = vmatmul.mubr.msk.bf16.gmra.mrb[132].mxu1 %vm5671_vm10, %v10330_v57 }
 0x67a   :  { %6577 = vmatprep.mubr.msk.bf16.mxu1 %vm5673_vm11, %v10330_v57 }
 0x681   :  { %6578 = vmatmul.mubr.msk.bf16.gmra.mrb[136].mxu1 %vm5675_vm1, %v10330_v57 }
 0x682   :  { %6581 = vmatprep.mubr.msk.bf16.mxu1 %vm5677_vm2, %v10330_v57 }
 0x689   :  { %6582 = vmatmul.mubr.msk.bf16.gmra.mrb[140].mxu1 %vm5679_vm6, %v10330_v57 }
 0x6e4   :  { %v6451_v41 = vpop.f32.mrb[96].mxu1 }
 0x6e5   :  { %v2952_v42 = vmul.f32 %v8898_v54, %v6451_v41  ;;  %v2666_v43 = vpop.f32.mrb[97].mxu1 }
 0x6e6   :  { %v2950_v44 = vmul.f32 %v8904_v39, %v2666_v43  ;;  %v6452_v45 = vpop.f32.mrb[98].mxu1 }
 0x6e7   :  { %v9141_v46 = vadd.f32 %v2952_v42, %v8754_v48  ;;  %v2953_v17 = vmul.f32 %v8916_v59, %v6452_v45  ;;  %v2669_v61 = vpop.f32.mrb[99].mxu1 }
 0x6e8   :  { %v9145_v22 = vadd.f32 %v2950_v44, %v8758_v9  ;;  %v2951_v14 = vmul.f32 %v8922_v33, %v2669_v61  ;;  %v10450_v44 = vld [vmem:[#allocation17_spill] sm:$0xff] }
 0x6e9   :  { %v9149_v57 = vadd.f32 %v2953_v17, %v8762_v1 }
 0x6ea   :  { %v9152_v54 = vadd.f32 %v2951_v14, %v8765_v16 }
 0x6ec   :  { %v6455_v37 = vpop.f32.mrb[100].mxu1 }
 0x6ed   :  { %v2956_v39 = vmul.f32 %v8939_v29, %v6455_v37  ;;  %v2682_v38 = vpop.f32.mrb[101].mxu1 }
 0x6ee   :  { %v2954_v48 = vmul.f32 %v8945_v51, %v2682_v38  ;;  %v6456_v30 = vpop.f32.mrb[102].mxu1 }
 0x6ef   :  { %v9157_v59 = vadd.f32 %v2956_v39, %v8770_v49  ;;  %v2957_v9 = vmul.f32 %v8957_v11, %v6456_v30  ;;  %v2685_v12 = vpop.f32.mrb[103].mxu1 }
 0x6f0   :  { %v9161_v33 = vadd.f32 %v2954_v48, %v8774_v32  ;;  %v2955_v1 = vmul.f32 %v8963_v15, %v2685_v12  ;;  %v10453_v48 = vld [vmem:[#allocation20_spill] sm:$0xff] }
 0x6f1   :  { %v9165_v16 = vadd.f32 %v2957_v9, %v8778_v34  ;;  %v10454_v9 = vld [vmem:[#allocation21_spill] sm:$0xff] }
 0x6f2   :  { %v9168_v29 = vadd.f32 %v2955_v1, %v8781_v53  ;;  %v10449_v53 = vld [vmem:[#allocation16_spill] sm:$0xff] }
 0x6f4   :  { %v6459_v56 = vpop.f32.mrb[104].mxu1 }
 0x6f5   :  { %v2960_v51 = vmul.f32 %v8983_v50, %v6459_v56  ;;  %v2698_v7 = vpop.f32.mrb[105].mxu1 }
 0x6f6   :  { %v2958_v49 = vmul.f32 %v8989_v4, %v2698_v7  ;;  %v6460_v41 = vpop.f32.mrb[106].mxu1 }
 0x6f7   :  { %v9173_v11 = vadd.f32 %v2960_v51, %v8786_v21  ;;  %v2961_v32 = vmul.f32 %v8999_v24, %v6460_v41  ;;  %v2701_v42 = vpop.f32.mrb[107].mxu1  ;;  %v10451_v24 = vld [vmem:[#allocation18_spill] sm:$0xff] }
 0x6f8   :  { %v9177_v15 = vadd.f32 %v2958_v49, %v8790_v63  ;;  %v2959_v34 = vmul.f32 %v9005_v23, %v2701_v42  ;;  %v10452_v23 = vld [vmem:[#allocation19_spill] sm:$0xff] }
 0x6f9   :  { %v9181_v43 = vadd.f32 %v2961_v32, %v10449_v53 }
 0x6fa   :  { %v9184_v50 = vadd.f32 %v2959_v34, %v10450_v44 }
 0x6fc   :  { %v6463_v45 = vpop.f32.mrb[108].mxu1 }
 0x6fd   :  { %v2964_v4 = vmul.f32 %v9022_v18, %v6463_v45  ;;  %v2714_v17 = vpop.f32.mrb[109].mxu1 }
 0x6fe   :  { %v2962_v21 = vmul.f32 %v9028_v8, %v2714_v17  ;;  %v6464_v61 = vpop.f32.mrb[110].mxu1  ;;  %v9205_v8 = vld [vmem:[%s10253_s2 + $0x5] ss:$0 sm:$0xff] }
 0x6ff   :  { %v9189_v14 = vadd.f32 %v2964_v4, %v10451_v24  ;;  %v2965_v63 = vmul.f32 %v9034_v52, %v6464_v61  ;;  %v2717_v37 = vpop.f32.mrb[111].mxu1 }
 0x700   :  { %v9193_v39 = vadd.f32 %v2962_v21, %v10452_v23  ;;  %v2963_v38 = vmul.f32 %v9040_v13, %v2717_v37 }
 0x701   :  { %v9197_v30 = vadd.f32 %v2965_v63, %v10453_v48 }
 0x702   :  { %v9200_v18 = vadd.f32 %v2963_v38, %v10454_v9 }
 0x704   :  { %v6507_v12 = vpop.f32.mrb[112].mxu1 }
 0x705   :  { %v3118_v52 = vadd.f32 %v6507_v12, %v9205_v8  ;;  %v3045_v1 = vpop.f32.mrb[113].mxu1 }
 0x706   :  { %v3116_v56 = vadd.f32 %v9205_v8, %v3045_v1  ;;  %v6508_v51 = vpop.f32.mrb[114].mxu1 }
 0x707   :  { %6962 = vtanh.f32 %v3118_v52  ;;  %v3119_v13 = vadd.f32 %v6508_v51, %v9205_v8  ;;  %v3157_v7 = vpack.c.bf16 %v6508_v51, %v6507_v12  ;;  %v3048_v49 = vpop.f32.mrb[115].mxu1 }
 0x708   :  { %6964 = vtanh.f32 %v3116_v56  ;;  %v3117_v41 = vadd.f32 %v9205_v8, %v3048_v49  ;;  %v3156_v32 = vpack.c.bf16 %v3048_v49, %v3045_v1 }
 0x709   :  { %6966 = vtanh.f32 %v3119_v13  ;;  %v3192_v38 = vsel %vm10298_vm4, %v3157_v7, 0 }
 0x70a   :  { %6968 = vtanh.f32 %v3117_v41  ;;  %6793 = vmatprep.subr.msk.bf16.mxu0 %vm10298_vm4, %v3156_v32  ;;  %v3189_v42 = vsel %vm10298_vm4, %v3156_v32, 0 }
 0x70b   :  { %6522 = vmatpush3.bf16.xpose.msra.mxu0 %v3189_v42 }
 0x70c   :  { %6794 = vmatprep.subr.msk.bf16.mxu0 %vm10298_vm4, %v3157_v7  ;;  %v6511_v34 = vpop.f32.mrb[116].mxu1 }
 0x70d   :  { %v3122_v53 = vadd.f32 %v6511_v34, %v9205_v8  ;;  %v3061_v44 = vpop.f32.mrb[117].mxu1 }
 0x70e   :  { %v3120_v45 = vadd.f32 %v9205_v8, %v3061_v44  ;;  %v6512_v4 = vpop.f32.mrb[118].mxu1 }
 0x70f   :  { %6970 = vtanh.f32 %v3122_v53  ;;  %v3123_v17 = vadd.f32 %v6512_v4, %v9205_v8  ;;  %v3159_v21 = vpack.c.bf16 %v6512_v4, %v6511_v34  ;;  %v3064_v61 = vpop.f32.mrb[119].mxu1 }
 0x710   :  { %6972 = vtanh.f32 %v3120_v45  ;;  %v3121_v24 = vadd.f32 %v9205_v8, %v3064_v61  ;;  %v3158_v63 = vpack.c.bf16 %v3064_v61, %v3061_v44 }
 0x711   :  { %v9218_v37 = vpop.eup %6962  ;;  %6974 = vtanh.f32 %v3123_v17 }
 0x712   :  { %v6965_v23 = vpop.eup %6964  ;;  %6976 = vtanh.f32 %v3121_v24  ;;  %v3195_v45 = vsel %vm10298_vm4, %v3158_v63, 0 }
 0x713   :  { %v9221_v48 = vpop.eup %6966  ;;  %6524 = vmatpush3.bf16.xpose.msra.mxu0 %v3192_v38 }
 0x714   :  { %v6969_v9 = vpop.eup %6968  ;;  %v3149_v12 = vpack.c.bf16 %v9221_v48, %v9218_v37  ;;  %6795 = vmatprep.subr.msk.bf16.mxu0 %vm10298_vm4, %v3158_v63  ;;  %v6515_v52 = vpop.f32.mrb[120].mxu1 }
 0x715   :  { %v3148_v1 = vpack.c.bf16 %v6969_v9, %v6965_v23  ;;  %v3126_v56 = vadd.f32 %v6515_v52, %v9205_v8  ;;  %v3077_v51 = vpop.f32.mrb[121].mxu1 }
 0x716   :  { %v3124_v13 = vadd.f32 %v9205_v8, %v3077_v51  ;;  %v6516_v49 = vpop.f32.mrb[122].mxu1 }
 0x717   :  { %6537 = vmatprep.mubr.msk.bf16.mxu0 %vm10298_vm4, %v3148_v1  ;;  %6978 = vtanh.f32 %v3126_v56  ;;  %v3127_v7 = vadd.f32 %v6516_v49, %v9205_v8  ;;  %v3161_v41 = vpack.c.bf16 %v6516_v49, %v6515_v52  ;;  %v3080_v32 = vpop.f32.mrb[123].mxu1 }
 0x718   :  { %6980 = vtanh.f32 %v3124_v13  ;;  %v3125_v42 = vadd.f32 %v9205_v8, %v3080_v32  ;;  %v3160_v34 = vpack.c.bf16 %v3080_v32, %v3077_v51 }
 0x719   :  { %v9231_v53 = vpop.eup %6970  ;;  %6982 = vtanh.f32 %v3127_v7 }
 0x71a   :  { %v6973_v44 = vpop.eup %6972  ;;  %6984 = vtanh.f32 %v3125_v42  ;;  %v3198_v42 = vsel %vm10298_vm4, %v3159_v21, 0 }
 0x71b   :  { %v9234_v4 = vpop.eup %6974  ;;  %6526 = vmatpush3.bf16.xpose.msra.mxu0 %v3195_v45 }
 0x71c   :  { %v6977_v17 = vpop.eup %6976  ;;  %6796 = vmatprep.subr.msk.bf16.mxu0 %vm10298_vm4, %v3159_v21  ;;  %v6519_v61 = vpop.f32.mrb[124].mxu1  ;;  %v3151_v24 = vpack.c.bf16 %v9234_v4, %v9231_v53 }
 0x71d   :  { %v3130_v23 = vadd.f32 %v6519_v61, %v9205_v8  ;;  %v3093_v38 = vpop.f32.mrb[125].mxu1  ;;  %v3150_v9 = vpack.c.bf16 %v6977_v17, %v6973_v44 }
 0x71e   :  { %v3128_v52 = vadd.f32 %v9205_v8, %v3093_v38  ;;  %v6520_v1 = vpop.f32.mrb[126].mxu1 }
 0x71f   :  { %6986 = vtanh.f32 %v3130_v23  ;;  %v3131_v63 = vadd.f32 %v6520_v1, %v9205_v8  ;;  %v3163_v56 = vpack.c.bf16 %v6520_v1, %v6519_v61  ;;  %v3096_v51 = vpop.f32.mrb[127].mxu1 }
 0x720   :  { %6988 = vtanh.f32 %v3128_v52  ;;  %v3129_v13 = vadd.f32 %v9205_v8, %v3096_v51  ;;  %v3162_v49 = vpack.c.bf16 %v3096_v51, %v3093_v38  ;;  %v3201_v8 = vsel %vm10298_vm4, %v3160_v34, 0 }
 0x721   :  { %v9243_v7 = vpop.eup %6978  ;;  %6990 = vtanh.f32 %v3131_v63  ;;  %v3204_v51 = vsel %vm10298_vm4, %v3161_v41, 0 }
 0x722   :  { %v6981_v32 = vpop.eup %6980  ;;  %6992 = vtanh.f32 %v3129_v13  ;;  %v3207_v13 = vsel %vm10298_vm4, %v3162_v49, 0 }
 0x723   :  { %v6983_v44 = vpop.eup %6982  ;;  %6528 = vmatpush3.bf16.xpose.msra.mxu0 %v3198_v42  ;;  %v10455_v42 = vld [vmem:[#allocation22_spill] sm:$0xff] }
 0x724   :  { %v6985_v45 = vpop.eup %6984  ;;  %6797 = vmatprep.subr.msk.bf16.mxu0 %vm10298_vm4, %v3160_v34  ;;  %v3153_v17 = vpack.c.bf16 %v6983_v44, %v9243_v7  ;;  %v3210_v34 = vsel %vm10298_vm4, %v3163_v56, 0 }
 0x725   :  { %v3152_v61 = vpack.c.bf16 %v6985_v45, %v6981_v32 }
 0x729   :  { %v9248_v23 = vpop.eup %6986 }
 0x72a   :  { %v6989_v52 = vpop.eup %6988 }
 0x72b   :  { %v9251_v38 = vpop.eup %6990  ;;  %6530 = vmatpush3.bf16.xpose.msra.mxu0 %v3201_v8  ;;  %v10457_v8 = vld [vmem:[#allocation24_spill] sm:$0xff] }
 0x72c   :  { %v6993_v1 = vpop.eup %6992  ;;  %6798 = vmatprep.subr.msk.bf16.mxu0 %vm10298_vm4, %v3161_v41  ;;  %v3155_v21 = vpack.c.bf16 %v9251_v38, %v9248_v23  ;;  %v10456_v41 = vld [vmem:[#allocation23_spill] sm:$0xff] }
 0x72d   :  { %v3154_v63 = vpack.c.bf16 %v6993_v1, %v6989_v52 }
 0x733   :  { %6532 = vmatpush3.bf16.xpose.msra.mxu0 %v3204_v51 }
 0x734   :  { %6799 = vmatprep.subr.msk.bf16.mxu0 %vm10298_vm4, %v3162_v49 }
 0x73b   :  { %6534 = vmatpush3.bf16.xpose.msra.mxu0 %v3207_v13 }
 0x73c   :  { %6800 = vmatprep.subr.msk.bf16.mxu0 %vm10298_vm4, %v3163_v56 }
 0x743   :  { %6536 = vmatpush3.bf16.xpose.msra.mxu0 %v3210_v34 }
 0x744   :  { %v6571_v7 = vpop.f32.mrb[128].mxu1  ;;  %6585 = vmatprep.subr.bf16.mxu0 %v7218_v10 }
 0x745   :  { %v3467_v32 = vpop.f32.mrb[129].mxu1  ;;  %v9263_v44 = vadd.f32 %v6571_v7, %v10455_v42 }
 0x746   :  { %v6572_v45 = vpop.f32.mrb[130].mxu1  ;;  %v9266_v23 = vadd.f32 %v3467_v32, %v10456_v41 }
 0x747   :  { %v9269_v52 = vadd.f32 %v6572_v45, %v8920_v55  ;;  %v3470_v49 = vpop.f32.mrb[131].mxu1  ;;  %vm3580_vm7 = vcmp.gt.f32.partialorder %v9263_v44, 0.0 }
 0x748   :  { %v9272_v38 = vadd.f32 %v3470_v49, %v10457_v8  ;;  %vm3578_vm8 = vcmp.gt.f32.partialorder %v9266_v23, 0.0 }
 0x749   :  { %vm3581_vm9 = vcmp.gt.f32.partialorder %v9269_v52, 0.0 }
 0x74a   :  { %6538 = vmatmul.mubr.msk.bf16.vlgmr.msra.gmra.mrb[128].mxu0 %vm10298_vm4, %v3149_v12  ;;  %vm3579_vm10 = vcmp.gt.f32.partialorder %v9272_v38, 0.0 }
 0x74b   :  { %6541 = vmatprep.mubr.msk.bf16.mxu0 %vm10298_vm4, %v3150_v9  ;;  %6586 = vmatpush3.bf16.msra.mxu0 %v7218_v10 }
 0x74c   :  { %v9280_v56 = vpop.f32.mrb[132].mxu1  ;;  %6587 = vmatprep.subr.bf16.mxu0 %v7240_v19 }
 0x74d   :  { %v9285_v55 = vadd.f32 %v9280_v56, %v8943_v60  ;;  %v9287_v1 = vpop.f32.mrb[133].mxu1 }
 0x74e   :  { %v9291_v51 = vadd.f32 %v9287_v1, %v8955_v40  ;;  %v9293_v37 = vpop.f32.mrb[134].mxu1 }
 0x74f   :  { %v9297_v48 = vadd.f32 %v9293_v37, %v8961_v3  ;;  %v9299_v10 = vpop.f32.mrb[135].mxu1  ;;  %6588 = vmatpush3.bf16.msra.mxu0 %v7240_v19  ;;  %vm3584_vm13 = vcmp.gt.f32.partialorder %v9285_v55, 0.0 }
 0x750   :  { %v9304_v60 = vadd.f32 %v9299_v10, %v8972_v47  ;;  %6589 = vmatprep.subr.bf16.mxu0 %v7242_v20  ;;  %vm3582_vm11 = vcmp.gt.f32.partialorder %v9291_v51, 0.0 }
 0x751   :  { %vm3585_vm14 = vcmp.gt.f32.partialorder %v9297_v48, 0.0 }
 0x752   :  { %6542 = vmatmul.mubr.msk.bf16.gmra.mrb[132].mxu0 %vm10298_vm4, %v3151_v24  ;;  %vm3583_vm12 = vcmp.gt.f32.partialorder %v9304_v60, 0.0 }
 0x753   :  { %6545 = vmatprep.mubr.msk.bf16.mxu0 %vm10298_vm4, %v3152_v61  ;;  %6590 = vmatpush3.bf16.msra.mxu0 %v7242_v20 }
 0x754   :  { %v9313_v40 = vpop.f32.mrb[136].mxu1  ;;  %6591 = vmatprep.subr.bf16.mxu0 %v7260_v25 }
 0x755   :  { %v9318_v19 = vadd.f32 %v9313_v40, %v8987_v35  ;;  %v9320_v3 = vpop.f32.mrb[137].mxu1 }
 0x756   :  { %v9324_v47 = vadd.f32 %v9320_v3, %v8997_v28  ;;  %v9326_v12 = vpop.f32.mrb[138].mxu1 }
 0x757   :  { %v9330_v53 = vadd.f32 %v9326_v12, %v9003_v36  ;;  %v9332_v20 = vpop.f32.mrb[139].mxu1  ;;  %6592 = vmatpush3.bf16.msra.mxu0 %v7260_v25  ;;  %vm3588_vm2 = vcmp.gt.f32.partialorder %v9318_v19, 0.0 }
 0x758   :  { %v9337_v35 = vadd.f32 %v9332_v20, %v9009_v58  ;;  %6593 = vmatprep.subr.bf16.mxu0 %v7262_v26  ;;  %vm3586_vm15 = vcmp.gt.f32.partialorder %v9324_v47, 0.0 }
 0x759   :  { %vm3589_vm3 = vcmp.gt.f32.partialorder %v9330_v53, 0.0 }
 0x75a   :  { %6546 = vmatmul.mubr.msk.bf16.gmra.mrb[136].mxu0 %vm10298_vm4, %v3153_v17  ;;  %vm3587_vm1 = vcmp.gt.f32.partialorder %v9337_v35, 0.0 }
 0x75b   :  { %6549 = vmatprep.mubr.msk.bf16.mxu0 %vm10298_vm4, %v3154_v63  ;;  %6594 = vmatpush3.bf16.msra.mxu0 %v7262_v26 }
 0x75c   :  { %v9343_v28 = vpop.f32.mrb[140].mxu1  ;;  %6595 = vmatprep.subr.bf16.mxu0 %v7280_v31 }
 0x75d   :  { %v9348_v36 = vadd.f32 %v9343_v28, %v9026_v5  ;;  %v9350_v25 = vpop.f32.mrb[141].mxu1 }
 0x75e   :  { %v9354_v58 = vadd.f32 %v9350_v25, %v9032_v62  ;;  %v9356_v4 = vpop.f32.mrb[142].mxu1 }
 0x75f   :  { %v9360_v24 = vadd.f32 %v9356_v4, %v9038_v27  ;;  %v9362_v26 = vpop.f32.mrb[143].mxu1  ;;  %6596 = vmatpush3.bf16.msra.mxu0 %v7280_v31 }
 0x760   :  { %v9367_v5 = vadd.f32 %v9362_v26, %v9044_v6  ;;  %6597 = vmatprep.subr.bf16.mxu0 %v10439_v0  ;;  %vm3590_vm5 = vcmp.gt.f32.partialorder %v9354_v58, 0.0 }
 0x761   :  { %vm3593_vm0 = vcmp.gt.f32.partialorder %v9360_v24, 0.0  ;;  %v3823_v24 = vld [vmem:[%s10255_s6 + $0x8] sm:$0xff] }
 0x762   :  { %6550 = vmatmul.mubr.msk.bf16.gmra.mrb[140].mxu0 %vm10298_vm4, %v3155_v21  ;;  %vm3591_vm6 = vcmp.gt.f32.partialorder %v9367_v5, 0.0  ;;  %vm3592_vm4 = vcmp.gt.f32.partialorder %v9348_v36, 0.0  ;;  %v3810_v36 = vld [vmem:[%s10254_s5] sm:$0xff]  ;;  %v3811_v5 = vld [vmem:[%s10254_s5 + $0x8] sm:$0xff] }
 0x763   :  { %6598 = vmatpush3.bf16.msra.mxu0 %v10439_v0 }
 0x764   :  { %6599 = vmatprep.subr.bf16.mxu0 %v10442_v2 }
 0x767   :  { %6600 = vmatpush3.bf16.msra.mxu0 %v10442_v2 }
 0x81d   :  { %v6539_v62 = vpop.f32.mrb[128].mxu0 }
 0x81e   :  { %v3532_v27 = vmul.f32 %v6571_v7, %v6539_v62  ;;  %v3246_v9 = vpop.f32.mrb[129].mxu0 }
 0x81f   :  { %v3530_v17 = vmul.f32 %v3467_v32, %v3246_v9  ;;  %v6540_v61 = vpop.f32.mrb[130].mxu0 }
 0x820   :  { %v3533_v31 = vmul.f32 %v6572_v45, %v6540_v61  ;;  %v3249_v63 = vpop.f32.mrb[131].mxu0  ;;  %v9375_v6 = vadd.f32 %v3532_v27, %v9141_v46 }
 0x821   :  { %v3531_v13 = vmul.f32 %v3470_v49, %v3249_v63  ;;  %v9379_v21 = vadd.f32 %v3530_v17, %v9145_v22 }
 0x822   :  { %v3596_v0 = vsel %vm3580_vm7, %v9375_v6, -1e+30  ;;  %v9386_v2 = vadd.f32 %v3533_v31, %v9149_v57 }
 0x823   :  { %3614 = vmax.xlane.f32.xlu1 %v3596_v0  ;;  %v3594_v46 = vsel %vm3578_vm8, %v9379_v21, -1e+30  ;;  %v9392_v34 = vadd.f32 %v3531_v13, %v9152_v54 }
 0x824   :  { %3610 = vmax.xlane.f32.xlu0 %v3594_v46  ;;  %v3597_v57 = vsel %vm3581_vm9, %v9386_v2, -1e+30 }
 0x825   :  { %v6543_v22 = vpop.f32.mrb[132].mxu0  ;;  %v3595_v54 = vsel %vm3579_vm10, %v9392_v34, -1e+30 }
 0x826   :  { %v3536_v7 = vmul.f32 %v9280_v56, %v6543_v22  ;;  %v3262_v32 = vpop.f32.mrb[133].mxu0 }
 0x827   :  { %v3534_v42 = vmul.f32 %v9287_v1, %v3262_v32  ;;  %3616 = vmax.xlane.f32.xlu1 %v3597_v57  ;;  %v6544_v45 = vpop.f32.mrb[134].mxu0 }
 0x828   :  { %v3537_v41 = vmul.f32 %v9293_v37, %v6544_v45  ;;  %3612 = vmax.xlane.f32.xlu0 %v3595_v54  ;;  %v3265_v49 = vpop.f32.mrb[135].mxu0  ;;  %v9406_v8 = vadd.f32 %v3536_v7, %v9157_v59 }
 0x829   :  { %v3535_v56 = vmul.f32 %v9299_v10, %v3265_v49  ;;  %v9410_v62 = vadd.f32 %v3534_v42, %v9161_v33 }
 0x82a   :  { %v9414_v1 = vadd.f32 %v3537_v41, %v9165_v16 }
 0x82b   :  { %v3598_v27 = vsel %vm3582_vm11, %v9410_v62, -1e+30  ;;  %v9420_v37 = vadd.f32 %v3535_v56, %v9168_v29  ;;  %v3600_v29 = vsel %vm3584_vm13, %v9406_v8, -1e+30 }
 0x82c   :  { %3618 = vmax.xlane.f32.xlu0 %v3598_v27 }
 0x82d   :  { %v6547_v59 = vpop.f32.mrb[136].mxu0  ;;  %v3599_v33 = vsel %vm3583_vm12, %v9420_v37, -1e+30 }
 0x82e   :  { %v3540_v10 = vmul.f32 %v9313_v40, %v6547_v59  ;;  %3620 = vmax.xlane.f32.xlu1 %v3599_v33  ;;  %v3278_v16 = vpop.f32.mrb[137].mxu0 }
 0x82f   :  { %v3538_v9 = vmul.f32 %v9320_v3, %v3278_v16  ;;  %v6548_v17 = vpop.f32.mrb[138].mxu0  ;;  %v3601_v3 = vsel %vm3585_vm14, %v9414_v1, -1e+30 }
 0x830   :  { %v3541_v61 = vmul.f32 %v9326_v12, %v6548_v17  ;;  %3622 = vmax.xlane.f32.xlu0 %v3600_v29  ;;  %v3281_v31 = vpop.f32.mrb[139].mxu0  ;;  %v9435_v63 = vadd.f32 %v3540_v10, %v9173_v11 }
 0x831   :  { %v3539_v40 = vmul.f32 %v9332_v20, %v3281_v31  ;;  %v9442_v13 = vadd.f32 %v3538_v9, %v9177_v15 }
 0x832   :  { %3624 = vmax.xlane.f32.xlu1 %v3601_v3  ;;  %v9446_v12 = vadd.f32 %v3541_v61, %v9181_v43 }
 0x833   :  { %v3602_v11 = vsel %vm3586_vm15, %v9442_v13, -1e+30  ;;  %v9452_v0 = vadd.f32 %v3539_v40, %v9184_v50  ;;  %v3604_v50 = vsel %vm3588_vm2, %v9435_v63, -1e+30 }
 0x834   :  { %3626 = vmax.xlane.f32.xlu0 %v3602_v11 }
 0x835   :  { %v6551_v20 = vpop.f32.mrb[140].mxu0  ;;  %v3603_v15 = vsel %vm3587_vm1, %v9452_v0, -1e+30 }
 0x836   :  { %v3544_v46 = vmul.f32 %v9343_v28, %v6551_v20  ;;  %3628 = vmax.xlane.f32.xlu1 %v3603_v15  ;;  %v3294_v43 = vpop.f32.mrb[141].mxu0 }
 0x837   :  { %v3542_v22 = vmul.f32 %v9350_v25, %v3294_v43  ;;  %v6552_v7 = vpop.f32.mrb[142].mxu0  ;;  %v3605_v25 = vsel %vm3589_vm3, %v9446_v12, -1e+30 }
 0x838   :  { %v3545_v32 = vmul.f32 %v9356_v4, %v6552_v7  ;;  %3630 = vmax.xlane.f32.xlu0 %v3604_v50  ;;  %v3297_v57 = vpop.f32.mrb[143].mxu0  ;;  %v9467_v42 = vadd.f32 %v3544_v46, %v9189_v14 }
 0x839   :  { %v3543_v28 = vmul.f32 %v9362_v26, %v3297_v57  ;;  %v9474_v45 = vadd.f32 %v3542_v22, %v9193_v39 }
 0x83a   :  { %3632 = vmax.xlane.f32.xlu1 %v3605_v25  ;;  %v9478_v4 = vadd.f32 %v3545_v32, %v9197_v30  ;;  %v3608_v30 = vsel %vm3592_vm4, %v9467_v42, -1e+30 }
 0x83b   :  { %v3606_v14 = vsel %vm3590_vm5, %v9474_v45, -1e+30  ;;  %v9484_v54 = vadd.f32 %v3543_v28, %v9200_v18 }
 0x83c   :  { %3634 = vmax.xlane.f32.xlu0 %v3606_v14  ;;  %v3609_v18 = vsel %vm3593_vm0, %v9478_v4, -1e+30 }
 0x83d   :  { %v3607_v39 = vsel %vm3591_vm6, %v9484_v54, -1e+30 }
 0x83e   :  { %3636 = vmax.xlane.f32.xlu1 %v3607_v39 }
 0x840   :  { %3638 = vmax.xlane.f32.xlu0 %v3608_v30 }
 0x842   :  { %3640 = vmax.xlane.f32.xlu1 %v3609_v18 }
 0x8b0   :  { %v3615_v26 = vpop.xlane.xlu1 %3614 }
 0x8b1   :  { %v3644_v41 = vsub.f32 %v9375_v6, %v3615_v26  ;;  %v3611_v49 = vpop.xlane.xlu0 %3610 }
 0x8b2   :  { %v3642_v56 = vsub.f32 %v9379_v21, %v3611_v49 }
 0x8b3   :  { %v3660_v27 = vmin.f32 %v3644_v41, 80.0 }
 0x8b4   :  { %v3658_v59 = vmin.f32 %v3642_v56, 80.0  ;;  %v3617_v33 = vpop.xlane.xlu1 %3616 }
 0x8b5   :  { %v3645_v10 = vsub.f32 %v9386_v2, %v3617_v33  ;;  %v3613_v16 = vpop.xlane.xlu0 %3612  ;;  %v3678_v9 = vmul.f32 1.442695, %v3660_v27 }
 0x8b6   :  { %v3674_v17 = vmul.f32 1.442695, %v3658_v59  ;;  %v3643_v29 = vsub.f32 %v9392_v34, %v3613_v16 }
 0x8b7   :  { %v3661_v61 = vmin.f32 %v3645_v10, 80.0 }
 0x8b8   :  { %6994 = vpow2.f32 %v3674_v17  ;;  %v3659_v31 = vmin.f32 %v3643_v29, 80.0 }
 0x8b9   :  { %v3619_v40 = vpop.xlane.xlu0 %3618  ;;  %6996 = vpow2.f32 %v3678_v9  ;;  %v3680_v3 = vmul.f32 1.442695, %v3661_v61 }
 0x8ba   :  { %v3676_v6 = vmul.f32 1.442695, %v3659_v31  ;;  %v3646_v11 = vsub.f32 %v9410_v62, %v3619_v40 }
 0x8bb   :  { %v3621_v21 = vpop.xlane.xlu1 %3620 }
 0x8bc   :  { %6998 = vpow2.f32 %v3676_v6  ;;  %v3662_v20 = vmin.f32 %v3646_v11, 80.0  ;;  %v3647_v15 = vsub.f32 %v9420_v37, %v3621_v21 }
 0x8bd   :  { %v3623_v2 = vpop.xlane.xlu0 %3622  ;;  %7000 = vpow2.f32 %v3680_v3 }
 0x8be   :  { %v3682_v46 = vmul.f32 1.442695, %v3662_v20  ;;  %v3663_v43 = vmin.f32 %v3647_v15, 80.0  ;;  %v3648_v34 = vsub.f32 %v9406_v8, %v3623_v2 }
 0x8bf   :  { %v3625_v22 = vpop.xlane.xlu1 %3624 }
 0x8c0   :  { %7002 = vpow2.f32 %v3682_v46  ;;  %v3684_v7 = vmul.f32 1.442695, %v3663_v43  ;;  %v3664_v50 = vmin.f32 %v3648_v34, 80.0  ;;  %v3649_v32 = vsub.f32 %v9414_v1, %v3625_v22 }
 0x8c1   :  { %v3627_v57 = vpop.xlane.xlu0 %3626 }
 0x8c2   :  { %v6995_v28 = vpop.eup %6994  ;;  %7004 = vpow2.f32 %v3684_v7  ;;  %v3686_v62 = vmul.f32 1.442695, %v3664_v50  ;;  %v3665_v25 = vmin.f32 %v3649_v32, 80.0  ;;  %v3650_v14 = vsub.f32 %v9442_v13, %v3627_v57 }
 0x8c3   :  { %v3629_v37 = vpop.xlane.xlu1 %3628  ;;  %v9509_v39 = vsel %vm3578_vm8, %v6995_v28, 0.0  ;;  %v6997_v30 = vpop.eup %6996 }
 0x8c4   :  { %7006 = vpow2.f32 %v3686_v62  ;;  %v3688_v8 = vmul.f32 1.442695, %v3665_v25  ;;  %v3666_v18 = vmin.f32 %v3650_v14, 80.0  ;;  %v3651_v26 = vsub.f32 %v9452_v0, %v3629_v37  ;;  %3722 = vadd.xlane.f32.xlu0 %v9509_v39 }
 0x8c5   :  { %v3631_v1 = vpop.xlane.xlu0 %3630  ;;  %v9516_v23 = vsel %vm3580_vm7, %v6997_v30, 0.0  ;;  %v3822_v30 = vld [vmem:[%s10255_s6] sm:$0xff] }
 0x8c6   :  { %v6999_v41 = vpop.eup %6998  ;;  %7008 = vpow2.f32 %v3688_v8  ;;  %v3690_v49 = vmul.f32 1.442695, %v3666_v18  ;;  %v3667_v56 = vmin.f32 %v3651_v26, 80.0  ;;  %v3652_v13 = vsub.f32 %v9435_v63, %v3631_v1  ;;  %v3812_v18 = vld [vmem:[%s10254_s5 + $0x10] sm:$0xff]  ;;  %v3813_v26 = vld [vmem:[%s10254_s5 + $0x18] sm:$0xff] }
 0x8c7   :  { %v3633_v27 = vpop.xlane.xlu1 %3632  ;;  %v9520_v59 = vsel %vm3579_vm10, %v6999_v41, 0.0  ;;  %v7001_v33 = vpop.eup %7000  ;;  %v3818_v8 = vpack.c.bf16 %v3811_v5, %v3810_v36  ;;  %v9612_v1 = vpack.c.bf16 %v3823_v24, %v3822_v30  ;;  %v3819_v41 = vpack.c.bf16 %v3813_v26, %v3812_v18 }
 0x8c8   :  { %7010 = vpow2.f32 %v3690_v49  ;;  %v3692_v0 = vmul.f32 1.442695, %v3667_v56  ;;  %v3668_v10 = vmin.f32 %v3652_v13, 80.0  ;;  %v3653_v16 = vsub.f32 %v9446_v12, %v3633_v27  ;;  %3726 = vadd.xlane.f32.xlu0 %v9516_v23  ;;  %3724 = vadd.xlane.f32.xlu1 %v9520_v59  ;;  %v3814_v49 = vld [vmem:[%s10254_s5 + $0x20] sm:$0xff]  ;;  %v3815_v56 = vld [vmem:[%s10254_s5 + $0x28] sm:$0xff] }
 0x8c9   :  { %v3635_v63 = vpop.xlane.xlu0 %3634  ;;  %v9532_v31 = vsel %vm3581_vm9, %v7001_v33, 0.0  ;;  %6617 = vmatprep.subr.bf16.mxu1 %v3818_v8  ;;  %6641 = vmatprep.subr.bf16.mxu0 %v9612_v1  ;;  %v3820_v13 = vpack.c.bf16 %v3815_v56, %v3814_v49 }
 0x8ca   :  { %v7003_v9 = vpop.eup %7002  ;;  %7012 = vpow2.f32 %v3692_v0  ;;  %v3694_v44 = vmul.f32 1.442695, %v3668_v10  ;;  %v3669_v17 = vmin.f32 %v3653_v16, 80.0  ;;  %v3654_v29 = vsub.f32 %v9474_v45, %v3635_v63  ;;  %6618 = vmatpush3.bf16.msra.mxu1 %v3818_v8  ;;  %v3826_v8 = vld [vmem:[%s10255_s6 + $0x20] sm:$0xff] }
 0x8cb   :  { %v3637_v38 = vpop.xlane.xlu1 %3636  ;;  %v9528_v61 = vsel %vm3582_vm11, %v7003_v9, 0.0  ;;  %6619 = vmatprep.subr.bf16.mxu1 %v3819_v41 }
 0x8cc   :  { %v7005_v12 = vpop.eup %7004  ;;  %7014 = vpow2.f32 %v3694_v44  ;;  %v3696_v40 = vmul.f32 1.442695, %v3669_v17  ;;  %v3670_v3 = vmin.f32 %v3654_v29, 80.0  ;;  %v3655_v6 = vsub.f32 %v9484_v54, %v3637_v38  ;;  %3730 = vadd.xlane.f32.xlu0 %v9528_v61  ;;  %3728 = vadd.xlane.f32.xlu1 %v9532_v31 }
 0x8cd   :  { %v3639_v45 = vpop.xlane.xlu0 %3638  ;;  %v9544_v2 = vsel %vm3583_vm12, %v7005_v12, 0.0 }
 0x8ce   :  { %v7007_v11 = vpop.eup %7006  ;;  %7016 = vpow2.f32 %v3696_v40  ;;  %v3698_v51 = vmul.f32 1.442695, %v3670_v3  ;;  %v3671_v21 = vmin.f32 %v3655_v6, 80.0  ;;  %v3656_v20 = vsub.f32 %v9467_v42, %v3639_v45  ;;  %6620 = vmatpush3.bf16.msra.mxu1 %v3819_v41 }
 0x8cf   :  { %v3641_v52 = vpop.xlane.xlu1 %3640  ;;  %v9540_v15 = vsel %vm3584_vm13, %v7007_v11, 0.0  ;;  %6621 = vmatprep.subr.bf16.mxu1 %v3820_v13 }
 0x8d0   :  { %v7009_v54 = vpop.eup %7008  ;;  %7018 = vpow2.f32 %v3698_v51  ;;  %v3700_v46 = vmul.f32 1.442695, %v3671_v21  ;;  %v3672_v43 = vmin.f32 %v3656_v20, 80.0  ;;  %v3657_v34 = vsub.f32 %v9478_v4, %v3641_v52  ;;  %3734 = vadd.xlane.f32.xlu0 %v9540_v15  ;;  %3732 = vadd.xlane.f32.xlu1 %v9544_v2 }
 0x8d1   :  { %v9555_v60 = vsel %vm3585_vm14, %v7009_v54, 0.0 }
 0x8d2   :  { %v7011_v42 = vpop.eup %7010  ;;  %7020 = vpow2.f32 %v3700_v46  ;;  %v3702_v22 = vmul.f32 1.442695, %v3672_v43  ;;  %v3673_v55 = vmin.f32 %v3657_v34, 80.0  ;;  %6622 = vmatpush3.bf16.msra.mxu1 %v3820_v13 }
 0x8d3   :  { %v9551_v7 = vsel %vm3586_vm15, %v7011_v42, 0.0 }
 0x8d4   :  { %v7013_v50 = vpop.eup %7012  ;;  %7022 = vpow2.f32 %v3702_v22  ;;  %v3704_v32 = vmul.f32 1.442695, %v3673_v55  ;;  %3738 = vadd.xlane.f32.xlu0 %v9551_v7  ;;  %3736 = vadd.xlane.f32.xlu1 %v9555_v60 }
 0x8d5   :  { %v9565_v47 = vsel %vm3587_vm1, %v7013_v50, 0.0 }
 0x8d6   :  { %v7015_v4 = vpop.eup %7014  ;;  %7024 = vpow2.f32 %v3704_v32  ;;  %v3824_v32 = vld [vmem:[%s10255_s6 + $0x10] sm:$0xff] }
 0x8d7   :  { %v9561_v57 = vsel %vm3588_vm2, %v7015_v4, 0.0 }
 0x8d8   :  { %v7017_v48 = vpop.eup %7016  ;;  %3742 = vadd.xlane.f32.xlu0 %v9561_v57  ;;  %3740 = vadd.xlane.f32.xlu1 %v9565_v47 }
 0x8d9   :  { %v9575_v25 = vsel %vm3589_vm3, %v7017_v48, 0.0 }
 0x8da   :  { %v7019_v28 = vpop.eup %7018 }
 0x8db   :  { %v9571_v62 = vsel %vm3590_vm5, %v7019_v28, 0.0 }
 0x8dc   :  { %v7021_v19 = vpop.eup %7020  ;;  %3746 = vadd.xlane.f32.xlu0 %v9571_v62  ;;  %3744 = vadd.xlane.f32.xlu1 %v9575_v25 }
 0x8dd   :  { %v9585_v37 = vsel %vm3591_vm6, %v7021_v19, 0.0 }
 0x8de   :  { %v7023_v35 = vpop.eup %7022 }
 0x8df   :  { %v9581_v14 = vsel %vm3592_vm4, %v7023_v35, 0.0 }
 0x8e0   :  { %v7025_v58 = vpop.eup %7024  ;;  %3750 = vadd.xlane.f32.xlu0 %v9581_v14  ;;  %3748 = vadd.xlane.f32.xlu1 %v9585_v37 }
 0x8e1   :  { %v9591_v53 = vsel %vm3593_vm0, %v7025_v58, 0.0  ;;  %vm10458_vm0 = vcmask 523264  }
 0x8e2   :  { %vm10459_vm4 = vmmov %vm10458_vm0 }
 0x8e3   :  { %vm10460_vm7 = vmmov %vm10458_vm0 }
 0x8e4   :  { %3752 = vadd.xlane.f32.xlu1 %v9591_v53  ;;  %vm10461_vm8 = vmmov %vm10458_vm0 }
 0x8e5   :  { %vm10462_vm9 = vmmov %vm10458_vm0 }
 0x8e6   :  { %vm10463_vm10 = vmmov %vm10458_vm0 }
 0x8e7   :  { %vm10464_vm11 = vmmov %vm10458_vm0 }
 0x8e8   :  { %vm10465_vm12 = vmmov %vm10458_vm0 }
 0x8e9   :  { %vm10466_vm13 = vmmov %vm10458_vm0 }
 0x8ea   :  { %vm10467_vm14 = vmmov %vm10458_vm0 }
 0x8eb   :  { %vm10468_vm15 = vmmov %vm10458_vm0 }
 0x8ec   :  { %vm10469_vm1 = vmmov %vm10458_vm0 }
 0x8ed   :  { %vm10470_vm2 = vmmov %vm10458_vm0 }
 0x8ee   :  { %vm10471_vm3 = vmmov %vm10458_vm0 }
 0x8ef   :  { %vm10472_vm5 = vmmov %vm10458_vm0 }
 0x8f0   :  { %vm10473_vm6 = vmmov %vm10458_vm0 }
 0x951   :  { %v3723_v27 = vpop.xlane.xlu0 %3722 }
 0x952   :  { %v3754_v33 = vmax.f32 %v3723_v27, 1e-12 }
 0x954   :  { %7026 = vrcp.f32 %v3754_v33 }
 0x955   :  { %v3727_v0 = vpop.xlane.xlu0 %3726  ;;  %v3725_v10 = vpop.xlane.xlu1 %3724 }
 0x956   :  { %v3755_v16 = vmax.f32 %v3725_v10, 1e-12  ;;  %v3756_v63 = vmax.f32 %v3727_v0, 1e-12 }
 0x958   :  { %7028 = vrcp.f32 %v3755_v16 }
 0x959   :  { %v3731_v9 = vpop.xlane.xlu0 %3730  ;;  %v3729_v44 = vpop.xlane.xlu1 %3728  ;;  %7030 = vrcp.f32 %v3756_v63 }
 0x95a   :  { %v3757_v17 = vmax.f32 %v3729_v44, 1e-12  ;;  %v3758_v29 = vmax.f32 %v3731_v9, 1e-12 }
 0x95c   :  { %7032 = vrcp.f32 %v3757_v17 }
 0x95d   :  { %v3735_v38 = vpop.xlane.xlu0 %3734  ;;  %v3733_v12 = vpop.xlane.xlu1 %3732  ;;  %7034 = vrcp.f32 %v3758_v29 }
 0x95e   :  { %v3759_v40 = vmax.f32 %v3733_v12, 1e-12  ;;  %v3760_v3 = vmax.f32 %v3735_v38, 1e-12  ;;  %v7027_v6 = vpop.eup %7026 }
 0x95f   :  { %v3786_v52 = vmul.f32 %v7027_v6, %v9509_v39  ;;  %v3825_v39 = vld [vmem:[%s10255_s6 + $0x18] sm:$0xff] }
 0x960   :  { %7036 = vrcp.f32 %v3759_v40  ;;  %v3831_v36 = vpack.c.bf16 %v3825_v39, %v3824_v32 }
 0x961   :  { %v3739_v45 = vpop.xlane.xlu0 %3738  ;;  %v3737_v11 = vpop.xlane.xlu1 %3736  ;;  %7038 = vrcp.f32 %v3760_v3 }
 0x962   :  { %v3761_v51 = vmax.f32 %v3737_v11, 1e-12  ;;  %v7029_v21 = vpop.eup %7028  ;;  %v3762_v20 = vmax.f32 %v3739_v45, 1e-12 }
 0x963   :  { %v3787_v54 = vmul.f32 %v7029_v21, %v9520_v59  ;;  %v7031_v46 = vpop.eup %7030  ;;  %v3816_v21 = vld [vmem:[%s10254_s5 + $0x30] sm:$0xff] }
 0x964   :  { %7040 = vrcp.f32 %v3761_v51  ;;  %v3788_v59 = vmul.f32 %v7031_v46, %v9516_v23  ;;  %v3827_v23 = vld [vmem:[%s10255_s6 + $0x28] sm:$0xff] }
 0x965   :  { %v3743_v43 = vpop.xlane.xlu0 %3742  ;;  %v3741_v34 = vpop.xlane.xlu1 %3740  ;;  %v9623_v22 = vpack.c.bf16 %v3787_v54, %v3786_v52  ;;  %7042 = vrcp.f32 %v3762_v20  ;;  %v3832_v27 = vpack.c.bf16 %v3827_v23, %v3826_v8 }
 0x966   :  { %v3763_v42 = vmax.f32 %v3741_v34, 1e-12  ;;  %v7033_v55 = vpop.eup %7032  ;;  %v3764_v50 = vmax.f32 %v3743_v43, 1e-12  ;;  %v7122_v43 = vld [vmem:[%s10250_s0 + $0x10] sm:$0xff] }
 0x967   :  { %v3789_v4 = vmul.f32 %v7033_v55, %v9532_v31  ;;  %6601 = vmatprep.mubr.bf16.mxu0 %v9623_v22  ;;  %v7035_v48 = vpop.eup %7034  ;;  %v7123_v55 = vld [vmem:[%s10250_s0 + $0x18] sm:$0xff] }
 0x968   :  { %7044 = vrcp.f32 %v3763_v42  ;;  %v3790_v31 = vmul.f32 %v7035_v48, %v9528_v61 }
 0x969   :  { %v3747_v28 = vpop.xlane.xlu0 %3746  ;;  %v3745_v19 = vpop.xlane.xlu1 %3744  ;;  %v9634_v58 = vpack.c.bf16 %v3789_v4, %v3788_v59  ;;  %7046 = vrcp.f32 %v3764_v50  ;;  %v7124_v59 = vld [vmem:[%s10250_s0] sm:$0xff] }
 0x96a   :  { %v3765_v35 = vmax.f32 %v3745_v19, 1e-12  ;;  %v7037_v5 = vpop.eup %7036  ;;  %v3766_v30 = vmax.f32 %v3747_v28, 1e-12  ;;  %v7125_v28 = vld [vmem:[%s10250_s0 + $0x8] sm:$0xff] }
 0x96b   :  { %6602 = vmatmul.mubr.bf16.vlgmr.msra.gmra.mrb[144].mxu0 %v9634_v58  ;;  %v3791_v24 = vmul.f32 %v7037_v5, %v9544_v2  ;;  %v7039_v18 = vpop.eup %7038 }
 0x96c   :  { %7048 = vrcp.f32 %v3765_v35  ;;  %6642 = vmatpush3.bf16.msra.mxu0 %v9612_v1  ;;  %v3792_v61 = vmul.f32 %v7039_v18, %v9540_v15  ;;  %v7126_v18 = vld [vmem:[%s10250_s0 + $0x30] sm:$0xff] }
 0x96d   :  { %v3751_v26 = vpop.xlane.xlu0 %3750  ;;  %v3749_v41 = vpop.xlane.xlu1 %3748  ;;  %v9646_v13 = vpack.c.bf16 %v3791_v24, %v3790_v31  ;;  %6643 = vmatprep.subr.bf16.mxu0 %v3831_v36  ;;  %7050 = vrcp.f32 %v3766_v30 }
 0x96e   :  { %v3768_v49 = vmax.f32 %v3751_v26, 1e-12  ;;  %v3767_v56 = vmax.f32 %v3749_v41, 1e-12  ;;  %v7041_v33 = vpop.eup %7040 }
 0x96f   :  { %6605 = vmatprep.mubr.bf16.mxu0 %v9646_v13  ;;  %v3793_v2 = vmul.f32 %v7041_v33, %v9555_v60  ;;  %v7043_v0 = vpop.eup %7042 }
 0x970   :  { %7052 = vrcp.f32 %v3767_v56  ;;  %6644 = vmatpush3.bf16.msra.mxu0 %v3831_v36  ;;  %v3794_v9 = vmul.f32 %v7043_v0, %v9551_v7 }
 0x971   :  { %v3753_v10 = vpop.xlane.xlu1 %3752  ;;  %7054 = vrcp.f32 %v3768_v49  ;;  %v9651_v16 = vpack.c.bf16 %v3793_v2, %v3792_v61  ;;  %6645 = vmatprep.subr.bf16.mxu0 %v3832_v27  ;;  %v7127_v49 = vld [vmem:[%s10250_s0 + $0x38] sm:$0xff]  ;;  %v7128_v61 = vld [vmem:[%s10250_s0 + $0x20] sm:$0xff] }
 0x972   :  { %v3769_v1 = vmax.f32 %v3753_v10, 1e-12  ;;  %v7045_v63 = vpop.eup %7044  ;;  %v7129_v10 = vld [vmem:[%s10250_s0 + $0x28] sm:$0xff] }
 0x973   :  { %6606 = vmatmul.mubr.bf16.gmra.mrb[148].mxu0 %v9651_v16  ;;  %v3795_v44 = vmul.f32 %v7045_v63, %v9565_v47  ;;  %v7047_v15 = vpop.eup %7046 }
 0x974   :  { %7056 = vrcp.f32 %v3769_v1  ;;  %6646 = vmatpush3.bf16.msra.mxu0 %v3832_v27  ;;  %v3796_v29 = vmul.f32 %v7047_v15, %v9561_v57 }
 0x975   :  { %v9656_v60 = vpack.c.bf16 %v3795_v44, %v3794_v9 }
 0x976   :  { %v7049_v17 = vpop.eup %7048 }
 0x977   :  { %6609 = vmatprep.mubr.bf16.mxu0 %v9656_v60  ;;  %v3797_v38 = vmul.f32 %v7049_v17, %v9575_v25  ;;  %v7051_v12 = vpop.eup %7050 }
 0x978   :  { %v3798_v7 = vmul.f32 %v7051_v12, %v9571_v62  ;;  %v3817_v62 = vld [vmem:[%s10254_s5 + $0x38] sm:$0xff] }
 0x979   :  { %v9661_v40 = vpack.c.bf16 %v3797_v38, %v3796_v29 }
 0x97a   :  { %v7053_v3 = vpop.eup %7052 }
 0x97b   :  { %v7055_v6 = vpop.eup %7054  ;;  %6610 = vmatmul.mubr.bf16.gmra.mrb[152].mxu0 %v9661_v40  ;;  %v3799_v47 = vmul.f32 %v7053_v3, %v9585_v37  ;;  %v3821_v37 = vpack.c.bf16 %v3817_v62, %v3816_v21  ;;  %v7130_v3 = vld [vmem:[%s10250_s0 + $0x50] sm:$0xff]  ;;  %v7132_v21 = vld [vmem:[%s10250_s0 + $0x40] sm:$0xff] }
 0x97c   :  { %v3800_v51 = vmul.f32 %v7055_v6, %v9581_v14  ;;  %v3828_v14 = vld [vmem:[%s10255_s6 + $0x30] sm:$0xff] }
 0x97d   :  { %v9666_v11 = vpack.c.bf16 %v3799_v47, %v3798_v7  ;;  %6623 = vmatprep.subr.bf16.mxu1 %v3821_v37  ;;  %v7131_v47 = vld [vmem:[%s10250_s0 + $0x58] sm:$0xff] }
 0x97e   :  { %v7057_v45 = vpop.eup %7056  ;;  %6624 = vmatpush3.bf16.msra.mxu1 %v3821_v37  ;;  %v7133_v37 = vld [vmem:[%s10250_s0 + $0x48] sm:$0xff] }
 0x97f   :  { %v3801_v57 = vmul.f32 %v7057_v45, %v9591_v53  ;;  %6613 = vmatprep.mubr.bf16.mxu0 %v9666_v11  ;;  %v3829_v53 = vld [vmem:[%s10255_s6 + $0x38] sm:$0xff] }
 0x980   :  { %v3833_v20 = vpack.c.bf16 %v3829_v53, %v3828_v14 }
 0x981   :  { %v9671_v25 = vpack.c.bf16 %v3801_v57, %v3800_v51 }
 0x982   :  { %6647 = vmatprep.subr.bf16.mxu0 %v3833_v20 }
 0x983   :  { %6614 = vmatmul.mubr.bf16.gmra.mrb[156].mxu0 %v9671_v25 }
 0x984   :  { %6648 = vmatpush3.bf16.msra.mxu0 %v3833_v20 }
 0xa3e   :  { %v6603_v52 = vpop.f32.mrb[144].mxu0 }
 0xa3f   :  { %v3868_v54 = vpop.f32.mrb[145].mxu0  ;;  %v3933_v34 = vadd.f32 %v7122_v43, %v6603_v52  ;;  %v4126_v42 = vmul.f32 %v7122_v43, %v6603_v52 }
 0xa40   :  { %v6604_v46 = vpop.f32.mrb[146].mxu0  ;;  %v3931_v4 = vadd.f32 %v7124_v59, %v3868_v54  ;;  %v4124_v48 = vmul.f32 %v7124_v59, %v3868_v54  ;;  %v7135_v59 = vld [vmem:[%s10250_s0 + $0x78] sm:$0xff] }
 0xa41   :  { %v3934_v50 = vadd.f32 %v7123_v55, %v6604_v46  ;;  %v4127_v32 = vmul.f32 %v7123_v55, %v6604_v46  ;;  %v3871_v39 = vpop.f32.mrb[147].mxu0 }
 0xa42   :  { %v3932_v19 = vadd.f32 %v7125_v28, %v3871_v39  ;;  %v4125_v35 = vmul.f32 %v7125_v28, %v3871_v39 }
 0xa43   :  { %v3948_v36 = vpack.c.bf16 %v3934_v50, %v3933_v34  ;;  %v4141_v5 = vpack.c.bf16 %v4127_v32, %v4126_v42  ;;  %v7134_v50 = vld [vmem:[%s10250_s0 + $0x70] sm:$0xff] }
 0xa44   :  { %v3947_v30 = vpack.c.bf16 %v3932_v19, %v3931_v4  ;;  %v4140_v8 = vpack.c.bf16 %v4125_v35, %v4124_v48  ;;  %v7136_v19 = vld [vmem:[%s10250_s0 + $0x60] sm:$0xff] }
 0xa46   :  { %v6607_v23 = vpop.f32.mrb[148].mxu0  ;;  %6625 = vmatprep.mubr.msk.bf16.mxu1 %vm10458_vm0, %v3947_v30  ;;  %6649 = vmatprep.mubr.msk.bf16.mxu0 %vm10459_vm4, %v4140_v8 }
 0xa47   :  { %v3884_v31 = vpop.f32.mrb[149].mxu0  ;;  %6626 = vmatmul.mubr.msk.bf16.vlgmr.msra.gmra.mrb[144].mxu1 %vm10460_vm7, %v3948_v36  ;;  %6650 = vmatmul.mubr.msk.bf16.vlgmr.msra.gmra.mrb[160].mxu0 %vm10461_vm8, %v4141_v5  ;;  %v3937_v26 = vadd.f32 %v7126_v18, %v6607_v23  ;;  %v4130_v41 = vmul.f32 %v7126_v18, %v6607_v23  ;;  %v7137_v5 = vld [vmem:[%s10250_s0 + $0x68] sm:$0xff] }
 0xa48   :  { %v6608_v24 = vpop.f32.mrb[150].mxu0  ;;  %v3935_v2 = vadd.f32 %v7128_v61, %v3884_v31  ;;  %v4128_v0 = vmul.f32 %v7128_v61, %v3884_v31 }
 0xa49   :  { %v3938_v56 = vadd.f32 %v7127_v49, %v6608_v24  ;;  %v4131_v27 = vmul.f32 %v7127_v49, %v6608_v24  ;;  %v3887_v33 = vpop.f32.mrb[151].mxu0 }
 0xa4a   :  { %v3936_v1 = vadd.f32 %v7129_v10, %v3887_v33  ;;  %v4129_v63 = vmul.f32 %v7129_v10, %v3887_v33 }
 0xa4b   :  { %v3950_v9 = vpack.c.bf16 %v3938_v56, %v3937_v26  ;;  %v4143_v44 = vpack.c.bf16 %v4131_v27, %v4130_v41 }
 0xa4c   :  { %v3949_v15 = vpack.c.bf16 %v3936_v1, %v3935_v2  ;;  %v4142_v17 = vpack.c.bf16 %v4129_v63, %v4128_v0 }
 0xa4e   :  { %v6611_v29 = vpop.f32.mrb[152].mxu0  ;;  %6629 = vmatprep.mubr.msk.bf16.mxu1 %vm10462_vm9, %v3949_v15  ;;  %6653 = vmatprep.mubr.msk.bf16.mxu0 %vm10463_vm10, %v4142_v17 }
 0xa4f   :  { %v3900_v38 = vpop.f32.mrb[153].mxu0  ;;  %6630 = vmatmul.mubr.msk.bf16.gmra.mrb[148].mxu1 %vm10464_vm11, %v3950_v9  ;;  %6654 = vmatmul.mubr.msk.bf16.gmra.mrb[164].mxu0 %vm10465_vm12, %v4143_v44  ;;  %v3941_v6 = vadd.f32 %v7130_v3, %v6611_v29  ;;  %v4134_v7 = vmul.f32 %v7130_v3, %v6611_v29 }
 0xa50   :  { %v6612_v12 = vpop.f32.mrb[154].mxu0  ;;  %v3939_v62 = vadd.f32 %v7132_v21, %v3900_v38  ;;  %v4132_v14 = vmul.f32 %v7132_v21, %v3900_v38 }
 0xa51   :  { %v3942_v45 = vadd.f32 %v7131_v47, %v6612_v12  ;;  %v4135_v51 = vmul.f32 %v7131_v47, %v6612_v12  ;;  %v3903_v57 = vpop.f32.mrb[155].mxu0 }
 0xa52   :  { %v3940_v53 = vadd.f32 %v7133_v37, %v3903_v57  ;;  %v4133_v20 = vmul.f32 %v7133_v37, %v3903_v57 }
 0xa53   :  { %v3952_v52 = vpack.c.bf16 %v3942_v45, %v3941_v6  ;;  %v4145_v54 = vpack.c.bf16 %v4135_v51, %v4134_v7 }
 0xa54   :  { %v3951_v46 = vpack.c.bf16 %v3940_v53, %v3939_v62  ;;  %v4144_v43 = vpack.c.bf16 %v4133_v20, %v4132_v14 }
 0xa56   :  { %v6615_v34 = vpop.f32.mrb[156].mxu0  ;;  %6633 = vmatprep.mubr.msk.bf16.mxu1 %vm10466_vm13, %v3951_v46  ;;  %6657 = vmatprep.mubr.msk.bf16.mxu0 %vm10467_vm14, %v4144_v43 }
 0xa57   :  { %v3916_v42 = vpop.f32.mrb[157].mxu0  ;;  %6634 = vmatmul.mubr.msk.bf16.gmra.mrb[152].mxu1 %vm10468_vm15, %v3952_v52  ;;  %6658 = vmatmul.mubr.msk.bf16.gmra.mrb[168].mxu0 %vm10469_vm1, %v4145_v54  ;;  %v3945_v32 = vadd.f32 %v7134_v50, %v6615_v34  ;;  %v4138_v39 = vmul.f32 %v7134_v50, %v6615_v34 }
 0xa58   :  { %v6616_v55 = vpop.f32.mrb[158].mxu0  ;;  %v3943_v35 = vadd.f32 %v7136_v19, %v3916_v42  ;;  %v4136_v36 = vmul.f32 %v7136_v19, %v3916_v42 }
 0xa59   :  { %v3946_v4 = vadd.f32 %v7135_v59, %v6616_v55  ;;  %v4139_v48 = vmul.f32 %v7135_v59, %v6616_v55  ;;  %v3919_v28 = vpop.f32.mrb[159].mxu0 }
 0xa5a   :  { %v3944_v30 = vadd.f32 %v7137_v5, %v3919_v28  ;;  %v4137_v8 = vmul.f32 %v7137_v5, %v3919_v28 }
 0xa5b   :  { %v3954_v23 = vpack.c.bf16 %v3946_v4, %v3945_v32  ;;  %v4147_v31 = vpack.c.bf16 %v4139_v48, %v4138_v39 }
 0xa5c   :  { %v3953_v24 = vpack.c.bf16 %v3944_v30, %v3943_v35  ;;  %v4146_v18 = vpack.c.bf16 %v4137_v8, %v4136_v36 }
 0xa5e   :  { %6637 = vmatprep.mubr.msk.bf16.mxu1 %vm10470_vm2, %v3953_v24  ;;  %6661 = vmatprep.mubr.msk.bf16.mxu0 %vm10471_vm3, %v4146_v18 }
 0xa5f   :  { %6638 = vmatmul.mubr.msk.bf16.gmra.mrb[156].mxu1 %vm10472_vm5, %v3954_v23  ;;  %6662 = vmatmul.mubr.msk.bf16.gmra.mrb[172].mxu0 %vm10473_vm6, %v4147_v31 }
 0xa60   :  { %6681 = vmatprep.mubr.bf16.mxu1 %v9623_v22 }
 0xb1a   :  { %v6627_v26 = vpop.f32.mrb[144].mxu1  ;;  %v6651_v41 = vpop.f32.mrb[160].mxu0 }
 0xb1b   :  { %vm4078_vm0 = vcmp.gt.f32.partialorder %v6627_v26, 0.0  ;;  %v4094_v49 = vmul.f32 0.2, %v6627_v26  ;;  %vm4271_vm4 = vcmp.gt.f32.partialorder %v6651_v41, 0.0  ;;  %v4287_v56 = vmul.f32 0.2, %v6651_v41 }
 0xb1c   :  { %v4013_v27 = vpop.f32.mrb[145].mxu1  ;;  %v4206_v33 = vpop.f32.mrb[161].mxu0 }
 0xb1d   :  { %v4110_v61 = vsel %vm4078_vm0, %v6627_v26, %v4094_v49  ;;  %v4303_v2 = vsel %vm4271_vm4, %v6651_v41, %v4287_v56  ;;  %vm4076_vm7 = vcmp.gt.f32.partialorder %v4013_v27, 0.0  ;;  %v4092_v0 = vmul.f32 0.2, %v4013_v27  ;;  %v6628_v10 = vpop.f32.mrb[146].mxu1  ;;  %v6652_v1 = vpop.f32.mrb[162].mxu0  ;;  %vm10474_vm4 = vmmov %vm10469_vm1 }
 0xb1e   :  { %v9751_v63 = vadd.f32 %v4303_v2, %v4110_v61  ;;  %vm4269_vm8 = vcmp.gt.f32.partialorder %v4206_v33, 0.0  ;;  %v4285_v9 = vmul.f32 0.2, %v4206_v33  ;;  %vm4079_vm9 = vcmp.gt.f32.partialorder %v6628_v10, 0.0  ;;  %v4016_v22 = vpop.f32.mrb[147].mxu1  ;;  %v4209_v44 = vpop.f32.mrb[163].mxu0 }
 0xb1f   :  { %v4108_v15 = vsel %vm4076_vm7, %v4013_v27, %v4092_v0  ;;  %v4095_v17 = vmul.f32 0.2, %v6628_v10  ;;  %vm4272_vm10 = vcmp.gt.f32.partialorder %v6652_v1, 0.0  ;;  %v4288_v29 = vmul.f32 0.2, %v6652_v1  ;;  %vm10475_vm7 = vmmov %vm10469_vm1 }
 0xb20   :  { %v4301_v38 = vsel %vm4269_vm8, %v4206_v33, %v4285_v9  ;;  %vm4077_vm11 = vcmp.gt.f32.partialorder %v4016_v22, 0.0  ;;  %v4093_v12 = vmul.f32 0.2, %v4016_v22  ;;  %vm4270_vm12 = vcmp.gt.f32.partialorder %v4209_v44, 0.0 }
 0xb21   :  { %v9753_v3 = vadd.f32 %v4301_v38, %v4108_v15  ;;  %v4111_v6 = vsel %vm4079_vm9, %v6628_v10, %v4095_v17  ;;  %v4304_v7 = vsel %vm4272_vm10, %v6652_v1, %v4288_v29  ;;  %v4286_v47 = vmul.f32 0.2, %v4209_v44  ;;  %vm10476_vm9 = vmmov %vm10469_vm1 }
 0xb22   :  { %v9755_v45 = vadd.f32 %v4304_v7, %v4111_v6  ;;  %v4109_v51 = vsel %vm4077_vm11, %v4016_v22, %v4093_v12  ;;  %v6631_v57 = vpop.f32.mrb[148].mxu1  ;;  %v6655_v21 = vpop.f32.mrb[164].mxu0  ;;  %v4335_v62 = vmul.f32 %v9751_v63, %v9751_v63 }
 0xb23   :  { %v4302_v14 = vsel %vm4270_vm12, %v4209_v44, %v4286_v47  ;;  %vm4082_vm13 = vcmp.gt.f32.partialorder %v6631_v57, 0.0  ;;  %v4098_v37 = vmul.f32 0.2, %v6631_v57  ;;  %vm4275_vm14 = vcmp.gt.f32.partialorder %v6655_v21, 0.0  ;;  %v4029_v53 = vpop.f32.mrb[149].mxu1  ;;  %v4222_v20 = vpop.f32.mrb[165].mxu0 }
 0xb24   :  { %v9759_v52 = vadd.f32 %v4302_v14, %v4109_v51  ;;  %v4291_v54 = vmul.f32 0.2, %v6655_v21  ;;  %vm4080_vm15 = vcmp.gt.f32.partialorder %v4029_v53, 0.0  ;;  %v4096_v46 = vmul.f32 0.2, %v4029_v53  ;;  %v6632_v43 = vpop.f32.mrb[150].mxu1 }
 0xb25   :  { %v4114_v34 = vsel %vm4082_vm13, %v6631_v57, %v4098_v37  ;;  %v4355_v42 = vsel %vm10469_vm1, %v4335_v62, 0.0  ;;  %vm4273_vm2 = vcmp.gt.f32.partialorder %v4222_v20, 0.0  ;;  %v4289_v55 = vmul.f32 0.2, %v4222_v20  ;;  %v6656_v50 = vpop.f32.mrb[166].mxu0  ;;  %v4032_v32 = vpop.f32.mrb[151].mxu1 }
 0xb26   :  { %v4307_v39 = vsel %vm4275_vm14, %v6655_v21, %v4291_v54  ;;  %v4112_v59 = vsel %vm4080_vm15, %v4029_v53, %v4096_v46  ;;  %4356 = vadd.xlane.f32.xlu0 %v4355_v42  ;;  %vm4083_vm3 = vcmp.gt.f32.partialorder %v6632_v43, 0.0  ;;  %v4099_v4 = vmul.f32 0.2, %v6632_v43  ;;  %v4225_v48 = vpop.f32.mrb[167].mxu0  ;;  %vm10477_vm14 = vmmov %vm10469_vm1 }
 0xb27   :  { %v9762_v28 = vadd.f32 %v4307_v39, %v4114_v34  ;;  %v4305_v19 = vsel %vm4273_vm2, %v4222_v20, %v4289_v55  ;;  %vm4276_vm5 = vcmp.gt.f32.partialorder %v6656_v50, 0.0  ;;  %v4292_v35 = vmul.f32 0.2, %v6656_v50 }
 0xb28   :  { %v9764_v36 = vadd.f32 %v4305_v19, %v4112_v59  ;;  %v4115_v5 = vsel %vm4083_vm3, %v6632_v43, %v4099_v4  ;;  %vm4081_vm6 = vcmp.gt.f32.partialorder %v4032_v32, 0.0  ;;  %v4097_v30 = vmul.f32 0.2, %v4032_v32  ;;  %vm10478_vm3 = vmmov %vm10474_vm4 }
 0xb29   :  { %v4308_v8 = vsel %vm4276_vm5, %v6656_v50, %v4292_v35  ;;  %v4336_v23 = vmul.f32 %v9755_v45, %v9755_v45  ;;  %vm4274_vm0 = vcmp.gt.f32.partialorder %v4225_v48, 0.0  ;;  %v4290_v31 = vmul.f32 0.2, %v4225_v48  ;;  %vm10479_vm5 = vmmov %vm10478_vm3 }
 0xb2a   :  { %v9768_v24 = vadd.f32 %v4308_v8, %v4115_v5  ;;  %v4113_v18 = vsel %vm4081_vm6, %v4032_v32, %v4097_v30  ;;  %v4485_v26 = vpack.c.bf16 %v9759_v52, %v9753_v3  ;;  %v4333_v41 = vmul.f32 %v9753_v3, %v9753_v3  ;;  %v6635_v49 = vpop.f32.mrb[152].mxu1  ;;  %v6659_v56 = vpop.f32.mrb[168].mxu0 }
 0xb2b   :  { %v4358_v27 = vsel %vm10474_vm4, %v4336_v23, 0.0  ;;  %v4306_v33 = vsel %vm4274_vm0, %v4225_v48, %v4290_v31  ;;  %v4486_v61 = vpack.c.bf16 %v9755_v45, %v9751_v63  ;;  %v4334_v2 = vmul.f32 %v9759_v52, %v9759_v52  ;;  %v4045_v0 = vpop.f32.mrb[153].mxu1  ;;  %v4238_v10 = vpop.f32.mrb[169].mxu0  ;;  %vm10480_vm4 = vmmov %vm10478_vm3 }
 0xb2c   :  { %4359 = vadd.xlane.f32.xlu1 %v4358_v27  ;;  %v9779_v1 = vadd.f32 %v4306_v33, %v4113_v18  ;;  %6665 = vmatprep.subr.bf16.mxu1 %v4485_v26  ;;  %v4349_v9 = vsel %vm10475_vm7, %v4333_v41, 0.0  ;;  %vm4086_vm8 = vcmp.gt.f32.partialorder %v6635_v49, 0.0  ;;  %v4102_v22 = vmul.f32 0.2, %v6635_v49  ;;  %v6636_v44 = vpop.f32.mrb[154].mxu1  ;;  %v6660_v15 = vpop.f32.mrb[170].mxu0 }
 0xb2d   :  { %6666 = vmatpush3.bf16.msra.mxu1 %v4485_v26  ;;  %4350 = vadd.xlane.f32.xlu0 %v4349_v9  ;;  %v4352_v17 = vsel %vm10476_vm9, %v4334_v2, 0.0  ;;  %vm4279_vm10 = vcmp.gt.f32.partialorder %v6659_v56, 0.0  ;;  %v4295_v29 = vmul.f32 0.2, %v6659_v56  ;;  %vm4084_vm11 = vcmp.gt.f32.partialorder %v4045_v0, 0.0  ;;  %v4048_v38 = vpop.f32.mrb[155].mxu1  ;;  %vm10481_vm9 = vmmov %vm10478_vm3 }
 0xb2e   :  { %6667 = vmatprep.subr.bf16.mxu1 %v4486_v61  ;;  %v4118_v12 = vsel %vm4086_vm8, %v6635_v49, %v4102_v22  ;;  %v4100_v6 = vmul.f32 0.2, %v4045_v0  ;;  %v4339_v7 = vmul.f32 %v9762_v28, %v9762_v28  ;;  %vm4277_vm12 = vcmp.gt.f32.partialorder %v4238_v10, 0.0  ;;  %v4241_v47 = vpop.f32.mrb[171].mxu0 }
 0xb2f   :  { %v4311_v51 = vsel %vm4279_vm10, %v6659_v56, %v4295_v29  ;;  %v4293_v57 = vmul.f32 0.2, %v4238_v10  ;;  %vm4087_vm13 = vcmp.gt.f32.partialorder %v6636_v44, 0.0  ;;  %v4103_v21 = vmul.f32 0.2, %v6636_v44 }
 0xb30   :  { %4353 = vadd.xlane.f32.xlu1 %v4352_v17  ;;  %v9785_v62 = vadd.f32 %v4311_v51, %v4118_v12  ;;  %v4116_v14 = vsel %vm4084_vm11, %v4045_v0, %v4100_v6  ;;  %v4367_v37 = vsel %vm10477_vm14, %v4339_v7, 0.0  ;;  %vm4280_vm15 = vcmp.gt.f32.partialorder %v6660_v15, 0.0  ;;  %vm10482_vm14 = vmmov %vm10478_vm3 }
 0xb31   :  { %6668 = vmatpush3.bf16.msra.mxu1 %v4486_v61  ;;  %4368 = vadd.xlane.f32.xlu0 %v4367_v37  ;;  %v4309_v53 = vsel %vm4277_vm12, %v4238_v10, %v4293_v57  ;;  %v4119_v20 = vsel %vm4087_vm13, %v6636_v44, %v4103_v21  ;;  %v4296_v54 = vmul.f32 0.2, %v6660_v15  ;;  %vm4085_vm1 = vcmp.gt.f32.partialorder %v4048_v38, 0.0 }
 0xb32   :  { %v9788_v46 = vadd.f32 %v4309_v53, %v4116_v14  ;;  %v4101_v43 = vmul.f32 0.2, %v4048_v38  ;;  %v4340_v34 = vmul.f32 %v9768_v24, %v9768_v24  ;;  %vm4278_vm2 = vcmp.gt.f32.partialorder %v4241_v47, 0.0  ;;  %v6639_v42 = vpop.f32.mrb[156].mxu1  ;;  %v6663_v55 = vpop.f32.mrb[172].mxu0 }
 0xb33   :  { %v4312_v50 = vsel %vm4280_vm15, %v6660_v15, %v4296_v54  ;;  %v4294_v32 = vmul.f32 0.2, %v4241_v47  ;;  %v4487_v39 = vpack.c.bf16 %v9779_v1, %v9764_v36  ;;  %v4337_v59 = vmul.f32 %v9764_v36, %v9764_v36  ;;  %v4061_v4 = vpop.f32.mrb[157].mxu1  ;;  %v4254_v48 = vpop.f32.mrb[173].mxu0  ;;  %vm10483_vm15 = vmmov %vm10478_vm3 }
 0xb34   :  { %v9796_v19 = vadd.f32 %v4312_v50, %v4119_v20  ;;  %v4117_v35 = vsel %vm4085_vm1, %v4048_v38, %v4101_v43  ;;  %v4370_v5 = vsel %vm10478_vm3, %v4340_v34, 0.0  ;;  %v4488_v30 = vpack.c.bf16 %v9768_v24, %v9762_v28  ;;  %v6640_v8 = vpop.f32.mrb[158].mxu1  ;;  %v6664_v23 = vpop.f32.mrb[174].mxu0  ;;  %vm10484_vm1 = vmmov %vm10478_vm3 }
 0xb35   :  { %4371 = vadd.xlane.f32.xlu1 %v4370_v5  ;;  %v4310_v31 = vsel %vm4278_vm2, %v4241_v47, %v4294_v32  ;;  %6669 = vmatprep.subr.bf16.mxu1 %v4487_v39  ;;  %v4361_v18 = vsel %vm10479_vm5, %v4337_v59, 0.0  ;;  %v4338_v26 = vmul.f32 %v9779_v1, %v9779_v1  ;;  %vm4090_vm6 = vcmp.gt.f32.partialorder %v6639_v42, 0.0  ;;  %v4064_v41 = vpop.f32.mrb[159].mxu1  ;;  %v4257_v49 = vpop.f32.mrb[175].mxu0  ;;  %vm10485_vm2 = vmmov %vm10484_vm1 }
 0xb36   :  { %v9805_v56 = vadd.f32 %v4310_v31, %v4117_v35  ;;  %6670 = vmatpush3.bf16.msra.mxu1 %v4487_v39  ;;  %4362 = vadd.xlane.f32.xlu0 %v4361_v18  ;;  %v4106_v27 = vmul.f32 0.2, %v6639_v42  ;;  %vm4283_vm0 = vcmp.gt.f32.partialorder %v6663_v55, 0.0  ;;  %v4299_v33 = vmul.f32 0.2, %v6663_v55  ;;  %vm10486_vm3 = vmmov %vm10484_vm1  ;;  %v4461_v18 = vld [vmem:[%s10256_s7] sm:$0xff] }
 0xb37   :  { %6671 = vmatprep.subr.bf16.mxu1 %v4488_v30  ;;  %v4364_v61 = vsel %vm10480_vm4, %v4338_v26, 0.0  ;;  %v4343_v2 = vmul.f32 %v9785_v62, %v9785_v62  ;;  %vm4088_vm7 = vcmp.gt.f32.partialorder %v4061_v4, 0.0  ;;  %v4104_v0 = vmul.f32 0.2, %v4061_v4  ;;  %vm10487_vm5 = vmmov %vm10484_vm1 }
 0xb38   :  { %v4122_v10 = vsel %vm4090_vm6, %v6639_v42, %v4106_v27  ;;  %v4315_v9 = vsel %vm4283_vm0, %v6663_v55, %v4299_v33  ;;  %vm4281_vm8 = vcmp.gt.f32.partialorder %v4254_v48, 0.0  ;;  %v4297_v22 = vmul.f32 0.2, %v4254_v48  ;;  %vm10488_vm6 = vmmov %vm10484_vm1  ;;  %v4475_v27 = vld [vmem:[%s10257_s8 + $0x10] sm:$0xff]  ;;  %v4476_v33 = vld [vmem:[%s10257_s8 + $0x18] sm:$0xff] }
 0xb39   :  { %4365 = vadd.xlane.f32.xlu1 %v4364_v61  ;;  %v9810_v44 = vadd.f32 %v4315_v9, %v4122_v10  ;;  %v4379_v15 = vsel %vm10481_vm9, %v4343_v2, 0.0  ;;  %v4120_v17 = vsel %vm4088_vm7, %v4061_v4, %v4104_v0  ;;  %vm4091_vm10 = vcmp.gt.f32.partialorder %v6640_v8, 0.0  ;;  %v4467_v0 = vld [vmem:[%s10256_s7 + $0x30] sm:$0xff]  ;;  %v4468_v10 = vld [vmem:[%s10256_s7 + $0x38] sm:$0xff]  ;;  %vm10489_vm0 = vmmov %vm10484_vm1 }
 0xb3a   :  { %6672 = vmatpush3.bf16.msra.mxu1 %v4488_v30  ;;  %4380 = vadd.xlane.f32.xlu0 %v4379_v15  ;;  %v4313_v29 = vsel %vm4281_vm8, %v4254_v48, %v4297_v22  ;;  %v4107_v38 = vmul.f32 0.2, %v6640_v8  ;;  %vm4284_vm11 = vcmp.gt.f32.partialorder %v6664_v23, 0.0  ;;  %v4300_v12 = vmul.f32 0.2, %v6664_v23  ;;  %v4477_v22 = vld [vmem:[%s10257_s8 + $0x20] sm:$0xff]  ;;  %vm10490_vm4 = vmmov %vm10489_vm0 }
 0xb3b   :  { %v9813_v6 = vadd.f32 %v4313_v29, %v4120_v17  ;;  %v4344_v7 = vmul.f32 %v9796_v19, %v9796_v19  ;;  %vm4089_vm12 = vcmp.gt.f32.partialorder %v4064_v41, 0.0  ;;  %v4105_v47 = vmul.f32 0.2, %v4064_v41  ;;  %v4478_v15 = vld [vmem:[%s10257_s8 + $0x28] sm:$0xff]  ;;  %v4479_v29 = vld [vmem:[%s10257_s8 + $0x30] sm:$0xff]  ;;  %vm10491_vm7 = vmmov %vm10489_vm0 }
 0xb3c   :  { %v4123_v51 = vsel %vm4091_vm10, %v6640_v8, %v4107_v38  ;;  %v4316_v57 = vsel %vm4284_vm11, %v6664_v23, %v4300_v12  ;;  %vm4282_vm13 = vcmp.gt.f32.partialorder %v4257_v49, 0.0  ;;  %v4298_v21 = vmul.f32 0.2, %v4257_v49  ;;  %v4480_v38 = vld [vmem:[%s10257_s8 + $0x38] sm:$0xff]  ;;  %vm10492_vm8 = vmmov %vm10489_vm0 }
 0xb3d   :  { %v9817_v14 = vadd.f32 %v4316_v57, %v4123_v51  ;;  %v4382_v37 = vsel %vm10482_vm14, %v4344_v7, 0.0  ;;  %v4121_v53 = vsel %vm4089_vm12, %v4064_v41, %v4105_v47  ;;  %v4489_v20 = vpack.c.bf16 %v9805_v56, %v9788_v46  ;;  %v4465_v41 = vld [vmem:[%s10256_s7 + $0x20] sm:$0xff]  ;;  %vm10493_vm9 = vmmov %vm10489_vm0 }
 0xb3e   :  { %4383 = vadd.xlane.f32.xlu1 %v4382_v37  ;;  %v4314_v54 = vsel %vm4282_vm13, %v4257_v49, %v4298_v21  ;;  %v4341_v43 = vmul.f32 %v9788_v46, %v9788_v46  ;;  %v4342_v34 = vmul.f32 %v9805_v56, %v9805_v56  ;;  %v4490_v55 = vpack.c.bf16 %v9796_v19, %v9785_v62  ;;  %v4466_v49 = vld [vmem:[%s10256_s7 + $0x28] sm:$0xff]  ;;  %vm10494_vm10 = vmmov %vm10489_vm0 }
 0xb3f   :  { %v9826_v42 = vadd.f32 %v4314_v54, %v4121_v53  ;;  %6673 = vmatprep.subr.bf16.mxu1 %v4489_v20  ;;  %v4347_v50 = vmul.f32 %v9810_v44, %v9810_v44  ;;  %v4348_v32 = vmul.f32 %v9817_v14, %v9817_v14  ;;  %v4345_v5 = vmul.f32 %v9813_v6, %v9813_v6  ;;  %vm10495_vm11 = vmmov %vm10489_vm0 }
 0xb40   :  { %6674 = vmatpush3.bf16.msra.mxu1 %v4489_v20  ;;  %v4373_v39 = vsel %vm10483_vm15, %v4341_v43, 0.0  ;;  %v4376_v59 = vsel %vm10484_vm1, %v4342_v34, 0.0  ;;  %v4492_v8 = vpack.c.bf16 %v9817_v14, %v9810_v44  ;;  %v9888_v61 = vpack.c.bf16 %v4476_v33, %v4475_v27  ;;  %vm10496_vm12 = vmmov %vm10489_vm0 }
 0xb41   :  { %4374 = vadd.xlane.f32.xlu0 %v4373_v39  ;;  %6675 = vmatprep.subr.bf16.mxu1 %v4490_v55  ;;  %v4491_v4 = vpack.c.bf16 %v9826_v42, %v9813_v6  ;;  %v4391_v48 = vsel %vm10485_vm2, %v4347_v50, 0.0  ;;  %v4394_v35 = vsel %vm10486_vm3, %v4348_v32, 0.0  ;;  %v4346_v30 = vmul.f32 %v9826_v42, %v9826_v42  ;;  %vm10497_vm13 = vmmov %vm10489_vm0 }
 0xb42   :  { %4377 = vadd.xlane.f32.xlu1 %v4376_v59  ;;  %v4385_v23 = vsel %vm10487_vm5, %v4345_v5, 0.0  ;;  %v4471_v2 = vpack.c.bf16 %v4466_v49, %v4465_v41  ;;  %v4472_v9 = vpack.c.bf16 %v4468_v10, %v4467_v0  ;;  %v9905_v17 = vpack.c.bf16 %v4478_v15, %v4477_v22  ;;  %vm10498_vm14 = vmmov %vm10489_vm0 }
 0xb43   :  { %v4388_v31 = vsel %vm10488_vm6, %v4346_v30, 0.0  ;;  %v9916_v12 = vpack.c.bf16 %v4480_v38, %v4479_v29  ;;  %vm10499_vm15 = vmmov %vm10489_vm0 }
 0xb44   :  { %6676 = vmatpush3.bf16.msra.mxu1 %v4490_v55  ;;  %vm10500_vm1 = vmmov %vm10489_vm0 }
 0xb45   :  { %4392 = vadd.xlane.f32.xlu0 %v4391_v48  ;;  %6677 = vmatprep.subr.bf16.mxu1 %v4491_v4  ;;  %vm10501_vm2 = vmmov %vm10489_vm0 }
 0xb46   :  { %4395 = vadd.xlane.f32.xlu1 %v4394_v35  ;;  %vm10502_vm3 = vmmov %vm10489_vm0 }
 0xb47   :  { %vm10503_vm5 = vmmov %vm10489_vm0 }
 0xb48   :  { %6678 = vmatpush3.bf16.msra.mxu1 %v4491_v4  ;;  %vm10504_vm6 = vmmov %vm10489_vm0 }
 0xb49   :  { %4386 = vadd.xlane.f32.xlu0 %v4385_v23  ;;  %6679 = vmatprep.subr.bf16.mxu1 %v4492_v8 }
 0xb4a   :  { %4389 = vadd.xlane.f32.xlu1 %v4388_v31 }
 0xb4c   :  { %6680 = vmatpush3.bf16.msra.mxu1 %v4492_v8 }
 0xb4f   :  { %6682 = vmatmul.mubr.bf16.vlgmr.msra.gmra.mrb[160].mxu1 %v9634_v58  ;;  %v4462_v58 = vld [vmem:[%s10256_s7 + $0x8] sm:$0xff] }
 0xb50   :  { %6685 = vmatprep.mubr.bf16.mxu1 %v9646_v13  ;;  %v4463_v13 = vld [vmem:[%s10256_s7 + $0x10] sm:$0xff] }
 0xb57   :  { %6686 = vmatmul.mubr.bf16.gmra.mrb[164].mxu1 %v9651_v16  ;;  %v4469_v16 = vpack.c.bf16 %v4462_v58, %v4461_v18 }
 0xb58   :  { %6689 = vmatprep.mubr.bf16.mxu1 %v9656_v60  ;;  %v4464_v60 = vld [vmem:[%s10256_s7 + $0x18] sm:$0xff] }
 0xb59   :  { %6697 = vmatprep.subr.bf16.mxu0 %v4469_v16 }
 0xb5a   :  { %6698 = vmatpush3.bf16.msra.mxu0 %v4469_v16 }
 0xb5f   :  { %6690 = vmatmul.mubr.bf16.gmra.mrb[168].mxu1 %v9661_v40  ;;  %v4473_v40 = vld [vmem:[%s10257_s8] sm:$0xff] }
 0xb60   :  { %6693 = vmatprep.mubr.bf16.mxu1 %v9666_v11  ;;  %v4474_v11 = vld [vmem:[%s10257_s8 + $0x8] sm:$0xff] }
 0xb61   :  { %v9873_v26 = vpack.c.bf16 %v4474_v11, %v4473_v40 }
 0xb63   :  { %6745 = vmatprep.subr.bf16.mxu1 %v9873_v26 }
 0xb64   :  { %6749 = vmatpush3.bf16.msra.mxu1 %v9873_v26 }
 0xb65   :  { %6746 = vmatprep.subr.bf16.mxu1 %v9888_v61 }
 0xb67   :  { %6694 = vmatmul.mubr.bf16.gmra.mrb[172].mxu1 %v9671_v25  ;;  %v4470_v25 = vpack.c.bf16 %v4464_v60, %v4463_v13 }
 0xb68   :  { %6750 = vmatpush3.bf16.msra.mxu1 %v9888_v61 }
 0xb69   :  { %6699 = vmatprep.subr.bf16.mxu0 %v4470_v25  ;;  %6747 = vmatprep.subr.bf16.mxu1 %v9905_v17 }
 0xb6a   :  { %6700 = vmatpush3.bf16.msra.mxu0 %v4470_v25 }
 0xb6b   :  { %6701 = vmatprep.subr.bf16.mxu0 %v4471_v2 }
 0xb6c   :  { %6751 = vmatpush3.bf16.msra.mxu1 %v9905_v17 }
 0xb6d   :  { %6748 = vmatprep.subr.bf16.mxu1 %v9916_v12 }
 0xb6e   :  { %6702 = vmatpush3.bf16.msra.mxu0 %v4471_v2 }
 0xb6f   :  { %6703 = vmatprep.subr.bf16.mxu0 %v4472_v9 }
 0xb70   :  { %6752 = vmatpush3.bf16.msra.mxu1 %v9916_v12 }
 0xb72   :  { %6704 = vmatpush3.bf16.msra.mxu0 %v4472_v9 }
 0xb73   :  { %6721 = vmatprep.subr.bf16.mxu0 %v9873_v26 }
 0xbb3   :  { %v4357_v7 = vpop.xlane.xlu0 %4356 }
 0xbb4   :  { %v4399_v47 = vmax.f32 %v4357_v7, 1e-24 }
 0xbb6   :  { %7058 = vrsqrt.f32 %v4399_v47 }
 0xbb9   :  { %v4360_v51 = vpop.xlane.xlu1 %4359 }
 0xbba   :  { %v4400_v57 = vmax.f32 %v4360_v51, 1e-24  ;;  %v4351_v21 = vpop.xlane.xlu0 %4350 }
 0xbbb   :  { %v4397_v37 = vmax.f32 %v4351_v21, 1e-24 }
 0xbbc   :  { %7060 = vrsqrt.f32 %v4400_v57 }
 0xbbd   :  { %7062 = vrsqrt.f32 %v4397_v37  ;;  %v4354_v53 = vpop.xlane.xlu1 %4353 }
 0xbbe   :  { %v4398_v20 = vmax.f32 %v4354_v53, 1e-24  ;;  %v4369_v54 = vpop.xlane.xlu0 %4368 }
 0xbbf   :  { %v4403_v43 = vmax.f32 %v4369_v54, 1e-24 }
 0xbc0   :  { %v7059_v34 = vpop.eup %7058  ;;  %7064 = vrsqrt.f32 %v4398_v20 }
 0xbc1   :  { %v4431_v55 = vmul.f32 %v7059_v34, %v9751_v63  ;;  %7066 = vrsqrt.f32 %v4403_v43 }
 0xbc2   :  { %v4372_v50 = vpop.xlane.xlu1 %4371 }
 0xbc3   :  { %4447 = vst.msk [vmem:[%s10258_s9 + $0x10] sm:$0xff] %vm10489_vm0, %v4431_v55  ;;  %v4404_v32 = vmax.f32 %v4372_v50, 1e-24  ;;  %v4363_v39 = vpop.xlane.xlu0 %4362 }
 0xbc4   :  { %v4401_v59 = vmax.f32 %v4363_v39, 1e-24 }
 0xbc5   :  { %7068 = vrsqrt.f32 %v4404_v32 }
 0xbc6   :  { %v7061_v4 = vpop.eup %7060  ;;  %7070 = vrsqrt.f32 %v4401_v59  ;;  %v4366_v48 = vpop.xlane.xlu1 %4365 }
 0xbc7   :  { %v7063_v35 = vpop.eup %7062  ;;  %v4432_v5 = vmul.f32 %v7061_v4, %v9755_v45  ;;  %v4402_v30 = vmax.f32 %v4366_v48, 1e-24  ;;  %v4381_v8 = vpop.xlane.xlu0 %4380 }
 0xbc8   :  { %v4429_v23 = vmul.f32 %v7063_v35, %v9753_v3  ;;  %v4407_v31 = vmax.f32 %v4381_v8, 1e-24 }
 0xbc9   :  { %4448 = vst.msk [vmem:[%s10258_s9 + $0x18] sm:$0xff] %vm10490_vm4, %v4432_v5  ;;  %7072 = vrsqrt.f32 %v4402_v30  ;;  %vm10505_vm4 = vmmov %vm10489_vm0 }
 0xbca   :  { %v7065_v18 = vpop.eup %7064  ;;  %4445 = vst.msk [vmem:[%s10258_s9] sm:$0xff] %vm10491_vm7, %v4429_v23  ;;  %7074 = vrsqrt.f32 %v4407_v31  ;;  %vm10506_vm7 = vmmov %vm10489_vm0 }
 0xbcb   :  { %v7067_v58 = vpop.eup %7066  ;;  %v4430_v13 = vmul.f32 %v7065_v18, %v9759_v52  ;;  %v4384_v16 = vpop.xlane.xlu1 %4383 }
 0xbcc   :  { %v4435_v60 = vmul.f32 %v7067_v58, %v9762_v28  ;;  %v4408_v40 = vmax.f32 %v4384_v16, 1e-24 }
 0xbcd   :  { %4446 = vst.msk [vmem:[%s10258_s9 + $0x8] sm:$0xff] %vm10492_vm8, %v4430_v13  ;;  %vm10507_vm8 = vmmov %vm10489_vm0 }
 0xbce   :  { %4451 = vst.msk [vmem:[%s10258_s9 + $0x30] sm:$0xff] %vm10493_vm9, %v4435_v60  ;;  %7076 = vrsqrt.f32 %v4408_v40  ;;  %v4375_v11 = vpop.xlane.xlu0 %4374  ;;  %vm10508_vm9 = vmmov %vm10489_vm0 }
 0xbcf   :  { %v7069_v25 = vpop.eup %7068  ;;  %v4405_v41 = vmax.f32 %v4375_v11, 1e-24  ;;  %v4378_v49 = vpop.xlane.xlu1 %4377 }
 0xbd0   :  { %v7071_v27 = vpop.eup %7070  ;;  %v4436_v33 = vmul.f32 %v7069_v25, %v9768_v24  ;;  %v4406_v2 = vmax.f32 %v4378_v49, 1e-24 }
 0xbd1   :  { %v4433_v0 = vmul.f32 %v7071_v27, %v9764_v36  ;;  %7078 = vrsqrt.f32 %v4405_v41 }
 0xbd2   :  { %4452 = vst.msk [vmem:[%s10258_s9 + $0x38] sm:$0xff] %vm10494_vm10, %v4436_v33  ;;  %7080 = vrsqrt.f32 %v4406_v2  ;;  %v4393_v10 = vpop.xlane.xlu0 %4392  ;;  %vm10509_vm10 = vmmov %vm10489_vm0 }
 0xbd3   :  { %v7073_v9 = vpop.eup %7072  ;;  %4449 = vst.msk [vmem:[%s10258_s9 + $0x20] sm:$0xff] %vm10495_vm11, %v4433_v0  ;;  %v4411_v22 = vmax.f32 %v4393_v10, 1e-24  ;;  %v4396_v15 = vpop.xlane.xlu1 %4395  ;;  %vm10510_vm11 = vmmov %vm10489_vm0 }
 0xbd4   :  { %v7075_v29 = vpop.eup %7074  ;;  %v4434_v38 = vmul.f32 %v7073_v9, %v9779_v1  ;;  %v4412_v7 = vmax.f32 %v4396_v15, 1e-24 }
 0xbd5   :  { %v4439_v47 = vmul.f32 %v7075_v29, %v9785_v62  ;;  %7082 = vrsqrt.f32 %v4411_v22 }
 0xbd6   :  { %4450 = vst.msk [vmem:[%s10258_s9 + $0x28] sm:$0xff] %vm10496_vm12, %v4434_v38  ;;  %7084 = vrsqrt.f32 %v4412_v7  ;;  %v4387_v51 = vpop.xlane.xlu0 %4386  ;;  %vm10511_vm12 = vmmov %vm10489_vm0 }
 0xbd7   :  { %4455 = vst.msk [vmem:[%s10258_s9 + $0x50] sm:$0xff] %vm10497_vm13, %v4439_v47  ;;  %v4409_v57 = vmax.f32 %v4387_v51, 1e-24  ;;  %v4390_v21 = vpop.xlane.xlu1 %4389  ;;  %vm10512_vm13 = vmmov %vm10489_vm0 }
 0xbd8   :  { %v7077_v37 = vpop.eup %7076  ;;  %v4410_v53 = vmax.f32 %v4390_v21, 1e-24 }
 0xbd9   :  { %v4440_v20 = vmul.f32 %v7077_v37, %v9796_v19  ;;  %7086 = vrsqrt.f32 %v4409_v57 }
 0xbda   :  { %7088 = vrsqrt.f32 %v4410_v53 }
 0xbdb   :  { %v7079_v54 = vpop.eup %7078  ;;  %4456 = vst.msk [vmem:[%s10258_s9 + $0x58] sm:$0xff] %vm10498_vm14, %v4440_v20  ;;  %vm10513_vm14 = vmmov %vm10489_vm0 }
 0xbdc   :  { %v7081_v43 = vpop.eup %7080  ;;  %v4437_v34 = vmul.f32 %v7079_v54, %v9788_v46 }
 0xbdd   :  { %v4438_v55 = vmul.f32 %v7081_v43, %v9805_v56 }
 0xbde   :  { %4453 = vst.msk [vmem:[%s10258_s9 + $0x40] sm:$0xff] %vm10499_vm15, %v4437_v34  ;;  %vm10514_vm15 = vmmov %vm10489_vm0 }
 0xbdf   :  { %v7083_v50 = vpop.eup %7082  ;;  %4454 = vst.msk [vmem:[%s10258_s9 + $0x48] sm:$0xff] %vm10500_vm1, %v4438_v55  ;;  %vm10515_vm1 = vmmov %vm10489_vm0 }
 0xbe0   :  { %v7085_v32 = vpop.eup %7084  ;;  %v4443_v39 = vmul.f32 %v7083_v50, %v9810_v44 }
 0xbe1   :  { %v4444_v59 = vmul.f32 %v7085_v32, %v9817_v14 }
 0xbe2   :  { %4459 = vst.msk [vmem:[%s10258_s9 + $0x70] sm:$0xff] %vm10501_vm2, %v4443_v39  ;;  %vm10516_vm2 = vmmov %vm10489_vm0 }
 0xbe3   :  { %v7087_v4 = vpop.eup %7086  ;;  %4460 = vst.msk [vmem:[%s10258_s9 + $0x78] sm:$0xff] %vm10502_vm3, %v4444_v59  ;;  %vm10517_vm3 = vmmov %vm10489_vm0 }
 0xbe4   :  { %v7089_v48 = vpop.eup %7088  ;;  %v4441_v35 = vmul.f32 %v7087_v4, %v9813_v6 }
 0xbe5   :  { %v4442_v5 = vmul.f32 %v7089_v48, %v9826_v42 }
 0xbe6   :  { %4457 = vst.msk [vmem:[%s10258_s9 + $0x60] sm:$0xff] %vm10503_vm5, %v4441_v35  ;;  %vm10518_vm5 = vmmov %vm10489_vm0 }
 0xbe7   :  { %4458 = vst.msk [vmem:[%s10258_s9 + $0x68] sm:$0xff] %vm10504_vm6, %v4442_v5  ;;  %vm10519_vm6 = vmmov %vm10489_vm0 }
 0xc22   :  { %v6683_v30 = vpop.f32.mrb[160].mxu1 }
 0xc23   :  { %v4527_v8 = vpop.f32.mrb[161].mxu1  ;;  %v4592_v31 = vadd.f32 %v6683_v30, %v9751_v63  ;;  %v10002_v18 = vmul.f32 %v6683_v30, %v9751_v63 }
 0xc24   :  { %v6684_v23 = vpop.f32.mrb[162].mxu1  ;;  %v4590_v60 = vadd.f32 %v4527_v8, %v9753_v3  ;;  %v10010_v40 = vmul.f32 %v4527_v8, %v9753_v3 }
 0xc25   :  { %v4593_v58 = vadd.f32 %v6684_v23, %v9755_v45  ;;  %v10006_v13 = vmul.f32 %v6684_v23, %v9755_v45  ;;  %v4530_v16 = vpop.f32.mrb[163].mxu1 }
 0xc26   :  { %v4591_v11 = vadd.f32 %v4530_v16, %v9759_v52  ;;  %v10014_v25 = vmul.f32 %v4530_v16, %v9759_v52 }
 0xc27   :  { %v4607_v41 = vpack.c.bf16 %v4593_v58, %v4592_v31  ;;  %v4800_v63 = vpack.c.bf16 %v10006_v13, %v10002_v18 }
 0xc28   :  { %v4606_v49 = vpack.c.bf16 %v4591_v11, %v4590_v60  ;;  %v4799_v45 = vpack.c.bf16 %v10014_v25, %v10010_v40 }
 0xc2a   :  { %v6687_v27 = vpop.f32.mrb[164].mxu1  ;;  %6705 = vmatprep.mubr.msk.bf16.mxu0 %vm10489_vm0, %v4606_v49 }
 0xc2b   :  { %v4543_v33 = vpop.f32.mrb[165].mxu1  ;;  %6706 = vmatmul.mubr.msk.bf16.vlgmr.msra.gmra.mrb[176].mxu0 %vm10505_vm4, %v4607_v41  ;;  %v4596_v52 = vadd.f32 %v6687_v27, %v9762_v28  ;;  %v4789_v2 = vmul.f32 %v6687_v27, %v9762_v28 }
 0xc2c   :  { %v6688_v3 = vpop.f32.mrb[166].mxu1  ;;  %6722 = vmatpush3.bf16.msra.mxu0 %v9873_v26  ;;  %v4594_v22 = vadd.f32 %v4543_v33, %v9764_v36  ;;  %v4787_v15 = vmul.f32 %v4543_v33, %v9764_v36 }
 0xc2d   :  { %v4597_v0 = vadd.f32 %v6688_v3, %v9768_v24  ;;  %v4790_v10 = vmul.f32 %v6688_v3, %v9768_v24  ;;  %v4546_v9 = vpop.f32.mrb[167].mxu1  ;;  %6723 = vmatprep.subr.bf16.mxu0 %v9888_v61 }
 0xc2e   :  { %v4595_v29 = vadd.f32 %v4546_v9, %v9779_v1  ;;  %v4788_v38 = vmul.f32 %v4546_v9, %v9779_v1 }
 0xc2f   :  { %v4609_v26 = vpack.c.bf16 %v4597_v0, %v4596_v52  ;;  %v4802_v7 = vpack.c.bf16 %v4790_v10, %v4789_v2 }
 0xc30   :  { %v4608_v47 = vpack.c.bf16 %v4595_v29, %v4594_v22  ;;  %v4801_v51 = vpack.c.bf16 %v4788_v38, %v4787_v15  ;;  %6724 = vmatpush3.bf16.msra.mxu0 %v9888_v61 }
 0xc31   :  { %6725 = vmatprep.subr.bf16.mxu0 %v9905_v17 }
 0xc32   :  { %v6691_v28 = vpop.f32.mrb[168].mxu1  ;;  %6709 = vmatprep.mubr.msk.bf16.mxu0 %vm10506_vm7, %v4608_v47  ;;  %6733 = vmatprep.mubr.msk.bf16.mxu1 %vm10507_vm8, %v4801_v51 }
 0xc33   :  { %v4559_v24 = vpop.f32.mrb[169].mxu1  ;;  %6710 = vmatmul.mubr.msk.bf16.gmra.mrb[180].mxu0 %vm10508_vm9, %v4609_v26  ;;  %6734 = vmatmul.mubr.msk.bf16.vlgmr.msra.gmra.mrb[176].mxu1 %vm10509_vm10, %v4802_v7  ;;  %v4600_v1 = vadd.f32 %v6691_v28, %v9785_v62  ;;  %v4793_v57 = vmul.f32 %v6691_v28, %v9785_v62 }
 0xc34   :  { %v6692_v36 = vpop.f32.mrb[170].mxu1  ;;  %6726 = vmatpush3.bf16.msra.mxu0 %v9905_v17  ;;  %v4598_v53 = vadd.f32 %v4559_v24, %v9788_v46  ;;  %v4791_v20 = vmul.f32 %v4559_v24, %v9788_v46 }
 0xc35   :  { %v4601_v61 = vadd.f32 %v6692_v36, %v9796_v19  ;;  %v4794_v21 = vmul.f32 %v6692_v36, %v9796_v19  ;;  %v4562_v37 = vpop.f32.mrb[171].mxu1  ;;  %6727 = vmatprep.subr.bf16.mxu0 %v9916_v12 }
 0xc36   :  { %v4599_v54 = vadd.f32 %v4562_v37, %v9805_v56  ;;  %v4792_v43 = vmul.f32 %v4562_v37, %v9805_v56 }
 0xc37   :  { %v4611_v17 = vpack.c.bf16 %v4601_v61, %v4600_v1  ;;  %v4804_v34 = vpack.c.bf16 %v4794_v21, %v4793_v57 }
 0xc38   :  { %v4610_v55 = vpack.c.bf16 %v4599_v54, %v4598_v53  ;;  %v4803_v50 = vpack.c.bf16 %v4792_v43, %v4791_v20  ;;  %6728 = vmatpush3.bf16.msra.mxu0 %v9916_v12 }
 0xc3a   :  { %v6695_v62 = vpop.f32.mrb[172].mxu1  ;;  %6713 = vmatprep.mubr.msk.bf16.mxu0 %vm10510_vm11, %v4610_v55  ;;  %6737 = vmatprep.mubr.msk.bf16.mxu1 %vm10511_vm12, %v4803_v50 }
 0xc3b   :  { %v4575_v19 = vpop.f32.mrb[173].mxu1  ;;  %6714 = vmatmul.mubr.msk.bf16.gmra.mrb[184].mxu0 %vm10512_vm13, %v4611_v17  ;;  %6738 = vmatmul.mubr.msk.bf16.gmra.mrb[180].mxu1 %vm10513_vm14, %v4804_v34  ;;  %v4604_v32 = vadd.f32 %v6695_v62, %v9810_v44  ;;  %v4797_v56 = vmul.f32 %v6695_v62, %v9810_v44 }
 0xc3c   :  { %v6696_v46 = vpop.f32.mrb[174].mxu1  ;;  %v4602_v4 = vadd.f32 %v4575_v19, %v9813_v6  ;;  %v4795_v48 = vmul.f32 %v4575_v19, %v9813_v6 }
 0xc3d   :  { %v4605_v39 = vadd.f32 %v6696_v46, %v9817_v14  ;;  %v4798_v59 = vmul.f32 %v6696_v46, %v9817_v14  ;;  %v4578_v12 = vpop.f32.mrb[175].mxu1 }
 0xc3e   :  { %v4603_v35 = vadd.f32 %v4578_v12, %v9826_v42  ;;  %v4796_v5 = vmul.f32 %v4578_v12, %v9826_v42 }
 0xc3f   :  { %v4613_v30 = vpack.c.bf16 %v4605_v39, %v4604_v32  ;;  %v4806_v8 = vpack.c.bf16 %v4798_v59, %v4797_v56 }
 0xc40   :  { %v4612_v23 = vpack.c.bf16 %v4603_v35, %v4602_v4  ;;  %v4805_v31 = vpack.c.bf16 %v4796_v5, %v4795_v48 }
 0xc42   :  { %6717 = vmatprep.mubr.msk.bf16.mxu0 %vm10514_vm15, %v4612_v23  ;;  %6741 = vmatprep.mubr.msk.bf16.mxu1 %vm10515_vm1, %v4805_v31 }
 0xc43   :  { %6718 = vmatmul.mubr.msk.bf16.gmra.mrb[188].mxu0 %vm10516_vm2, %v4613_v30  ;;  %6742 = vmatmul.mubr.msk.bf16.gmra.mrb[184].mxu1 %vm10517_vm3, %v4806_v8 }
 0xc44   :  { %6729 = vmatprep.mubr.msk.bf16.mxu0 %vm10518_vm5, %v4799_v45 }
 0xc4b   :  { %6730 = vmatmul.mubr.msk.bf16.vlgmr.msra.gmra.mrb[192].mxu0 %vm10519_vm6, %v4800_v63  ;;  %vm10520_vm6 = vcmask 261120  }
 0xcfe   :  { %v6707_v44 = vpop.f32.mrb[176].mxu0 }
 0xcff   :  { %v4672_v6 = vpop.f32.mrb[177].mxu0  ;;  %v4753_v58 = vmul.f32 0.2, %v6707_v44  ;;  %vm4737_vm0 = vcmp.gt.f32.partialorder %v6707_v44, 0.0 }
 0xd00   :  { %v6708_v14 = vpop.f32.mrb[178].mxu0  ;;  %v4751_v16 = vmul.f32 0.2, %v4672_v6  ;;  %vm4735_vm4 = vcmp.gt.f32.partialorder %v4672_v6, 0.0 }
 0xd01   :  { %v4675_v42 = vpop.f32.mrb[179].mxu0  ;;  %v4754_v60 = vmul.f32 0.2, %v6708_v14  ;;  %vm4738_vm7 = vcmp.gt.f32.partialorder %v6708_v14, 0.0  ;;  %v10073_v11 = vsel %vm4737_vm0, %v6707_v44, %v4753_v58 }
 0xd02   :  { %v10075_v13 = vsel %vm4735_vm4, %v4672_v6, %v4751_v16  ;;  %vm4736_vm10 = vcmp.gt.f32.partialorder %v4675_v42, 0.0  ;;  %v4752_v49 = vmul.f32 0.2, %v4675_v42 }
 0xd03   :  { %v10077_v63 = vsel %vm4738_vm7, %v6708_v14, %v4754_v60 }
 0xd04   :  { %v10084_v1 = vsel %vm4736_vm10, %v4675_v42, %v4752_v49  ;;  %vm10521_vm10 = vmmov %vm10520_vm6 }
 0xd06   :  { %v6711_v40 = vpop.f32.mrb[180].mxu0  ;;  %v6735_v25 = vpop.f32.mrb[176].mxu1 }
 0xd07   :  { %vm4741_vm8 = vcmp.gt.f32.partialorder %v6711_v40, 0.0  ;;  %v4757_v41 = vmul.f32 0.2, %v6711_v40  ;;  %vm4934_vm9 = vcmp.gt.f32.partialorder %v6735_v25, 0.0  ;;  %v4950_v18 = vmul.f32 0.2, %v6735_v25 }
 0xd08   :  { %v4688_v45 = vpop.f32.mrb[181].mxu0  ;;  %v4881_v27 = vpop.f32.mrb[177].mxu1 }
 0xd09   :  { %v4773_v33 = vsel %vm4741_vm8, %v6711_v40, %v4757_v41  ;;  %v4966_v3 = vsel %vm4934_vm9, %v6735_v25, %v4950_v18  ;;  %vm4739_vm11 = vcmp.gt.f32.partialorder %v4688_v45, 0.0  ;;  %v4755_v52 = vmul.f32 0.2, %v4688_v45  ;;  %v6712_v2 = vpop.f32.mrb[182].mxu0  ;;  %v6736_v0 = vpop.f32.mrb[178].mxu1 }
 0xd0a   :  { %vm4932_vm12 = vcmp.gt.f32.partialorder %v4881_v27, 0.0  ;;  %v4948_v10 = vmul.f32 0.2, %v4881_v27  ;;  %vm4742_vm13 = vcmp.gt.f32.partialorder %v6712_v2, 0.0  ;;  %v4758_v9 = vmul.f32 0.2, %v6712_v2 }
 0xd0b   :  { %v4771_v22 = vsel %vm4739_vm11, %v4688_v45, %v4755_v52  ;;  %vm4935_vm14 = vcmp.gt.f32.partialorder %v6736_v0, 0.0  ;;  %v4951_v15 = vmul.f32 0.2, %v6736_v0  ;;  %v4691_v29 = vpop.f32.mrb[183].mxu0  ;;  %v4884_v38 = vpop.f32.mrb[179].mxu1  ;;  %v10079_v26 = vadd.f32 %v4966_v3, %v4773_v33  ;;  %vm10522_vm11 = vmmov %vm10520_vm6 }
 0xd0c   :  { %v4964_v7 = vsel %vm4932_vm12, %v4881_v27, %v4948_v10  ;;  %v4774_v47 = vsel %vm4742_vm13, %v6712_v2, %v4758_v9  ;;  %vm4740_vm15 = vcmp.gt.f32.partialorder %v4691_v29, 0.0  ;;  %v4756_v51 = vmul.f32 0.2, %v4691_v29 }
 0xd0d   :  { %v4967_v28 = vsel %vm4935_vm14, %v6736_v0, %v4951_v15  ;;  %vm4933_vm1 = vcmp.gt.f32.partialorder %v4884_v38, 0.0  ;;  %v4949_v24 = vmul.f32 0.2, %v4884_v38  ;;  %v4998_v36 = vmul.f32 %v10079_v26, %v10079_v26 }
 0xd0e   :  { %v4772_v57 = vsel %vm4740_vm15, %v4691_v29, %v4756_v51  ;;  %v6715_v61 = vpop.f32.mrb[184].mxu0  ;;  %v6739_v21 = vpop.f32.mrb[180].mxu1  ;;  %v10086_v37 = vadd.f32 %v4967_v28, %v4774_v47  ;;  %v10088_v53 = vadd.f32 %v4964_v7, %v4771_v22  ;;  %vm10523_vm15 = vmmov %vm10520_vm6 }
 0xd0f   :  { %v4965_v20 = vsel %vm4933_vm1, %v4884_v38, %v4949_v24  ;;  %vm4745_vm2 = vcmp.gt.f32.partialorder %v6715_v61, 0.0  ;;  %v4761_v54 = vmul.f32 0.2, %v6715_v61  ;;  %vm4938_vm3 = vcmp.gt.f32.partialorder %v6739_v21, 0.0  ;;  %v4704_v43 = vpop.f32.mrb[185].mxu0  ;;  %v4897_v17 = vpop.f32.mrb[181].mxu1 }
 0xd10   :  { %v4954_v34 = vmul.f32 0.2, %v6739_v21  ;;  %vm4743_vm5 = vcmp.gt.f32.partialorder %v4704_v43, 0.0  ;;  %v4759_v55 = vmul.f32 0.2, %v4704_v43  ;;  %v5026_v50 = vsel %vm10520_vm6, %v4998_v36, 0.0 }
 0xd11   :  { %v4777_v62 = vsel %vm4745_vm2, %v6715_v61, %v4761_v54  ;;  %5027 = vadd.xlane.f32.xlu0 %v5026_v50  ;;  %vm4936_vm0 = vcmp.gt.f32.partialorder %v4897_v17, 0.0  ;;  %v4952_v19 = vmul.f32 0.2, %v4897_v17  ;;  %v6716_v46 = vpop.f32.mrb[186].mxu0  ;;  %v6740_v32 = vpop.f32.mrb[182].mxu1  ;;  %v4999_v56 = vmul.f32 %v10086_v37, %v10086_v37  ;;  %vm10524_vm2 = vmmov %vm10520_vm6 }
 0xd12   :  { %v4970_v39 = vsel %vm4938_vm3, %v6739_v21, %v4954_v34  ;;  %v10093_v59 = vsel %vm4743_vm5, %v4704_v43, %v4759_v55  ;;  %vm4746_vm4 = vcmp.gt.f32.partialorder %v6716_v46, 0.0  ;;  %v4762_v12 = vmul.f32 0.2, %v6716_v46  ;;  %v4707_v4 = vpop.f32.mrb[187].mxu0  ;;  %v4900_v48 = vpop.f32.mrb[183].mxu1 }
 0xd13   :  { %v4968_v35 = vsel %vm4936_vm0, %v4897_v17, %v4952_v19  ;;  %vm4939_vm7 = vcmp.gt.f32.partialorder %v6740_v32, 0.0  ;;  %v4955_v5 = vmul.f32 0.2, %v6740_v32  ;;  %vm4744_vm8 = vcmp.gt.f32.partialorder %v4707_v4, 0.0 }
 0xd14   :  { %v4778_v30 = vsel %vm4746_vm4, %v6716_v46, %v4762_v12  ;;  %v4760_v8 = vmul.f32 0.2, %v4707_v4  ;;  %vm4937_vm9 = vcmp.gt.f32.partialorder %v4900_v48, 0.0  ;;  %v4953_v23 = vmul.f32 0.2, %v4900_v48  ;;  %vm10525_vm4 = vmmov %vm10524_vm2 }
 0xd15   :  { %v4971_v31 = vsel %vm4939_vm7, %v6740_v32, %v4955_v5  ;;  %v5029_v44 = vsel %vm10521_vm10, %v4999_v56, 0.0  ;;  %v4996_v6 = vmul.f32 %v10088_v53, %v10088_v53  ;;  %v10098_v14 = vadd.f32 %v4965_v20, %v4772_v57  ;;  %vm10526_vm10 = vmmov %vm10524_vm2 }
 0xd16   :  { %v4776_v42 = vsel %vm4744_vm8, %v4707_v4, %v4760_v8  ;;  %v4969_v58 = vsel %vm4937_vm9, %v4900_v48, %v4953_v23  ;;  %5030 = vadd.xlane.f32.xlu1 %v5029_v44  ;;  %v6719_v16 = vpop.f32.mrb[188].mxu0  ;;  %v6743_v60 = vpop.f32.mrb[184].mxu1  ;;  %v10100_v40 = vadd.f32 %v4970_v39, %v4777_v62  ;;  %v10102_v25 = vadd.f32 %v4971_v31, %v4778_v30 }
 0xd17   :  { %v5020_v41 = vsel %vm10522_vm11, %v4996_v6, 0.0  ;;  %v4997_v18 = vmul.f32 %v10098_v14, %v10098_v14  ;;  %vm4749_vm12 = vcmp.gt.f32.partialorder %v6719_v16, 0.0  ;;  %v4765_v49 = vmul.f32 0.2, %v6719_v16  ;;  %v4720_v45 = vpop.f32.mrb[189].mxu0  ;;  %v4913_v27 = vpop.f32.mrb[185].mxu1  ;;  %vm10527_vm11 = vmmov %vm10524_vm2 }
 0xd18   :  { %5021 = vadd.xlane.f32.xlu0 %v5020_v41  ;;  %vm4942_vm13 = vcmp.gt.f32.partialorder %v6743_v60, 0.0  ;;  %v4958_v33 = vmul.f32 0.2, %v6743_v60  ;;  %v5002_v3 = vmul.f32 %v10100_v40, %v10100_v40  ;;  %vm4747_vm14 = vcmp.gt.f32.partialorder %v4720_v45, 0.0  ;;  %v6720_v52 = vpop.f32.mrb[190].mxu0  ;;  %v6744_v2 = vpop.f32.mrb[186].mxu1 }
 0xd19   :  { %v5023_v0 = vsel %vm10523_vm15, %v4997_v18, 0.0  ;;  %v4781_v10 = vsel %vm4749_vm12, %v6719_v16, %v4765_v49  ;;  %v4763_v9 = vmul.f32 0.2, %v4720_v45  ;;  %vm4940_vm1 = vcmp.gt.f32.partialorder %v4913_v27, 0.0  ;;  %v4723_v22 = vpop.f32.mrb[191].mxu0  ;;  %v4916_v15 = vpop.f32.mrb[187].mxu1  ;;  %vm10530_vm15 = vmmov %vm10524_vm2 }
 0xd1a   :  { %5024 = vadd.xlane.f32.xlu1 %v5023_v0  ;;  %v4974_v29 = vsel %vm4942_vm13, %v6743_v60, %v4958_v33  ;;  %v5038_v38 = vsel %vm10524_vm2, %v5002_v3, 0.0  ;;  %v4956_v7 = vmul.f32 0.2, %v4913_v27  ;;  %vm4750_vm3 = vcmp.gt.f32.partialorder %v6720_v52, 0.0  ;;  %vm10528_vm13 = vmmov %vm10524_vm2 }
 0xd1b   :  { %v4779_v47 = vsel %vm4747_vm14, %v4720_v45, %v4763_v9  ;;  %v4766_v51 = vmul.f32 0.2, %v6720_v52  ;;  %vm4943_vm5 = vcmp.gt.f32.partialorder %v6744_v2, 0.0  ;;  %v4959_v28 = vmul.f32 0.2, %v6744_v2  ;;  %vm10529_vm14 = vmmov %vm10524_vm2 }
 0xd1c   :  { %5039 = vadd.xlane.f32.xlu0 %v5038_v38  ;;  %v4972_v24 = vsel %vm4940_vm1, %v4913_v27, %v4956_v7  ;;  %vm4748_vm6 = vcmp.gt.f32.partialorder %v4723_v22, 0.0  ;;  %v4764_v36 = vmul.f32 0.2, %v4723_v22  ;;  %vm4941_vm0 = vcmp.gt.f32.partialorder %v4916_v15, 0.0  ;;  %vm10531_vm1 = vmmov %vm10524_vm2 }
 0xd1d   :  { %v4782_v57 = vsel %vm4750_vm3, %v6720_v52, %v4766_v51  ;;  %v4975_v61 = vsel %vm4943_vm5, %v6744_v2, %v4959_v28  ;;  %v4957_v21 = vmul.f32 0.2, %v4916_v15  ;;  %v5003_v20 = vmul.f32 %v10102_v25, %v10102_v25  ;;  %vm10532_vm2 = vmmov %vm10531_vm1 }
 0xd1e   :  { %v4780_v54 = vsel %vm4748_vm6, %v4723_v22, %v4764_v36  ;;  %v10114_v43 = vadd.f32 %v4968_v35, %v10093_v59  ;;  %v10116_v17 = vadd.f32 %v4969_v58, %v4776_v42  ;;  %v6731_v34 = vpop.f32.mrb[192].mxu0  ;;  %v10118_v55 = vadd.f32 %v4972_v24, %v4779_v47  ;;  %vm10533_vm3 = vmmov %vm10531_vm1 }
 0xd1f   :  { %v4973_v50 = vsel %vm4941_vm0, %v4916_v15, %v4957_v21  ;;  %v5041_v62 = vsel %vm10525_vm4, %v5003_v20, 0.0  ;;  %vm4930_vm7 = vcmp.gt.f32.partialorder %v6731_v34, 0.0  ;;  %v4946_v19 = vmul.f32 0.2, %v6731_v34  ;;  %v4865_v46 = vpop.f32.mrb[193].mxu0  ;;  %vm10534_vm5 = vmmov %vm10531_vm1 }
 0xd20   :  { %v10121_v32 = vadd.f32 %v4973_v50, %v4780_v54  ;;  %5042 = vadd.xlane.f32.xlu1 %v5041_v62  ;;  %v5000_v56 = vmul.f32 %v10114_v43, %v10114_v43  ;;  %v5001_v39 = vmul.f32 %v10116_v17, %v10116_v17  ;;  %vm4928_vm8 = vcmp.gt.f32.partialorder %v4865_v46, 0.0  ;;  %v6732_v59 = vpop.f32.mrb[194].mxu0  ;;  %vm10535_vm6 = vmmov %vm10531_vm1 }
 0xd21   :  { %v4962_v12 = vsel %vm4930_vm7, %v6731_v34, %v4946_v19  ;;  %v4944_v4 = vmul.f32 0.2, %v4865_v46  ;;  %v5004_v48 = vmul.f32 %v10118_v55, %v10118_v55  ;;  %vm4931_vm9 = vcmp.gt.f32.partialorder %v6732_v59, 0.0  ;;  %v4868_v35 = vpop.f32.mrb[195].mxu0  ;;  %vm10536_vm0 = vmmov %vm10531_vm1 }
 0xd22   :  { %v5032_v5 = vsel %vm10526_vm10, %v5000_v56, 0.0  ;;  %v5035_v30 = vsel %vm10527_vm11, %v5001_v39, 0.0  ;;  %v4947_v8 = vmul.f32 0.2, %v6732_v59  ;;  %vm4929_vm12 = vcmp.gt.f32.partialorder %v4868_v35, 0.0  ;;  %vm10537_vm4 = vmmov %vm10536_vm0 }
 0xd23   :  { %5033 = vadd.xlane.f32.xlu0 %v5032_v5  ;;  %v4960_v23 = vsel %vm4928_vm8, %v4865_v46, %v4944_v4  ;;  %v5044_v31 = vsel %vm10528_vm13, %v5004_v48, 0.0  ;;  %v4945_v44 = vmul.f32 0.2, %v4868_v35  ;;  %v5005_v6 = vmul.f32 %v10121_v32, %v10121_v32  ;;  %vm10538_vm7 = vmmov %vm10536_vm0 }
 0xd24   :  { %5036 = vadd.xlane.f32.xlu1 %v5035_v30  ;;  %v4963_v42 = vsel %vm4931_vm9, %v6732_v59, %v4947_v8  ;;  %v10135_v58 = vadd.f32 %v4962_v12, %v10073_v11  ;;  %v10138_v16 = vadd.f32 %v4960_v23, %v10075_v13  ;;  %v10140_v60 = vadd.f32 %v4974_v29, %v4781_v10  ;;  %vm10539_vm8 = vmmov %vm10536_vm0 }
 0xd25   :  { %v4961_v41 = vsel %vm4929_vm12, %v4868_v35, %v4945_v44  ;;  %v5047_v18 = vsel %vm10529_vm14, %v5005_v6, 0.0  ;;  %v10144_v49 = vadd.f32 %v4963_v42, %v10077_v63  ;;  %v10146_v45 = vadd.f32 %v4975_v61, %v4782_v57  ;;  %vm10540_vm9 = vmmov %vm10536_vm0 }
 0xd26   :  { %v10149_v27 = vadd.f32 %v4961_v41, %v10084_v1  ;;  %v4994_v11 = vmul.f32 %v10135_v58, %v10135_v58  ;;  %v4992_v63 = vmul.f32 %v10138_v16, %v10138_v16  ;;  %v5006_v2 = vmul.f32 %v10140_v60, %v10140_v60  ;;  %vm10541_vm10 = vmmov %vm10536_vm0 }
 0xd27   :  { %5045 = vadd.xlane.f32.xlu0 %v5044_v31  ;;  %v4995_v13 = vmul.f32 %v10144_v49, %v10144_v49  ;;  %v5007_v10 = vmul.f32 %v10146_v45, %v10146_v45  ;;  %vm10542_vm11 = vmmov %vm10536_vm0 }
 0xd28   :  { %5048 = vadd.xlane.f32.xlu1 %v5047_v18  ;;  %v5014_v33 = vsel %vm10530_vm15, %v4994_v11, 0.0  ;;  %v4993_v1 = vmul.f32 %v10149_v27, %v10149_v27  ;;  %v5008_v52 = vsel %vm10532_vm2, %v4992_v63, 0.0  ;;  %v5050_v9 = vsel %vm10534_vm5, %v5006_v2, 0.0  ;;  %vm10543_vm12 = vmmov %vm10536_vm0 }
 0xd29   :  { %v5017_v3 = vsel %vm10531_vm1, %v4995_v13, 0.0  ;;  %v5053_v22 = vsel %vm10535_vm6, %v5007_v10, 0.0  ;;  %vm10544_vm13 = vmmov %vm10536_vm0 }
 0xd2a   :  { %v5011_v0 = vsel %vm10533_vm3, %v4993_v1, 0.0  ;;  %vm10545_vm14 = vmmov %vm10536_vm0 }
 0xd2b   :  { %5015 = vadd.xlane.f32.xlu0 %v5014_v33  ;;  %vm10546_vm15 = vmmov %vm10536_vm0 }
 0xd2c   :  { %5018 = vadd.xlane.f32.xlu1 %v5017_v3  ;;  %vm10547_vm1 = vmmov %vm10536_vm0 }
 0xd2d   :  { %vm10548_vm2 = vmmov %vm10536_vm0 }
 0xd2e   :  { %vm10549_vm3 = vmmov %vm10536_vm0 }
 0xd2f   :  { %5009 = vadd.xlane.f32.xlu0 %v5008_v52  ;;  %vm10550_vm5 = vmmov %vm10536_vm0 }
 0xd30   :  { %5012 = vadd.xlane.f32.xlu1 %v5011_v0  ;;  %vm10551_vm6 = vmmov %vm10536_vm0 }
 0xd33   :  { %5051 = vadd.xlane.f32.xlu0 %v5050_v9 }
 0xd34   :  { %5054 = vadd.xlane.f32.xlu1 %v5053_v22 }
 0xd9e   :  { %v5028_v15 = vpop.xlane.xlu0 %5027 }
 0xd9f   :  { %v5062_v29 = vmax.f32 %v5028_v15, 1e-24 }
 0xda1   :  { %7090 = vrsqrt.f32 %v5062_v29 }
 0xda3   :  { %v5031_v38 = vpop.xlane.xlu1 %5030 }
 0xda4   :  { %v5063_v7 = vmax.f32 %v5031_v38, 1e-24 }
 0xda5   :  { %v5022_v47 = vpop.xlane.xlu0 %5021 }
 0xda6   :  { %7092 = vrsqrt.f32 %v5063_v7  ;;  %v5060_v51 = vmax.f32 %v5022_v47, 1e-24 }
 0xda7   :  { %v5025_v28 = vpop.xlane.xlu1 %5024 }
 0xda8   :  { %7094 = vrsqrt.f32 %v5060_v51  ;;  %v5061_v24 = vmax.f32 %v5025_v28, 1e-24 }
 0xda9   :  { %v5040_v36 = vpop.xlane.xlu0 %5039 }
 0xdaa   :  { %7096 = vrsqrt.f32 %v5061_v24  ;;  %v5066_v57 = vmax.f32 %v5040_v36, 1e-24 }
 0xdab   :  { %v7091_v61 = vpop.eup %7090 }
 0xdac   :  { %v5094_v21 = vmul.f32 %v7091_v61, %v10079_v26  ;;  %7098 = vrsqrt.f32 %v5066_v57 }
 0xdad   :  { %v5043_v20 = vpop.xlane.xlu1 %5042 }
 0xdae   :  { %5110 = vst.msk [vmem:[%s10259_s10 + $0x30] sm:$0xff] %vm10536_vm0, %v5094_v21  ;;  %v5067_v54 = vmax.f32 %v5043_v20, 1e-24 }
 0xdb0   :  { %v7093_v34 = vpop.eup %7092  ;;  %7100 = vrsqrt.f32 %v5067_v54  ;;  %v5034_v50 = vpop.xlane.xlu0 %5033 }
 0xdb1   :  { %v5095_v62 = vmul.f32 %v7093_v34, %v10086_v37  ;;  %v5064_v19 = vmax.f32 %v5034_v50, 1e-24  ;;  %v5037_v46 = vpop.xlane.xlu1 %5036 }
 0xdb2   :  { %v7095_v56 = vpop.eup %7094  ;;  %v5065_v39 = vmax.f32 %v5037_v46, 1e-24 }
 0xdb3   :  { %5111 = vst.msk [vmem:[%s10259_s10 + $0x38] sm:$0xff] %vm10537_vm4, %v5095_v62  ;;  %v5092_v26 = vmul.f32 %v7095_v56, %v10088_v53  ;;  %7102 = vrsqrt.f32 %v5064_v19 }
 0xdb4   :  { %v7097_v59 = vpop.eup %7096  ;;  %7104 = vrsqrt.f32 %v5065_v39  ;;  %v5046_v12 = vpop.xlane.xlu0 %5045 }
 0xdb5   :  { %5108 = vst.msk [vmem:[%s10259_s10 + $0x20] sm:$0xff] %vm10538_vm7, %v5092_v26  ;;  %v5093_v37 = vmul.f32 %v7097_v59, %v10098_v14  ;;  %v5068_v4 = vmax.f32 %v5046_v12, 1e-24  ;;  %v5049_v48 = vpop.xlane.xlu1 %5048 }
 0xdb6   :  { %v7099_v35 = vpop.eup %7098  ;;  %v5069_v5 = vmax.f32 %v5049_v48, 1e-24 }
 0xdb7   :  { %5109 = vst.msk [vmem:[%s10259_s10 + $0x28] sm:$0xff] %vm10539_vm8, %v5093_v37  ;;  %v5098_v53 = vmul.f32 %v7099_v35, %v10100_v40  ;;  %7106 = vrsqrt.f32 %v5068_v4 }
 0xdb8   :  { %7108 = vrsqrt.f32 %v5069_v5  ;;  %v5016_v30 = vpop.xlane.xlu0 %5015 }
 0xdb9   :  { %5114 = vst.msk [vmem:[%s10259_s10 + $0x50] sm:$0xff] %vm10540_vm9, %v5098_v53  ;;  %v5058_v14 = vmax.f32 %v5016_v30, 1e-24  ;;  %v5019_v8 = vpop.xlane.xlu1 %5018 }
 0xdba   :  { %v7101_v23 = vpop.eup %7100  ;;  %v5059_v31 = vmax.f32 %v5019_v8, 1e-24 }
 0xdbb   :  { %v5099_v44 = vmul.f32 %v7101_v23, %v10102_v25  ;;  %7110 = vrsqrt.f32 %v5058_v14 }
 0xdbc   :  { %7112 = vrsqrt.f32 %v5059_v31  ;;  %v5010_v6 = vpop.xlane.xlu0 %5009 }
 0xdbd   :  { %v7103_v42 = vpop.eup %7102  ;;  %5115 = vst.msk [vmem:[%s10259_s10 + $0x58] sm:$0xff] %vm10541_vm10, %v5099_v44  ;;  %v5056_v40 = vmax.f32 %v5010_v6, 1e-24  ;;  %v5013_v41 = vpop.xlane.xlu1 %5012 }
 0xdbe   :  { %v7105_v18 = vpop.eup %7104  ;;  %v5096_v11 = vmul.f32 %v7103_v42, %v10114_v43  ;;  %v5057_v13 = vmax.f32 %v5013_v41, 1e-24 }
 0xdbf   :  { %v5097_v33 = vmul.f32 %v7105_v18, %v10116_v17  ;;  %7114 = vrsqrt.f32 %v5056_v40 }
 0xdc0   :  { %5112 = vst.msk [vmem:[%s10259_s10 + $0x40] sm:$0xff] %vm10542_vm11, %v5096_v11  ;;  %7116 = vrsqrt.f32 %v5057_v13  ;;  %v5052_v25 = vpop.xlane.xlu0 %5051 }
 0xdc1   :  { %v7107_v3 = vpop.eup %7106  ;;  %5113 = vst.msk [vmem:[%s10259_s10 + $0x48] sm:$0xff] %vm10543_vm12, %v5097_v33  ;;  %v5070_v63 = vmax.f32 %v5052_v25, 1e-24  ;;  %v5055_v1 = vpop.xlane.xlu1 %5054 }
 0xdc2   :  { %v7109_v43 = vpop.eup %7108  ;;  %v5100_v52 = vmul.f32 %v7107_v3, %v10118_v55  ;;  %v5071_v17 = vmax.f32 %v5055_v1, 1e-24 }
 0xdc3   :  { %v5101_v2 = vmul.f32 %v7109_v43, %v10121_v32  ;;  %7118 = vrsqrt.f32 %v5070_v63 }
 0xdc4   :  { %5116 = vst.msk [vmem:[%s10259_s10 + $0x60] sm:$0xff] %vm10544_vm13, %v5100_v52  ;;  %7120 = vrsqrt.f32 %v5071_v17 }
 0xdc5   :  { %v7111_v0 = vpop.eup %7110  ;;  %5117 = vst.msk [vmem:[%s10259_s10 + $0x68] sm:$0xff] %vm10545_vm14, %v5101_v2 }
 0xdc6   :  { %v7113_v10 = vpop.eup %7112  ;;  %v5090_v9 = vmul.f32 %v7111_v0, %v10135_v58 }
 0xdc7   :  { %v5091_v55 = vmul.f32 %v7113_v10, %v10144_v49 }
 0xdc8   :  { %5106 = vst.msk [vmem:[%s10259_s10 + $0x10] sm:$0xff] %vm10546_vm15, %v5090_v9 }
 0xdc9   :  { %v7115_v32 = vpop.eup %7114  ;;  %5107 = vst.msk [vmem:[%s10259_s10 + $0x18] sm:$0xff] %vm10547_vm1, %v5091_v55 }
 0xdca   :  { %v7117_v22 = vpop.eup %7116  ;;  %v5088_v15 = vmul.f32 %v7115_v32, %v10138_v16 }
 0xdcb   :  { %v5089_v29 = vmul.f32 %v7117_v22, %v10149_v27 }
 0xdcc   :  { %5104 = vst.msk [vmem:[%s10259_s10] sm:$0xff] %vm10548_vm2, %v5088_v15 }
 0xdcd   :  { %v7119_v58 = vpop.eup %7118  ;;  %5105 = vst.msk [vmem:[%s10259_s10 + $0x8] sm:$0xff] %vm10549_vm3, %v5089_v29 }
 0xdce   :  { %v7121_v49 = vpop.eup %7120  ;;  %v5102_v38 = vmul.f32 %v7119_v58, %v10140_v60 }
 0xdcf   :  { %v5103_v7 = vmul.f32 %v7121_v49, %v10146_v45 }
 0xdd0   :  { %5118 = vst.msk [vmem:[%s10259_s10 + $0x70] sm:$0xff] %vm10550_vm5, %v5102_v38 }
 0xdd1   :  { %5119 = vst.msk [vmem:[%s10259_s10 + $0x78] sm:$0xff] %vm10551_vm6, %v5103_v7 }

</bundles_post_ra>
